<compile_context>
chip_gen: v5e
topology: v5e:2x2
jax: 0.10.0
libtpu: 0.0.40
codegen_flags: <defaults>
</compile_context>

<pallas_src>
import functools

import jax
import jax.numpy as jnp
from jax import lax
from jax.experimental import pallas as pl
from jax.experimental.pallas import tpu as pltpu


def _vgru_rnn_kernel(gx0r_ref, gx0z_ref, gx0n_ref,
                     whh0r_ref, whh0z_ref, whh0n_ref,
                     wih1r_ref, wih1z_ref, wih1n_ref,
                     whh1r_ref, whh1z_ref, whh1n_ref,
                     bhh0n_ref, b1r_ref, b1z_ref, bih1n_ref, bhh1n_ref,
                     hs_ref,
                     h0_ref, h1_ref,
                     *, tc, compute_dtype):
    """One grid step = `tc` GRU timesteps; hidden state carried in VMEM scratch."""

    @pl.when(pl.program_id(0) == 0)
    def _init():
        h0_ref[...] = jnp.zeros_like(h0_ref)
        h1_ref[...] = jnp.zeros_like(h1_ref)

    # Hoist all weight / bias loads out of the time loop.
    whh0r = whh0r_ref[...]
    whh0z = whh0z_ref[...]
    whh0n = whh0n_ref[...]
    wih1r = wih1r_ref[...]
    wih1z = wih1z_ref[...]
    wih1n = wih1n_ref[...]
    whh1r = whh1r_ref[...]
    whh1z = whh1z_ref[...]
    whh1n = whh1n_ref[...]
    bhh0n = bhh0n_ref[...]
    b1r = b1r_ref[...]
    b1z = b1z_ref[...]
    bih1n = bih1n_ref[...]
    bhh1n = bhh1n_ref[...]

    def mm(a, w):
        # MXU matmul: operands in compute_dtype (f32 or bf16), f32 accumulation.
        return jnp.dot(a.astype(compute_dtype), w,
                       preferred_element_type=jnp.float32)

    def step(i, carry):
        h0, h1 = carry

        # ---- layer 0 (input projection precomputed; r/z biases pre-folded) --
        r0 = jax.nn.sigmoid(gx0r_ref[i] + mm(h0, whh0r))
        z0 = jax.nn.sigmoid(gx0z_ref[i] + mm(h0, whh0z))
        n0 = jnp.tanh(gx0n_ref[i] + r0 * (mm(h0, whh0n) + bhh0n))
        h0 = (1.0 - z0) * n0 + z0 * h0

        # ---- layer 1 ---------------------------------------------------------
        r1 = jax.nn.sigmoid(mm(h0, wih1r) + mm(h1, whh1r) + b1r)
        z1 = jax.nn.sigmoid(mm(h0, wih1z) + mm(h1, whh1z) + b1z)
        n1 = jnp.tanh(mm(h0, wih1n) + bih1n + r1 * (mm(h1, whh1n) + bhh1n))
        h1 = (1.0 - z1) * n1 + z1 * h1

        hs_ref[i] = h1.astype(hs_ref.dtype)
        return (h0, h1)

    h0, h1 = lax.fori_loop(0, tc, step, (h0_ref[...], h1_ref[...]), unroll=True)
    h0_ref[...] = h0
    h1_ref[...] = h1


def _pick_time_chunk(T, max_chunk=32):
    """Largest divisor of T <= max_chunk (timesteps processed per grid step)."""
    tc = 1
    for d in range(1, min(T, max_chunk) + 1):
        if T % d == 0:
            tc = d
    return tc


@functools.partial(jax.jit, static_argnames=("compute_dtype",))
def vgru_forward(zs, params, compute_dtype=jnp.float32):
    """zs: (T, B, x_dim) float32.  Returns (mean, std), each (T, B, z_dim)."""
    T, B, x_dim = zs.shape
    H = params["whh0_t"].shape[0]
    Z = params["wm_t"].shape[1]
    cd = compute_dtype

    # --- pad batch up to the 8-sublane width (B=4 half-fills every vreg) ------
    Bp = max(8, ((B + 7) // 8) * 8)
    zs_p = jnp.pad(zs, ((0, 0), (0, Bp - B), (0, 0))) if Bp != B else zs

    def mm(a, w):
        return jnp.dot(a.astype(cd), w.astype(cd),
                       preferred_element_type=jnp.float32)

    # --- hoisted layer-0 input projection: one batched lane-dense matmul ------
    gx0 = mm(zs_p.reshape(T * Bp, x_dim), params["wih0_t"]).reshape(T, Bp, 3 * H)
    bih0, bhh0 = params["bih0"], params["bhh0"]
    gx0_r = gx0[..., 0 * H:1 * H] + (bih0[:, 0 * H:1 * H] + bhh0[:, 0 * H:1 * H])
    gx0_z = gx0[..., 1 * H:2 * H] + (bih0[:, 1 * H:2 * H] + bhh0[:, 1 * H:2 * H])
    gx0_n = gx0[..., 2 * H:3 * H] + bih0[:, 2 * H:3 * H]

    # --- per-gate weight split: every in-kernel dot yields (B, H) directly ----
    def split3(w):  # (in, 3H) -> three (in, H), cast to the MXU operand dtype
        return (w[:, 0 * H:1 * H].astype(cd),
                w[:, 1 * H:2 * H].astype(cd),
                w[:, 2 * H:3 * H].astype(cd))

    whh0_r, whh0_z, whh0_n = split3(params["whh0_t"])
    wih1_r, wih1_z, wih1_n = split3(params["wih1_t"])
    whh1_r, whh1_z, whh1_n = split3(params["whh1_t"])

    bih1, bhh1 = params["bih1"], params["bhh1"]
    bhh0_n = bhh0[:, 2 * H:3 * H]
    b1_r = bih1[:, 0 * H:1 * H] + bhh1[:, 0 * H:1 * H]
    b1_z = bih1[:, 1 * H:2 * H] + bhh1[:, 1 * H:2 * H]
    bih1_n = bih1[:, 2 * H:3 * H]
    bhh1_n = bhh1[:, 2 * H:3 * H]

    tc = _pick_time_chunk(T)
    num_chunks = T // tc

    kernel = functools.partial(_vgru_rnn_kernel, tc=tc, compute_dtype=cd)

    seq_spec = pl.BlockSpec((tc, Bp, H), lambda c: (c, 0, 0))
    w_spec = pl.BlockSpec((H, H), lambda c: (0, 0))
    b_spec = pl.BlockSpec((1, H), lambda c: (0, 0))

    grid_spec = pltpu.PrefetchScalarGridSpec(
        num_scalar_prefetch=0,
        grid=(num_chunks,),
        in_specs=[
            seq_spec, seq_spec, seq_spec,            # gx0_{r,z,n}
            w_spec, w_spec, w_spec,                  # W_hh_l0^T per gate
            w_spec, w_spec, w_spec,                  # W_ih_l1^T per gate
            w_spec, w_spec, w_spec,                  # W_hh_l1^T per gate
            b_spec, b_spec, b_spec, b_spec, b_spec,  # bhh0_n, b1_r, b1_z, bih1_n, bhh1_n
        ],
        out_specs=pl.BlockSpec((tc, Bp, H), lambda c: (c, 0, 0)),
        scratch_shapes=[
            pltpu.VMEM((Bp, H), jnp.float32),        # h_{t-1} layer 0
            pltpu.VMEM((Bp, H), jnp.float32),        # h_{t-1} layer 1
        ],
    )

    hs = pl.pallas_call(
        kernel,
        out_shape=jax.ShapeDtypeStruct((T, Bp, H), jnp.float32),
        grid_spec=grid_spec,
        compiler_params=pltpu.CompilerParams(
            # The time-chunk axis carries the recurrence -> must stay sequential.
            dimension_semantics=("arbitrary",)),
    )(
        gx0_r, gx0_z, gx0_n,
        whh0_r, whh0_z, whh0_n,
        wih1_r, wih1_z, wih1_n,
        whh1_r, whh1_z, whh1_n,
        bhh0_n, b1_r, b1_z, bih1_n, bhh1_n,
    )

    # --- hoisted heads: one batched matmul against [W_mean^T | W_std^T] -------
    hs = hs[:, :B, :]
    w_heads = jnp.concatenate([params["wm_t"], params["ws_t"]], axis=1)  # (H, 2Z)
    b_heads = jnp.concatenate([params["bm"], params["bs"]], axis=1)      # (1, 2Z)
    ms = (mm(hs.reshape(T * B, H), w_heads) + b_heads).reshape(T, B, 2 * Z)
    return ms[..., :Z], ms[..., Z:]


def init_params(key, x_dim, h_dim, z_dim):
    """Deterministic init (PyTorch-style uniform(-1/sqrt(h), 1/sqrt(h)))."""
    ks = jax.random.split(key, 12)
    lim = 1.0 / jnp.sqrt(h_dim)
    u = lambda k, shape: jax.random.uniform(k, shape, jnp.float32, -lim, lim)
    return {
        # transposed weights: (in, 3*h) / (in, z); PyTorch gate order [r, z, n]
        "wih0_t": u(ks[0], (x_dim, 3 * h_dim)),
        "whh0_t": u(ks[1], (h_dim, 3 * h_dim)),
        "bih0":   u(ks[2], (1, 3 * h_dim)),
        "bhh0":   u(ks[3], (1, 3 * h_dim)),
        "wih1_t": u(ks[4], (h_dim, 3 * h_dim)),
        "whh1_t": u(ks[5], (h_dim, 3 * h_dim)),
        "bih1":   u(ks[6], (1, 3 * h_dim)),
        "bhh1":   u(ks[7], (1, 3 * h_dim)),
        "wm_t":   u(ks[8], (h_dim, z_dim)),
        "bm":     u(ks[9], (1, z_dim)),
        "ws_t":   u(ks[10], (h_dim, z_dim)),
        "bs":     u(ks[11], (1, z_dim)),
    }


def vgru_reference(zs, params, compute_dtype=jnp.float32):
    """Pure-JAX reference of the same forward (same matmul-operand dtype)."""
    H = params["whh0_t"].shape[0]
    cd = compute_dtype

    def mm(a, w):
        return jnp.dot(a.astype(cd), w.astype(cd),
                       preferred_element_type=jnp.float32)

    def cell(x, h, wih_t, whh_t, bih, bhh):
        gx = mm(x, wih_t) + bih
        gh = mm(h, whh_t) + bhh
        r = jax.nn.sigmoid(gx[:, :H] + gh[:, :H])
        z = jax.nn.sigmoid(gx[:, H:2 * H] + gh[:, H:2 * H])
        n = jnp.tanh(gx[:, 2 * H:] + r * gh[:, 2 * H:])
        return (1.0 - z) * n + z * h

    def step(carry, x_t):
        h0, h1 = carry
        h0 = cell(x_t, h0, params["wih0_t"], params["whh0_t"],
                  params["bih0"], params["bhh0"])
        h1 = cell(h0, h1, params["wih1_t"], params["whh1_t"],
                  params["bih1"], params["bhh1"])
        return (h0, h1), h1

    B = zs.shape[1]
    init = (jnp.zeros((B, H), jnp.float32), jnp.zeros((B, H), jnp.float32))
    _, hs = jax.lax.scan(step, init, zs)
    mean = mm(hs, params["wm_t"]) + params["bm"]
    std = mm(hs, params["ws_t"]) + params["bs"]
    return mean, std


if __name__ == "__main__":
    T, B, x_dim, h_dim, z_dim = 8, 4, 8, 32, 16

    key = jax.random.PRNGKey(0)
    k_in, k_p = jax.random.split(key)
    zs = jax.random.normal(k_in, (T, B, x_dim), jnp.float32)
    params = init_params(k_p, x_dim, h_dim, z_dim)

    # float32 path (tight check against the pure-JAX reference).
    mean, std = vgru_forward(zs, params, compute_dtype=jnp.float32)
    jax.block_until_ready((mean, std))
    mean_ref, std_ref = vgru_reference(zs, params, compute_dtype=jnp.float32)
    assert mean.shape == (T, B, z_dim) and std.shape == (T, B, z_dim)
    assert jnp.allclose(mean, mean_ref, atol=1e-4, rtol=1e-4)
    assert jnp.allclose(std, std_ref, atol=1e-4, rtol=1e-4)

    # bfloat16 MXU-operand path (v5e/v6e/v7x friendly); looser tolerance
    # against a reference that applies the same operand casts.
    mean_bf, std_bf = vgru_forward(zs, params, compute_dtype=jnp.bfloat16)
    jax.block_until_ready((mean_bf, std_bf))
    mean_bref, std_bref = vgru_reference(zs, params, compute_dtype=jnp.bfloat16)
    assert jnp.allclose(mean_bf, mean_bref, atol=5e-2, rtol=5e-2)
    assert jnp.allclose(std_bf, std_bref, atol=5e-2, rtol=5e-2)

    print("KERNEL_OK")
</pallas_src>

<mosaic_0001>
module attributes {stable_mosaic.version = 11 : i64} {
  func.func @_vgru_rnn_kernel(%arg0: i32, %arg1: memref<8x8x32xf32, #tpu.memory_space<vmem>>, %arg2: memref<8x8x32xf32, #tpu.memory_space<vmem>>, %arg3: memref<8x8x32xf32, #tpu.memory_space<vmem>>, %arg4: memref<32x32xf32, #tpu.memory_space<vmem>>, %arg5: memref<32x32xf32, #tpu.memory_space<vmem>>, %arg6: memref<32x32xf32, #tpu.memory_space<vmem>>, %arg7: memref<32x32xf32, #tpu.memory_space<vmem>>, %arg8: memref<32x32xf32, #tpu.memory_space<vmem>>, %arg9: memref<32x32xf32, #tpu.memory_space<vmem>>, %arg10: memref<32x32xf32, #tpu.memory_space<vmem>>, %arg11: memref<32x32xf32, #tpu.memory_space<vmem>>, %arg12: memref<32x32xf32, #tpu.memory_space<vmem>>, %arg13: memref<1x32xf32, #tpu.memory_space<vmem>>, %arg14: memref<1x32xf32, #tpu.memory_space<vmem>>, %arg15: memref<1x32xf32, #tpu.memory_space<vmem>>, %arg16: memref<1x32xf32, #tpu.memory_space<vmem>>, %arg17: memref<1x32xf32, #tpu.memory_space<vmem>>, %arg18: memref<8x8x32xf32, #tpu.memory_space<vmem>>, %arg19: memref<8x32xf32, #tpu.memory_space<vmem>>, %arg20: memref<8x32xf32, #tpu.memory_space<vmem>>) attributes {dimension_semantics = [#tpu.dimension_semantics<arbitrary>], iteration_bounds = array<i64: 1>, scalar_prefetch = 0 : i64, scratch_operands = 2 : i64, tpu.core_type = #tpu.core_type<tc>, window_params = [{transform_indices = @transform_0, window_bounds = array<i64: 8, 8, 32>}, {transform_indices = @transform_1, window_bounds = array<i64: 8, 8, 32>}, {transform_indices = @transform_2, window_bounds = array<i64: 8, 8, 32>}, {pipeline_mode = #tpu.pipeline_mode<synchronous>, transform_indices = @transform_3, window_bounds = array<i64: 32, 32>}, {pipeline_mode = #tpu.pipeline_mode<synchronous>, transform_indices = @transform_4, window_bounds = array<i64: 32, 32>}, {pipeline_mode = #tpu.pipeline_mode<synchronous>, transform_indices = @transform_5, window_bounds = array<i64: 32, 32>}, {pipeline_mode = #tpu.pipeline_mode<synchronous>, transform_indices = @transform_6, window_bounds = array<i64: 32, 32>}, {pipeline_mode = #tpu.pipeline_mode<synchronous>, transform_indices = @transform_7, window_bounds = array<i64: 32, 32>}, {pipeline_mode = #tpu.pipeline_mode<synchronous>, transform_indices = @transform_8, window_bounds = array<i64: 32, 32>}, {pipeline_mode = #tpu.pipeline_mode<synchronous>, transform_indices = @transform_9, window_bounds = array<i64: 32, 32>}, {pipeline_mode = #tpu.pipeline_mode<synchronous>, transform_indices = @transform_10, window_bounds = array<i64: 32, 32>}, {pipeline_mode = #tpu.pipeline_mode<synchronous>, transform_indices = @transform_11, window_bounds = array<i64: 32, 32>}, {pipeline_mode = #tpu.pipeline_mode<synchronous>, transform_indices = @transform_12, window_bounds = array<i64: 1, 32>}, {pipeline_mode = #tpu.pipeline_mode<synchronous>, transform_indices = @transform_13, window_bounds = array<i64: 1, 32>}, {pipeline_mode = #tpu.pipeline_mode<synchronous>, transform_indices = @transform_14, window_bounds = array<i64: 1, 32>}, {pipeline_mode = #tpu.pipeline_mode<synchronous>, transform_indices = @transform_15, window_bounds = array<i64: 1, 32>}, {pipeline_mode = #tpu.pipeline_mode<synchronous>, transform_indices = @transform_16, window_bounds = array<i64: 1, 32>}, {transform_indices = @transform_17, window_bounds = array<i64: 8, 8, 32>}]} {
    %c0_i32 = arith.constant 0 : i32
    %0 = arith.cmpi eq, %arg0, %c0_i32 : i32
    %1 = arith.extui %0 : i1 to i32
    %c0_i32_0 = arith.constant 0 : i32
    %2 = arith.cmpi ne, %1, %c0_i32_0 : i32
    scf.if %2 {
      %cst_220 = arith.constant 0.000000e+00 : f32
      %597 = vector.broadcast %cst_220 : f32 to vector<8x32xf32>
      %c0_221 = arith.constant 0 : index
      %c0_222 = arith.constant 0 : index
      %598 = vector.load %arg19[%c0_221, %c0_222] : memref<8x32xf32, #tpu.memory_space<vmem>>, vector<8x32xf32>
      tpu.vector_store %arg19[%c0_221, %c0_222], %597 {strides = array<i32>} : memref<8x32xf32, #tpu.memory_space<vmem>>, vector<8x32xf32>,
      %cst_223 = arith.constant 0.000000e+00 : f32
      %599 = vector.broadcast %cst_223 : f32 to vector<8x32xf32>
      %c0_224 = arith.constant 0 : index
      %c0_225 = arith.constant 0 : index
      %600 = vector.load %arg20[%c0_224, %c0_225] : memref<8x32xf32, #tpu.memory_space<vmem>>, vector<8x32xf32>
      tpu.vector_store %arg20[%c0_224, %c0_225], %599 {strides = array<i32>} : memref<8x32xf32, #tpu.memory_space<vmem>>, vector<8x32xf32>,
    } else {
    }
    %c0 = arith.constant 0 : index
    %c0_1 = arith.constant 0 : index
    %3 = vector.load %arg4[%c0, %c0_1] : memref<32x32xf32, #tpu.memory_space<vmem>>, vector<32x32xf32>
    %c0_2 = arith.constant 0 : index
    %c0_3 = arith.constant 0 : index
    %4 = vector.load %arg5[%c0_2, %c0_3] : memref<32x32xf32, #tpu.memory_space<vmem>>, vector<32x32xf32>
    %c0_4 = arith.constant 0 : index
    %c0_5 = arith.constant 0 : index
    %5 = vector.load %arg6[%c0_4, %c0_5] : memref<32x32xf32, #tpu.memory_space<vmem>>, vector<32x32xf32>
    %c0_6 = arith.constant 0 : index
    %c0_7 = arith.constant 0 : index
    %6 = vector.load %arg7[%c0_6, %c0_7] : memref<32x32xf32, #tpu.memory_space<vmem>>, vector<32x32xf32>
    %c0_8 = arith.constant 0 : index
    %c0_9 = arith.constant 0 : index
    %7 = vector.load %arg8[%c0_8, %c0_9] : memref<32x32xf32, #tpu.memory_space<vmem>>, vector<32x32xf32>
    %c0_10 = arith.constant 0 : index
    %c0_11 = arith.constant 0 : index
    %8 = vector.load %arg9[%c0_10, %c0_11] : memref<32x32xf32, #tpu.memory_space<vmem>>, vector<32x32xf32>
    %c0_12 = arith.constant 0 : index
    %c0_13 = arith.constant 0 : index
    %9 = vector.load %arg10[%c0_12, %c0_13] : memref<32x32xf32, #tpu.memory_space<vmem>>, vector<32x32xf32>
    %c0_14 = arith.constant 0 : index
    %c0_15 = arith.constant 0 : index
    %10 = vector.load %arg11[%c0_14, %c0_15] : memref<32x32xf32, #tpu.memory_space<vmem>>, vector<32x32xf32>
    %c0_16 = arith.constant 0 : index
    %c0_17 = arith.constant 0 : index
    %11 = vector.load %arg12[%c0_16, %c0_17] : memref<32x32xf32, #tpu.memory_space<vmem>>, vector<32x32xf32>
    %c0_18 = arith.constant 0 : index
    %c0_19 = arith.constant 0 : index
    %12 = vector.load %arg13[%c0_18, %c0_19] : memref<1x32xf32, #tpu.memory_space<vmem>>, vector<1x32xf32>
    %c0_20 = arith.constant 0 : index
    %c0_21 = arith.constant 0 : index
    %13 = vector.load %arg14[%c0_20, %c0_21] : memref<1x32xf32, #tpu.memory_space<vmem>>, vector<1x32xf32>
    %c0_22 = arith.constant 0 : index
    %c0_23 = arith.constant 0 : index
    %14 = vector.load %arg15[%c0_22, %c0_23] : memref<1x32xf32, #tpu.memory_space<vmem>>, vector<1x32xf32>
    %c0_24 = arith.constant 0 : index
    %c0_25 = arith.constant 0 : index
    %15 = vector.load %arg16[%c0_24, %c0_25] : memref<1x32xf32, #tpu.memory_space<vmem>>, vector<1x32xf32>
    %c0_26 = arith.constant 0 : index
    %c0_27 = arith.constant 0 : index
    %16 = vector.load %arg17[%c0_26, %c0_27] : memref<1x32xf32, #tpu.memory_space<vmem>>, vector<1x32xf32>
    %c0_28 = arith.constant 0 : index
    %c0_29 = arith.constant 0 : index
    %17 = vector.load %arg19[%c0_28, %c0_29] : memref<8x32xf32, #tpu.memory_space<vmem>>, vector<8x32xf32>
    %c0_30 = arith.constant 0 : index
    %c0_31 = arith.constant 0 : index
    %18 = vector.load %arg20[%c0_30, %c0_31] : memref<8x32xf32, #tpu.memory_space<vmem>>, vector<8x32xf32>
    %c0_i32_32 = arith.constant 0 : i32
    %19 = arith.index_cast %c0_i32_32 : i32 to index
    %c0_33 = arith.constant 0 : index
    %c0_34 = arith.constant 0 : index
    %20 = vector.load %arg1[%19, %c0_33, %c0_34] : memref<8x8x32xf32, #tpu.memory_space<vmem>>, vector<1x8x32xf32>
    %21 = vector.shape_cast %20 : vector<1x8x32xf32> to vector<8x32xf32>
    %cst = arith.constant dense<0.000000e+00> : vector<8x32xf32>
    %22 = tpu.matmul %17, %3, %cst {dimension_numbers = #tpu.dot_dimension_numbers<[1], [0], [0], [1], [0, 0, 1, 1], [], []>} : vector<8x32xf32>, vector<32x32xf32>, vector<8x32xf32> -> vector<8x32xf32>
    %23 = arith.addf %21, %22 : vector<8x32xf32>
    %24 = arith.negf %23 : vector<8x32xf32>
    %25 = math.exp %24 : vector<8x32xf32>
    %cst_35 = arith.constant 1.000000e+00 : f32
    %26 = vector.broadcast %cst_35 : f32 to vector<8x32xf32>
    %27 = arith.addf %26, %25 : vector<8x32xf32>
    %28 = arith.divf %26, %27 : vector<8x32xf32>
    %29 = arith.index_cast %c0_i32_32 : i32 to index
    %c0_36 = arith.constant 0 : index
    %c0_37 = arith.constant 0 : index
    %30 = vector.load %arg2[%29, %c0_36, %c0_37] : memref<8x8x32xf32, #tpu.memory_space<vmem>>, vector<1x8x32xf32>
    %31 = vector.shape_cast %30 : vector<1x8x32xf32> to vector<8x32xf32>
    %cst_38 = arith.constant dense<0.000000e+00> : vector<8x32xf32>
    %32 = tpu.matmul %17, %4, %cst_38 {dimension_numbers = #tpu.dot_dimension_numbers<[1], [0], [0], [1], [0, 0, 1, 1], [], []>} : vector<8x32xf32>, vector<32x32xf32>, vector<8x32xf32> -> vector<8x32xf32>
    %33 = arith.addf %31, %32 : vector<8x32xf32>
    %34 = arith.negf %33 : vector<8x32xf32>
    %35 = math.exp %34 : vector<8x32xf32>
    %cst_39 = arith.constant 1.000000e+00 : f32
    %36 = vector.broadcast %cst_39 : f32 to vector<8x32xf32>
    %37 = arith.addf %36, %35 : vector<8x32xf32>
    %38 = arith.divf %36, %37 : vector<8x32xf32>
    %39 = arith.index_cast %c0_i32_32 : i32 to index
    %c0_40 = arith.constant 0 : index
    %c0_41 = arith.constant 0 : index
    %40 = vector.load %arg3[%39, %c0_40, %c0_41] : memref<8x8x32xf32, #tpu.memory_space<vmem>>, vector<1x8x32xf32>
    %41 = vector.shape_cast %40 : vector<1x8x32xf32> to vector<8x32xf32>
    %cst_42 = arith.constant dense<0.000000e+00> : vector<8x32xf32>
    %42 = tpu.matmul %17, %5, %cst_42 {dimension_numbers = #tpu.dot_dimension_numbers<[1], [0], [0], [1], [0, 0, 1, 1], [], []>} : vector<8x32xf32>, vector<32x32xf32>, vector<8x32xf32> -> vector<8x32xf32>
    %43 = vector.broadcast %12 : vector<1x32xf32> to vector<8x32xf32>
    %44 = arith.addf %42, %43 : vector<8x32xf32>
    %45 = arith.mulf %28, %44 : vector<8x32xf32>
    %46 = arith.addf %41, %45 : vector<8x32xf32>
    %47 = math.tanh %46 : vector<8x32xf32>
    %cst_43 = arith.constant 1.000000e+00 : f32
    %48 = vector.broadcast %cst_43 : f32 to vector<8x32xf32>
    %49 = arith.subf %48, %38 : vector<8x32xf32>
    %50 = arith.mulf %49, %47 : vector<8x32xf32>
    %51 = arith.mulf %38, %17 : vector<8x32xf32>
    %52 = arith.addf %50, %51 : vector<8x32xf32>
    %cst_44 = arith.constant dense<0.000000e+00> : vector<8x32xf32>
    %53 = tpu.matmul %52, %6, %cst_44 {dimension_numbers = #tpu.dot_dimension_numbers<[1], [0], [0], [1], [0, 0, 1, 1], [], []>} : vector<8x32xf32>, vector<32x32xf32>, vector<8x32xf32> -> vector<8x32xf32>
    %cst_45 = arith.constant dense<0.000000e+00> : vector<8x32xf32>
    %54 = tpu.matmul %18, %9, %cst_45 {dimension_numbers = #tpu.dot_dimension_numbers<[1], [0], [0], [1], [0, 0, 1, 1], [], []>} : vector<8x32xf32>, vector<32x32xf32>, vector<8x32xf32> -> vector<8x32xf32>
    %55 = arith.addf %53, %54 : vector<8x32xf32>
    %56 = vector.broadcast %13 : vector<1x32xf32> to vector<8x32xf32>
    %57 = arith.addf %55, %56 : vector<8x32xf32>
    %58 = arith.negf %57 : vector<8x32xf32>
    %59 = math.exp %58 : vector<8x32xf32>
    %cst_46 = arith.constant 1.000000e+00 : f32
    %60 = vector.broadcast %cst_46 : f32 to vector<8x32xf32>
    %61 = arith.addf %60, %59 : vector<8x32xf32>
    %62 = arith.divf %60, %61 : vector<8x32xf32>
    %cst_47 = arith.constant dense<0.000000e+00> : vector<8x32xf32>
    %63 = tpu.matmul %52, %7, %cst_47 {dimension_numbers = #tpu.dot_dimension_numbers<[1], [0], [0], [1], [0, 0, 1, 1], [], []>} : vector<8x32xf32>, vector<32x32xf32>, vector<8x32xf32> -> vector<8x32xf32>
    %cst_48 = arith.constant dense<0.000000e+00> : vector<8x32xf32>
    %64 = tpu.matmul %18, %10, %cst_48 {dimension_numbers = #tpu.dot_dimension_numbers<[1], [0], [0], [1], [0, 0, 1, 1], [], []>} : vector<8x32xf32>, vector<32x32xf32>, vector<8x32xf32> -> vector<8x32xf32>
    %65 = arith.addf %63, %64 : vector<8x32xf32>
    %66 = vector.broadcast %14 : vector<1x32xf32> to vector<8x32xf32>
    %67 = arith.addf %65, %66 : vector<8x32xf32>
    %68 = arith.negf %67 : vector<8x32xf32>
    %69 = math.exp %68 : vector<8x32xf32>
    %cst_49 = arith.constant 1.000000e+00 : f32
    %70 = vector.broadcast %cst_49 : f32 to vector<8x32xf32>
    %71 = arith.addf %70, %69 : vector<8x32xf32>
    %72 = arith.divf %70, %71 : vector<8x32xf32>
    %cst_50 = arith.constant dense<0.000000e+00> : vector<8x32xf32>
    %73 = tpu.matmul %52, %8, %cst_50 {dimension_numbers = #tpu.dot_dimension_numbers<[1], [0], [0], [1], [0, 0, 1, 1], [], []>} : vector<8x32xf32>, vector<32x32xf32>, vector<8x32xf32> -> vector<8x32xf32>
    %74 = vector.broadcast %15 : vector<1x32xf32> to vector<8x32xf32>
    %75 = arith.addf %73, %74 : vector<8x32xf32>
    %cst_51 = arith.constant dense<0.000000e+00> : vector<8x32xf32>
    %76 = tpu.matmul %18, %11, %cst_51 {dimension_numbers = #tpu.dot_dimension_numbers<[1], [0], [0], [1], [0, 0, 1, 1], [], []>} : vector<8x32xf32>, vector<32x32xf32>, vector<8x32xf32> -> vector<8x32xf32>
    %77 = vector.broadcast %16 : vector<1x32xf32> to vector<8x32xf32>
    %78 = arith.addf %76, %77 : vector<8x32xf32>
    %79 = arith.mulf %62, %78 : vector<8x32xf32>
    %80 = arith.addf %75, %79 : vector<8x32xf32>
    %81 = math.tanh %80 : vector<8x32xf32>
    %cst_52 = arith.constant 1.000000e+00 : f32
    %82 = vector.broadcast %cst_52 : f32 to vector<8x32xf32>
    %83 = arith.subf %82, %72 : vector<8x32xf32>
    %84 = arith.mulf %83, %81 : vector<8x32xf32>
    %85 = arith.mulf %72, %18 : vector<8x32xf32>
    %86 = arith.addf %84, %85 : vector<8x32xf32>
    %87 = arith.index_cast %c0_i32_32 : i32 to index
    %c0_53 = arith.constant 0 : index
    %c0_54 = arith.constant 0 : index
    %88 = vector.load %arg18[%87, %c0_53, %c0_54] : memref<8x8x32xf32, #tpu.memory_space<vmem>>, vector<1x8x32xf32>
    %89 = vector.shape_cast %88 : vector<1x8x32xf32> to vector<8x32xf32>
    %90 = vector.shape_cast %86 : vector<8x32xf32> to vector<1x8x32xf32>
    tpu.vector_store %arg18[%87, %c0_53, %c0_54], %90 {strides = array<i32>} : memref<8x8x32xf32, #tpu.memory_space<vmem>>, vector<1x8x32xf32>,
    %c1_i32 = arith.constant 1 : i32
    %91 = arith.index_cast %c1_i32 : i32 to index
    %c0_55 = arith.constant 0 : index
    %c0_56 = arith.constant 0 : index
    %92 = vector.load %arg1[%91, %c0_55, %c0_56] : memref<8x8x32xf32, #tpu.memory_space<vmem>>, vector<1x8x32xf32>
    %93 = vector.shape_cast %92 : vector<1x8x32xf32> to vector<8x32xf32>
    %cst_57 = arith.constant dense<0.000000e+00> : vector<8x32xf32>
    %94 = tpu.matmul %52, %3, %cst_57 {dimension_numbers = #tpu.dot_dimension_numbers<[1], [0], [0], [1], [0, 0, 1, 1], [], []>} : vector<8x32xf32>, vector<32x32xf32>, vector<8x32xf32> -> vector<8x32xf32>
    %95 = arith.addf %93, %94 : vector<8x32xf32>
    %96 = arith.negf %95 : vector<8x32xf32>
    %97 = math.exp %96 : vector<8x32xf32>
    %cst_58 = arith.constant 1.000000e+00 : f32
    %98 = vector.broadcast %cst_58 : f32 to vector<8x32xf32>
    %99 = arith.addf %98, %97 : vector<8x32xf32>
    %100 = arith.divf %98, %99 : vector<8x32xf32>
    %101 = arith.index_cast %c1_i32 : i32 to index
    %c0_59 = arith.constant 0 : index
    %c0_60 = arith.constant 0 : index
    %102 = vector.load %arg2[%101, %c0_59, %c0_60] : memref<8x8x32xf32, #tpu.memory_space<vmem>>, vector<1x8x32xf32>
    %103 = vector.shape_cast %102 : vector<1x8x32xf32> to vector<8x32xf32>
    %cst_61 = arith.constant dense<0.000000e+00> : vector<8x32xf32>
    %104 = tpu.matmul %52, %4, %cst_61 {dimension_numbers = #tpu.dot_dimension_numbers<[1], [0], [0], [1], [0, 0, 1, 1], [], []>} : vector<8x32xf32>, vector<32x32xf32>, vector<8x32xf32> -> vector<8x32xf32>
    %105 = arith.addf %103, %104 : vector<8x32xf32>
    %106 = arith.negf %105 : vector<8x32xf32>
    %107 = math.exp %106 : vector<8x32xf32>
    %cst_62 = arith.constant 1.000000e+00 : f32
    %108 = vector.broadcast %cst_62 : f32 to vector<8x32xf32>
    %109 = arith.addf %108, %107 : vector<8x32xf32>
    %110 = arith.divf %108, %109 : vector<8x32xf32>
    %111 = arith.index_cast %c1_i32 : i32 to index
    %c0_63 = arith.constant 0 : index
    %c0_64 = arith.constant 0 : index
    %112 = vector.load %arg3[%111, %c0_63, %c0_64] : memref<8x8x32xf32, #tpu.memory_space<vmem>>, vector<1x8x32xf32>
    %113 = vector.shape_cast %112 : vector<1x8x32xf32> to vector<8x32xf32>
    %cst_65 = arith.constant dense<0.000000e+00> : vector<8x32xf32>
    %114 = tpu.matmul %52, %5, %cst_65 {dimension_numbers = #tpu.dot_dimension_numbers<[1], [0], [0], [1], [0, 0, 1, 1], [], []>} : vector<8x32xf32>, vector<32x32xf32>, vector<8x32xf32> -> vector<8x32xf32>
    %115 = vector.broadcast %12 : vector<1x32xf32> to vector<8x32xf32>
    %116 = arith.addf %114, %115 : vector<8x32xf32>
    %117 = arith.mulf %100, %116 : vector<8x32xf32>
    %118 = arith.addf %113, %117 : vector<8x32xf32>
    %119 = math.tanh %118 : vector<8x32xf32>
    %cst_66 = arith.constant 1.000000e+00 : f32
    %120 = vector.broadcast %cst_66 : f32 to vector<8x32xf32>
    %121 = arith.subf %120, %110 : vector<8x32xf32>
    %122 = arith.mulf %121, %119 : vector<8x32xf32>
    %123 = arith.mulf %110, %52 : vector<8x32xf32>
    %124 = arith.addf %122, %123 : vector<8x32xf32>
    %cst_67 = arith.constant dense<0.000000e+00> : vector<8x32xf32>
    %125 = tpu.matmul %124, %6, %cst_67 {dimension_numbers = #tpu.dot_dimension_numbers<[1], [0], [0], [1], [0, 0, 1, 1], [], []>} : vector<8x32xf32>, vector<32x32xf32>, vector<8x32xf32> -> vector<8x32xf32>
    %cst_68 = arith.constant dense<0.000000e+00> : vector<8x32xf32>
    %126 = tpu.matmul %86, %9, %cst_68 {dimension_numbers = #tpu.dot_dimension_numbers<[1], [0], [0], [1], [0, 0, 1, 1], [], []>} : vector<8x32xf32>, vector<32x32xf32>, vector<8x32xf32> -> vector<8x32xf32>
    %127 = arith.addf %125, %126 : vector<8x32xf32>
    %128 = vector.broadcast %13 : vector<1x32xf32> to vector<8x32xf32>
    %129 = arith.addf %127, %128 : vector<8x32xf32>
    %130 = arith.negf %129 : vector<8x32xf32>
    %131 = math.exp %130 : vector<8x32xf32>
    %cst_69 = arith.constant 1.000000e+00 : f32
    %132 = vector.broadcast %cst_69 : f32 to vector<8x32xf32>
    %133 = arith.addf %132, %131 : vector<8x32xf32>
    %134 = arith.divf %132, %133 : vector<8x32xf32>
    %cst_70 = arith.constant dense<0.000000e+00> : vector<8x32xf32>
    %135 = tpu.matmul %124, %7, %cst_70 {dimension_numbers = #tpu.dot_dimension_numbers<[1], [0], [0], [1], [0, 0, 1, 1], [], []>} : vector<8x32xf32>, vector<32x32xf32>, vector<8x32xf32> -> vector<8x32xf32>
    %cst_71 = arith.constant dense<0.000000e+00> : vector<8x32xf32>
    %136 = tpu.matmul %86, %10, %cst_71 {dimension_numbers = #tpu.dot_dimension_numbers<[1], [0], [0], [1], [0, 0, 1, 1], [], []>} : vector<8x32xf32>, vector<32x32xf32>, vector<8x32xf32> -> vector<8x32xf32>
    %137 = arith.addf %135, %136 : vector<8x32xf32>
    %138 = vector.broadcast %14 : vector<1x32xf32> to vector<8x32xf32>
    %139 = arith.addf %137, %138 : vector<8x32xf32>
    %140 = arith.negf %139 : vector<8x32xf32>
    %141 = math.exp %140 : vector<8x32xf32>
    %cst_72 = arith.constant 1.000000e+00 : f32
    %142 = vector.broadcast %cst_72 : f32 to vector<8x32xf32>
    %143 = arith.addf %142, %141 : vector<8x32xf32>
    %144 = arith.divf %142, %143 : vector<8x32xf32>
    %cst_73 = arith.constant dense<0.000000e+00> : vector<8x32xf32>
    %145 = tpu.matmul %124, %8, %cst_73 {dimension_numbers = #tpu.dot_dimension_numbers<[1], [0], [0], [1], [0, 0, 1, 1], [], []>} : vector<8x32xf32>, vector<32x32xf32>, vector<8x32xf32> -> vector<8x32xf32>
    %146 = vector.broadcast %15 : vector<1x32xf32> to vector<8x32xf32>
    %147 = arith.addf %145, %146 : vector<8x32xf32>
    %cst_74 = arith.constant dense<0.000000e+00> : vector<8x32xf32>
    %148 = tpu.matmul %86, %11, %cst_74 {dimension_numbers = #tpu.dot_dimension_numbers<[1], [0], [0], [1], [0, 0, 1, 1], [], []>} : vector<8x32xf32>, vector<32x32xf32>, vector<8x32xf32> -> vector<8x32xf32>
    %149 = vector.broadcast %16 : vector<1x32xf32> to vector<8x32xf32>
    %150 = arith.addf %148, %149 : vector<8x32xf32>
    %151 = arith.mulf %134, %150 : vector<8x32xf32>
    %152 = arith.addf %147, %151 : vector<8x32xf32>
    %153 = math.tanh %152 : vector<8x32xf32>
    %cst_75 = arith.constant 1.000000e+00 : f32
    %154 = vector.broadcast %cst_75 : f32 to vector<8x32xf32>
    %155 = arith.subf %154, %144 : vector<8x32xf32>
    %156 = arith.mulf %155, %153 : vector<8x32xf32>
    %157 = arith.mulf %144, %86 : vector<8x32xf32>
    %158 = arith.addf %156, %157 : vector<8x32xf32>
    %159 = arith.index_cast %c1_i32 : i32 to index
    %c0_76 = arith.constant 0 : index
    %c0_77 = arith.constant 0 : index
    %160 = vector.load %arg18[%159, %c0_76, %c0_77] : memref<8x8x32xf32, #tpu.memory_space<vmem>>, vector<1x8x32xf32>
    %161 = vector.shape_cast %160 : vector<1x8x32xf32> to vector<8x32xf32>
    %162 = vector.shape_cast %158 : vector<8x32xf32> to vector<1x8x32xf32>
    tpu.vector_store %arg18[%159, %c0_76, %c0_77], %162 {strides = array<i32>} : memref<8x8x32xf32, #tpu.memory_space<vmem>>, vector<1x8x32xf32>,
    %c2_i32 = arith.constant 2 : i32
    %163 = arith.index_cast %c2_i32 : i32 to index
    %c0_78 = arith.constant 0 : index
    %c0_79 = arith.constant 0 : index
    %164 = vector.load %arg1[%163, %c0_78, %c0_79] : memref<8x8x32xf32, #tpu.memory_space<vmem>>, vector<1x8x32xf32>
    %165 = vector.shape_cast %164 : vector<1x8x32xf32> to vector<8x32xf32>
    %cst_80 = arith.constant dense<0.000000e+00> : vector<8x32xf32>
    %166 = tpu.matmul %124, %3, %cst_80 {dimension_numbers = #tpu.dot_dimension_numbers<[1], [0], [0], [1], [0, 0, 1, 1], [], []>} : vector<8x32xf32>, vector<32x32xf32>, vector<8x32xf32> -> vector<8x32xf32>
    %167 = arith.addf %165, %166 : vector<8x32xf32>
    %168 = arith.negf %167 : vector<8x32xf32>
    %169 = math.exp %168 : vector<8x32xf32>
    %cst_81 = arith.constant 1.000000e+00 : f32
    %170 = vector.broadcast %cst_81 : f32 to vector<8x32xf32>
    %171 = arith.addf %170, %169 : vector<8x32xf32>
    %172 = arith.divf %170, %171 : vector<8x32xf32>
    %173 = arith.index_cast %c2_i32 : i32 to index
    %c0_82 = arith.constant 0 : index
    %c0_83 = arith.constant 0 : index
    %174 = vector.load %arg2[%173, %c0_82, %c0_83] : memref<8x8x32xf32, #tpu.memory_space<vmem>>, vector<1x8x32xf32>
    %175 = vector.shape_cast %174 : vector<1x8x32xf32> to vector<8x32xf32>
    %cst_84 = arith.constant dense<0.000000e+00> : vector<8x32xf32>
    %176 = tpu.matmul %124, %4, %cst_84 {dimension_numbers = #tpu.dot_dimension_numbers<[1], [0], [0], [1], [0, 0, 1, 1], [], []>} : vector<8x32xf32>, vector<32x32xf32>, vector<8x32xf32> -> vector<8x32xf32>
    %177 = arith.addf %175, %176 : vector<8x32xf32>
    %178 = arith.negf %177 : vector<8x32xf32>
    %179 = math.exp %178 : vector<8x32xf32>
    %cst_85 = arith.constant 1.000000e+00 : f32
    %180 = vector.broadcast %cst_85 : f32 to vector<8x32xf32>
    %181 = arith.addf %180, %179 : vector<8x32xf32>
    %182 = arith.divf %180, %181 : vector<8x32xf32>
    %183 = arith.index_cast %c2_i32 : i32 to index
    %c0_86 = arith.constant 0 : index
    %c0_87 = arith.constant 0 : index
    %184 = vector.load %arg3[%183, %c0_86, %c0_87] : memref<8x8x32xf32, #tpu.memory_space<vmem>>, vector<1x8x32xf32>
    %185 = vector.shape_cast %184 : vector<1x8x32xf32> to vector<8x32xf32>
    %cst_88 = arith.constant dense<0.000000e+00> : vector<8x32xf32>
    %186 = tpu.matmul %124, %5, %cst_88 {dimension_numbers = #tpu.dot_dimension_numbers<[1], [0], [0], [1], [0, 0, 1, 1], [], []>} : vector<8x32xf32>, vector<32x32xf32>, vector<8x32xf32> -> vector<8x32xf32>
    %187 = vector.broadcast %12 : vector<1x32xf32> to vector<8x32xf32>
    %188 = arith.addf %186, %187 : vector<8x32xf32>
    %189 = arith.mulf %172, %188 : vector<8x32xf32>
    %190 = arith.addf %185, %189 : vector<8x32xf32>
    %191 = math.tanh %190 : vector<8x32xf32>
    %cst_89 = arith.constant 1.000000e+00 : f32
    %192 = vector.broadcast %cst_89 : f32 to vector<8x32xf32>
    %193 = arith.subf %192, %182 : vector<8x32xf32>
    %194 = arith.mulf %193, %191 : vector<8x32xf32>
    %195 = arith.mulf %182, %124 : vector<8x32xf32>
    %196 = arith.addf %194, %195 : vector<8x32xf32>
    %cst_90 = arith.constant dense<0.000000e+00> : vector<8x32xf32>
    %197 = tpu.matmul %196, %6, %cst_90 {dimension_numbers = #tpu.dot_dimension_numbers<[1], [0], [0], [1], [0, 0, 1, 1], [], []>} : vector<8x32xf32>, vector<32x32xf32>, vector<8x32xf32> -> vector<8x32xf32>
    %cst_91 = arith.constant dense<0.000000e+00> : vector<8x32xf32>
    %198 = tpu.matmul %158, %9, %cst_91 {dimension_numbers = #tpu.dot_dimension_numbers<[1], [0], [0], [1], [0, 0, 1, 1], [], []>} : vector<8x32xf32>, vector<32x32xf32>, vector<8x32xf32> -> vector<8x32xf32>
    %199 = arith.addf %197, %198 : vector<8x32xf32>
    %200 = vector.broadcast %13 : vector<1x32xf32> to vector<8x32xf32>
    %201 = arith.addf %199, %200 : vector<8x32xf32>
    %202 = arith.negf %201 : vector<8x32xf32>
    %203 = math.exp %202 : vector<8x32xf32>
    %cst_92 = arith.constant 1.000000e+00 : f32
    %204 = vector.broadcast %cst_92 : f32 to vector<8x32xf32>
    %205 = arith.addf %204, %203 : vector<8x32xf32>
    %206 = arith.divf %204, %205 : vector<8x32xf32>
    %cst_93 = arith.constant dense<0.000000e+00> : vector<8x32xf32>
    %207 = tpu.matmul %196, %7, %cst_93 {dimension_numbers = #tpu.dot_dimension_numbers<[1], [0], [0], [1], [0, 0, 1, 1], [], []>} : vector<8x32xf32>, vector<32x32xf32>, vector<8x32xf32> -> vector<8x32xf32>
    %cst_94 = arith.constant dense<0.000000e+00> : vector<8x32xf32>
    %208 = tpu.matmul %158, %10, %cst_94 {dimension_numbers = #tpu.dot_dimension_numbers<[1], [0], [0], [1], [0, 0, 1, 1], [], []>} : vector<8x32xf32>, vector<32x32xf32>, vector<8x32xf32> -> vector<8x32xf32>
    %209 = arith.addf %207, %208 : vector<8x32xf32>
    %210 = vector.broadcast %14 : vector<1x32xf32> to vector<8x32xf32>
    %211 = arith.addf %209, %210 : vector<8x32xf32>
    %212 = arith.negf %211 : vector<8x32xf32>
    %213 = math.exp %212 : vector<8x32xf32>
    %cst_95 = arith.constant 1.000000e+00 : f32
    %214 = vector.broadcast %cst_95 : f32 to vector<8x32xf32>
    %215 = arith.addf %214, %213 : vector<8x32xf32>
    %216 = arith.divf %214, %215 : vector<8x32xf32>
    %cst_96 = arith.constant dense<0.000000e+00> : vector<8x32xf32>
    %217 = tpu.matmul %196, %8, %cst_96 {dimension_numbers = #tpu.dot_dimension_numbers<[1], [0], [0], [1], [0, 0, 1, 1], [], []>} : vector<8x32xf32>, vector<32x32xf32>, vector<8x32xf32> -> vector<8x32xf32>
    %218 = vector.broadcast %15 : vector<1x32xf32> to vector<8x32xf32>
    %219 = arith.addf %217, %218 : vector<8x32xf32>
    %cst_97 = arith.constant dense<0.000000e+00> : vector<8x32xf32>
    %220 = tpu.matmul %158, %11, %cst_97 {dimension_numbers = #tpu.dot_dimension_numbers<[1], [0], [0], [1], [0, 0, 1, 1], [], []>} : vector<8x32xf32>, vector<32x32xf32>, vector<8x32xf32> -> vector<8x32xf32>
    %221 = vector.broadcast %16 : vector<1x32xf32> to vector<8x32xf32>
    %222 = arith.addf %220, %221 : vector<8x32xf32>
    %223 = arith.mulf %206, %222 : vector<8x32xf32>
    %224 = arith.addf %219, %223 : vector<8x32xf32>
    %225 = math.tanh %224 : vector<8x32xf32>
    %cst_98 = arith.constant 1.000000e+00 : f32
    %226 = vector.broadcast %cst_98 : f32 to vector<8x32xf32>
    %227 = arith.subf %226, %216 : vector<8x32xf32>
    %228 = arith.mulf %227, %225 : vector<8x32xf32>
    %229 = arith.mulf %216, %158 : vector<8x32xf32>
    %230 = arith.addf %228, %229 : vector<8x32xf32>
    %231 = arith.index_cast %c2_i32 : i32 to index
    %c0_99 = arith.constant 0 : index
    %c0_100 = arith.constant 0 : index
    %232 = vector.load %arg18[%231, %c0_99, %c0_100] : memref<8x8x32xf32, #tpu.memory_space<vmem>>, vector<1x8x32xf32>
    %233 = vector.shape_cast %232 : vector<1x8x32xf32> to vector<8x32xf32>
    %234 = vector.shape_cast %230 : vector<8x32xf32> to vector<1x8x32xf32>
    tpu.vector_store %arg18[%231, %c0_99, %c0_100], %234 {strides = array<i32>} : memref<8x8x32xf32, #tpu.memory_space<vmem>>, vector<1x8x32xf32>,
    %c3_i32 = arith.constant 3 : i32
    %235 = arith.index_cast %c3_i32 : i32 to index
    %c0_101 = arith.constant 0 : index
    %c0_102 = arith.constant 0 : index
    %236 = vector.load %arg1[%235, %c0_101, %c0_102] : memref<8x8x32xf32, #tpu.memory_space<vmem>>, vector<1x8x32xf32>
    %237 = vector.shape_cast %236 : vector<1x8x32xf32> to vector<8x32xf32>
    %cst_103 = arith.constant dense<0.000000e+00> : vector<8x32xf32>
    %238 = tpu.matmul %196, %3, %cst_103 {dimension_numbers = #tpu.dot_dimension_numbers<[1], [0], [0], [1], [0, 0, 1, 1], [], []>} : vector<8x32xf32>, vector<32x32xf32>, vector<8x32xf32> -> vector<8x32xf32>
    %239 = arith.addf %237, %238 : vector<8x32xf32>
    %240 = arith.negf %239 : vector<8x32xf32>
    %241 = math.exp %240 : vector<8x32xf32>
    %cst_104 = arith.constant 1.000000e+00 : f32
    %242 = vector.broadcast %cst_104 : f32 to vector<8x32xf32>
    %243 = arith.addf %242, %241 : vector<8x32xf32>
    %244 = arith.divf %242, %243 : vector<8x32xf32>
    %245 = arith.index_cast %c3_i32 : i32 to index
    %c0_105 = arith.constant 0 : index
    %c0_106 = arith.constant 0 : index
    %246 = vector.load %arg2[%245, %c0_105, %c0_106] : memref<8x8x32xf32, #tpu.memory_space<vmem>>, vector<1x8x32xf32>
    %247 = vector.shape_cast %246 : vector<1x8x32xf32> to vector<8x32xf32>
    %cst_107 = arith.constant dense<0.000000e+00> : vector<8x32xf32>
    %248 = tpu.matmul %196, %4, %cst_107 {dimension_numbers = #tpu.dot_dimension_numbers<[1], [0], [0], [1], [0, 0, 1, 1], [], []>} : vector<8x32xf32>, vector<32x32xf32>, vector<8x32xf32> -> vector<8x32xf32>
    %249 = arith.addf %247, %248 : vector<8x32xf32>
    %250 = arith.negf %249 : vector<8x32xf32>
    %251 = math.exp %250 : vector<8x32xf32>
    %cst_108 = arith.constant 1.000000e+00 : f32
    %252 = vector.broadcast %cst_108 : f32 to vector<8x32xf32>
    %253 = arith.addf %252, %251 : vector<8x32xf32>
    %254 = arith.divf %252, %253 : vector<8x32xf32>
    %255 = arith.index_cast %c3_i32 : i32 to index
    %c0_109 = arith.constant 0 : index
    %c0_110 = arith.constant 0 : index
    %256 = vector.load %arg3[%255, %c0_109, %c0_110] : memref<8x8x32xf32, #tpu.memory_space<vmem>>, vector<1x8x32xf32>
    %257 = vector.shape_cast %256 : vector<1x8x32xf32> to vector<8x32xf32>
    %cst_111 = arith.constant dense<0.000000e+00> : vector<8x32xf32>
    %258 = tpu.matmul %196, %5, %cst_111 {dimension_numbers = #tpu.dot_dimension_numbers<[1], [0], [0], [1], [0, 0, 1, 1], [], []>} : vector<8x32xf32>, vector<32x32xf32>, vector<8x32xf32> -> vector<8x32xf32>
    %259 = vector.broadcast %12 : vector<1x32xf32> to vector<8x32xf32>
    %260 = arith.addf %258, %259 : vector<8x32xf32>
    %261 = arith.mulf %244, %260 : vector<8x32xf32>
    %262 = arith.addf %257, %261 : vector<8x32xf32>
    %263 = math.tanh %262 : vector<8x32xf32>
    %cst_112 = arith.constant 1.000000e+00 : f32
    %264 = vector.broadcast %cst_112 : f32 to vector<8x32xf32>
    %265 = arith.subf %264, %254 : vector<8x32xf32>
    %266 = arith.mulf %265, %263 : vector<8x32xf32>
    %267 = arith.mulf %254, %196 : vector<8x32xf32>
    %268 = arith.addf %266, %267 : vector<8x32xf32>
    %cst_113 = arith.constant dense<0.000000e+00> : vector<8x32xf32>
    %269 = tpu.matmul %268, %6, %cst_113 {dimension_numbers = #tpu.dot_dimension_numbers<[1], [0], [0], [1], [0, 0, 1, 1], [], []>} : vector<8x32xf32>, vector<32x32xf32>, vector<8x32xf32> -> vector<8x32xf32>
    %cst_114 = arith.constant dense<0.000000e+00> : vector<8x32xf32>
    %270 = tpu.matmul %230, %9, %cst_114 {dimension_numbers = #tpu.dot_dimension_numbers<[1], [0], [0], [1], [0, 0, 1, 1], [], []>} : vector<8x32xf32>, vector<32x32xf32>, vector<8x32xf32> -> vector<8x32xf32>
    %271 = arith.addf %269, %270 : vector<8x32xf32>
    %272 = vector.broadcast %13 : vector<1x32xf32> to vector<8x32xf32>
    %273 = arith.addf %271, %272 : vector<8x32xf32>
    %274 = arith.negf %273 : vector<8x32xf32>
    %275 = math.exp %274 : vector<8x32xf32>
    %cst_115 = arith.constant 1.000000e+00 : f32
    %276 = vector.broadcast %cst_115 : f32 to vector<8x32xf32>
    %277 = arith.addf %276, %275 : vector<8x32xf32>
    %278 = arith.divf %276, %277 : vector<8x32xf32>
    %cst_116 = arith.constant dense<0.000000e+00> : vector<8x32xf32>
    %279 = tpu.matmul %268, %7, %cst_116 {dimension_numbers = #tpu.dot_dimension_numbers<[1], [0], [0], [1], [0, 0, 1, 1], [], []>} : vector<8x32xf32>, vector<32x32xf32>, vector<8x32xf32> -> vector<8x32xf32>
    %cst_117 = arith.constant dense<0.000000e+00> : vector<8x32xf32>
    %280 = tpu.matmul %230, %10, %cst_117 {dimension_numbers = #tpu.dot_dimension_numbers<[1], [0], [0], [1], [0, 0, 1, 1], [], []>} : vector<8x32xf32>, vector<32x32xf32>, vector<8x32xf32> -> vector<8x32xf32>
    %281 = arith.addf %279, %280 : vector<8x32xf32>
    %282 = vector.broadcast %14 : vector<1x32xf32> to vector<8x32xf32>
    %283 = arith.addf %281, %282 : vector<8x32xf32>
    %284 = arith.negf %283 : vector<8x32xf32>
    %285 = math.exp %284 : vector<8x32xf32>
    %cst_118 = arith.constant 1.000000e+00 : f32
    %286 = vector.broadcast %cst_118 : f32 to vector<8x32xf32>
    %287 = arith.addf %286, %285 : vector<8x32xf32>
    %288 = arith.divf %286, %287 : vector<8x32xf32>
    %cst_119 = arith.constant dense<0.000000e+00> : vector<8x32xf32>
    %289 = tpu.matmul %268, %8, %cst_119 {dimension_numbers = #tpu.dot_dimension_numbers<[1], [0], [0], [1], [0, 0, 1, 1], [], []>} : vector<8x32xf32>, vector<32x32xf32>, vector<8x32xf32> -> vector<8x32xf32>
    %290 = vector.broadcast %15 : vector<1x32xf32> to vector<8x32xf32>
    %291 = arith.addf %289, %290 : vector<8x32xf32>
    %cst_120 = arith.constant dense<0.000000e+00> : vector<8x32xf32>
    %292 = tpu.matmul %230, %11, %cst_120 {dimension_numbers = #tpu.dot_dimension_numbers<[1], [0], [0], [1], [0, 0, 1, 1], [], []>} : vector<8x32xf32>, vector<32x32xf32>, vector<8x32xf32> -> vector<8x32xf32>
    %293 = vector.broadcast %16 : vector<1x32xf32> to vector<8x32xf32>
    %294 = arith.addf %292, %293 : vector<8x32xf32>
    %295 = arith.mulf %278, %294 : vector<8x32xf32>
    %296 = arith.addf %291, %295 : vector<8x32xf32>
    %297 = math.tanh %296 : vector<8x32xf32>
    %cst_121 = arith.constant 1.000000e+00 : f32
    %298 = vector.broadcast %cst_121 : f32 to vector<8x32xf32>
    %299 = arith.subf %298, %288 : vector<8x32xf32>
    %300 = arith.mulf %299, %297 : vector<8x32xf32>
    %301 = arith.mulf %288, %230 : vector<8x32xf32>
    %302 = arith.addf %300, %301 : vector<8x32xf32>
    %303 = arith.index_cast %c3_i32 : i32 to index
    %c0_122 = arith.constant 0 : index
    %c0_123 = arith.constant 0 : index
    %304 = vector.load %arg18[%303, %c0_122, %c0_123] : memref<8x8x32xf32, #tpu.memory_space<vmem>>, vector<1x8x32xf32>
    %305 = vector.shape_cast %304 : vector<1x8x32xf32> to vector<8x32xf32>
    %306 = vector.shape_cast %302 : vector<8x32xf32> to vector<1x8x32xf32>
    tpu.vector_store %arg18[%303, %c0_122, %c0_123], %306 {strides = array<i32>} : memref<8x8x32xf32, #tpu.memory_space<vmem>>, vector<1x8x32xf32>,
    %c4_i32 = arith.constant 4 : i32
    %307 = arith.index_cast %c4_i32 : i32 to index
    %c0_124 = arith.constant 0 : index
    %c0_125 = arith.constant 0 : index
    %308 = vector.load %arg1[%307, %c0_124, %c0_125] : memref<8x8x32xf32, #tpu.memory_space<vmem>>, vector<1x8x32xf32>
    %309 = vector.shape_cast %308 : vector<1x8x32xf32> to vector<8x32xf32>
    %cst_126 = arith.constant dense<0.000000e+00> : vector<8x32xf32>
    %310 = tpu.matmul %268, %3, %cst_126 {dimension_numbers = #tpu.dot_dimension_numbers<[1], [0], [0], [1], [0, 0, 1, 1], [], []>} : vector<8x32xf32>, vector<32x32xf32>, vector<8x32xf32> -> vector<8x32xf32>
    %311 = arith.addf %309, %310 : vector<8x32xf32>
    %312 = arith.negf %311 : vector<8x32xf32>
    %313 = math.exp %312 : vector<8x32xf32>
    %cst_127 = arith.constant 1.000000e+00 : f32
    %314 = vector.broadcast %cst_127 : f32 to vector<8x32xf32>
    %315 = arith.addf %314, %313 : vector<8x32xf32>
    %316 = arith.divf %314, %315 : vector<8x32xf32>
    %317 = arith.index_cast %c4_i32 : i32 to index
    %c0_128 = arith.constant 0 : index
    %c0_129 = arith.constant 0 : index
    %318 = vector.load %arg2[%317, %c0_128, %c0_129] : memref<8x8x32xf32, #tpu.memory_space<vmem>>, vector<1x8x32xf32>
    %319 = vector.shape_cast %318 : vector<1x8x32xf32> to vector<8x32xf32>
    %cst_130 = arith.constant dense<0.000000e+00> : vector<8x32xf32>
    %320 = tpu.matmul %268, %4, %cst_130 {dimension_numbers = #tpu.dot_dimension_numbers<[1], [0], [0], [1], [0, 0, 1, 1], [], []>} : vector<8x32xf32>, vector<32x32xf32>, vector<8x32xf32> -> vector<8x32xf32>
    %321 = arith.addf %319, %320 : vector<8x32xf32>
    %322 = arith.negf %321 : vector<8x32xf32>
    %323 = math.exp %322 : vector<8x32xf32>
    %cst_131 = arith.constant 1.000000e+00 : f32
    %324 = vector.broadcast %cst_131 : f32 to vector<8x32xf32>
    %325 = arith.addf %324, %323 : vector<8x32xf32>
    %326 = arith.divf %324, %325 : vector<8x32xf32>
    %327 = arith.index_cast %c4_i32 : i32 to index
    %c0_132 = arith.constant 0 : index
    %c0_133 = arith.constant 0 : index
    %328 = vector.load %arg3[%327, %c0_132, %c0_133] : memref<8x8x32xf32, #tpu.memory_space<vmem>>, vector<1x8x32xf32>
    %329 = vector.shape_cast %328 : vector<1x8x32xf32> to vector<8x32xf32>
    %cst_134 = arith.constant dense<0.000000e+00> : vector<8x32xf32>
    %330 = tpu.matmul %268, %5, %cst_134 {dimension_numbers = #tpu.dot_dimension_numbers<[1], [0], [0], [1], [0, 0, 1, 1], [], []>} : vector<8x32xf32>, vector<32x32xf32>, vector<8x32xf32> -> vector<8x32xf32>
    %331 = vector.broadcast %12 : vector<1x32xf32> to vector<8x32xf32>
    %332 = arith.addf %330, %331 : vector<8x32xf32>
    %333 = arith.mulf %316, %332 : vector<8x32xf32>
    %334 = arith.addf %329, %333 : vector<8x32xf32>
    %335 = math.tanh %334 : vector<8x32xf32>
    %cst_135 = arith.constant 1.000000e+00 : f32
    %336 = vector.broadcast %cst_135 : f32 to vector<8x32xf32>
    %337 = arith.subf %336, %326 : vector<8x32xf32>
    %338 = arith.mulf %337, %335 : vector<8x32xf32>
    %339 = arith.mulf %326, %268 : vector<8x32xf32>
    %340 = arith.addf %338, %339 : vector<8x32xf32>
    %cst_136 = arith.constant dense<0.000000e+00> : vector<8x32xf32>
    %341 = tpu.matmul %340, %6, %cst_136 {dimension_numbers = #tpu.dot_dimension_numbers<[1], [0], [0], [1], [0, 0, 1, 1], [], []>} : vector<8x32xf32>, vector<32x32xf32>, vector<8x32xf32> -> vector<8x32xf32>
    %cst_137 = arith.constant dense<0.000000e+00> : vector<8x32xf32>
    %342 = tpu.matmul %302, %9, %cst_137 {dimension_numbers = #tpu.dot_dimension_numbers<[1], [0], [0], [1], [0, 0, 1, 1], [], []>} : vector<8x32xf32>, vector<32x32xf32>, vector<8x32xf32> -> vector<8x32xf32>
    %343 = arith.addf %341, %342 : vector<8x32xf32>
    %344 = vector.broadcast %13 : vector<1x32xf32> to vector<8x32xf32>
    %345 = arith.addf %343, %344 : vector<8x32xf32>
    %346 = arith.negf %345 : vector<8x32xf32>
    %347 = math.exp %346 : vector<8x32xf32>
    %cst_138 = arith.constant 1.000000e+00 : f32
    %348 = vector.broadcast %cst_138 : f32 to vector<8x32xf32>
    %349 = arith.addf %348, %347 : vector<8x32xf32>
    %350 = arith.divf %348, %349 : vector<8x32xf32>
    %cst_139 = arith.constant dense<0.000000e+00> : vector<8x32xf32>
    %351 = tpu.matmul %340, %7, %cst_139 {dimension_numbers = #tpu.dot_dimension_numbers<[1], [0], [0], [1], [0, 0, 1, 1], [], []>} : vector<8x32xf32>, vector<32x32xf32>, vector<8x32xf32> -> vector<8x32xf32>
    %cst_140 = arith.constant dense<0.000000e+00> : vector<8x32xf32>
    %352 = tpu.matmul %302, %10, %cst_140 {dimension_numbers = #tpu.dot_dimension_numbers<[1], [0], [0], [1], [0, 0, 1, 1], [], []>} : vector<8x32xf32>, vector<32x32xf32>, vector<8x32xf32> -> vector<8x32xf32>
    %353 = arith.addf %351, %352 : vector<8x32xf32>
    %354 = vector.broadcast %14 : vector<1x32xf32> to vector<8x32xf32>
    %355 = arith.addf %353, %354 : vector<8x32xf32>
    %356 = arith.negf %355 : vector<8x32xf32>
    %357 = math.exp %356 : vector<8x32xf32>
    %cst_141 = arith.constant 1.000000e+00 : f32
    %358 = vector.broadcast %cst_141 : f32 to vector<8x32xf32>
    %359 = arith.addf %358, %357 : vector<8x32xf32>
    %360 = arith.divf %358, %359 : vector<8x32xf32>
    %cst_142 = arith.constant dense<0.000000e+00> : vector<8x32xf32>
    %361 = tpu.matmul %340, %8, %cst_142 {dimension_numbers = #tpu.dot_dimension_numbers<[1], [0], [0], [1], [0, 0, 1, 1], [], []>} : vector<8x32xf32>, vector<32x32xf32>, vector<8x32xf32> -> vector<8x32xf32>
    %362 = vector.broadcast %15 : vector<1x32xf32> to vector<8x32xf32>
    %363 = arith.addf %361, %362 : vector<8x32xf32>
    %cst_143 = arith.constant dense<0.000000e+00> : vector<8x32xf32>
    %364 = tpu.matmul %302, %11, %cst_143 {dimension_numbers = #tpu.dot_dimension_numbers<[1], [0], [0], [1], [0, 0, 1, 1], [], []>} : vector<8x32xf32>, vector<32x32xf32>, vector<8x32xf32> -> vector<8x32xf32>
    %365 = vector.broadcast %16 : vector<1x32xf32> to vector<8x32xf32>
    %366 = arith.addf %364, %365 : vector<8x32xf32>
    %367 = arith.mulf %350, %366 : vector<8x32xf32>
    %368 = arith.addf %363, %367 : vector<8x32xf32>
    %369 = math.tanh %368 : vector<8x32xf32>
    %cst_144 = arith.constant 1.000000e+00 : f32
    %370 = vector.broadcast %cst_144 : f32 to vector<8x32xf32>
    %371 = arith.subf %370, %360 : vector<8x32xf32>
    %372 = arith.mulf %371, %369 : vector<8x32xf32>
    %373 = arith.mulf %360, %302 : vector<8x32xf32>
    %374 = arith.addf %372, %373 : vector<8x32xf32>
    %375 = arith.index_cast %c4_i32 : i32 to index
    %c0_145 = arith.constant 0 : index
    %c0_146 = arith.constant 0 : index
    %376 = vector.load %arg18[%375, %c0_145, %c0_146] : memref<8x8x32xf32, #tpu.memory_space<vmem>>, vector<1x8x32xf32>
    %377 = vector.shape_cast %376 : vector<1x8x32xf32> to vector<8x32xf32>
    %378 = vector.shape_cast %374 : vector<8x32xf32> to vector<1x8x32xf32>
    tpu.vector_store %arg18[%375, %c0_145, %c0_146], %378 {strides = array<i32>} : memref<8x8x32xf32, #tpu.memory_space<vmem>>, vector<1x8x32xf32>,
    %c5_i32 = arith.constant 5 : i32
    %379 = arith.index_cast %c5_i32 : i32 to index
    %c0_147 = arith.constant 0 : index
    %c0_148 = arith.constant 0 : index
    %380 = vector.load %arg1[%379, %c0_147, %c0_148] : memref<8x8x32xf32, #tpu.memory_space<vmem>>, vector<1x8x32xf32>
    %381 = vector.shape_cast %380 : vector<1x8x32xf32> to vector<8x32xf32>
    %cst_149 = arith.constant dense<0.000000e+00> : vector<8x32xf32>
    %382 = tpu.matmul %340, %3, %cst_149 {dimension_numbers = #tpu.dot_dimension_numbers<[1], [0], [0], [1], [0, 0, 1, 1], [], []>} : vector<8x32xf32>, vector<32x32xf32>, vector<8x32xf32> -> vector<8x32xf32>
    %383 = arith.addf %381, %382 : vector<8x32xf32>
    %384 = arith.negf %383 : vector<8x32xf32>
    %385 = math.exp %384 : vector<8x32xf32>
    %cst_150 = arith.constant 1.000000e+00 : f32
    %386 = vector.broadcast %cst_150 : f32 to vector<8x32xf32>
    %387 = arith.addf %386, %385 : vector<8x32xf32>
    %388 = arith.divf %386, %387 : vector<8x32xf32>
    %389 = arith.index_cast %c5_i32 : i32 to index
    %c0_151 = arith.constant 0 : index
    %c0_152 = arith.constant 0 : index
    %390 = vector.load %arg2[%389, %c0_151, %c0_152] : memref<8x8x32xf32, #tpu.memory_space<vmem>>, vector<1x8x32xf32>
    %391 = vector.shape_cast %390 : vector<1x8x32xf32> to vector<8x32xf32>
    %cst_153 = arith.constant dense<0.000000e+00> : vector<8x32xf32>
    %392 = tpu.matmul %340, %4, %cst_153 {dimension_numbers = #tpu.dot_dimension_numbers<[1], [0], [0], [1], [0, 0, 1, 1], [], []>} : vector<8x32xf32>, vector<32x32xf32>, vector<8x32xf32> -> vector<8x32xf32>
    %393 = arith.addf %391, %392 : vector<8x32xf32>
    %394 = arith.negf %393 : vector<8x32xf32>
    %395 = math.exp %394 : vector<8x32xf32>
    %cst_154 = arith.constant 1.000000e+00 : f32
    %396 = vector.broadcast %cst_154 : f32 to vector<8x32xf32>
    %397 = arith.addf %396, %395 : vector<8x32xf32>
    %398 = arith.divf %396, %397 : vector<8x32xf32>
    %399 = arith.index_cast %c5_i32 : i32 to index
    %c0_155 = arith.constant 0 : index
    %c0_156 = arith.constant 0 : index
    %400 = vector.load %arg3[%399, %c0_155, %c0_156] : memref<8x8x32xf32, #tpu.memory_space<vmem>>, vector<1x8x32xf32>
    %401 = vector.shape_cast %400 : vector<1x8x32xf32> to vector<8x32xf32>
    %cst_157 = arith.constant dense<0.000000e+00> : vector<8x32xf32>
    %402 = tpu.matmul %340, %5, %cst_157 {dimension_numbers = #tpu.dot_dimension_numbers<[1], [0], [0], [1], [0, 0, 1, 1], [], []>} : vector<8x32xf32>, vector<32x32xf32>, vector<8x32xf32> -> vector<8x32xf32>
    %403 = vector.broadcast %12 : vector<1x32xf32> to vector<8x32xf32>
    %404 = arith.addf %402, %403 : vector<8x32xf32>
    %405 = arith.mulf %388, %404 : vector<8x32xf32>
    %406 = arith.addf %401, %405 : vector<8x32xf32>
    %407 = math.tanh %406 : vector<8x32xf32>
    %cst_158 = arith.constant 1.000000e+00 : f32
    %408 = vector.broadcast %cst_158 : f32 to vector<8x32xf32>
    %409 = arith.subf %408, %398 : vector<8x32xf32>
    %410 = arith.mulf %409, %407 : vector<8x32xf32>
    %411 = arith.mulf %398, %340 : vector<8x32xf32>
    %412 = arith.addf %410, %411 : vector<8x32xf32>
    %cst_159 = arith.constant dense<0.000000e+00> : vector<8x32xf32>
    %413 = tpu.matmul %412, %6, %cst_159 {dimension_numbers = #tpu.dot_dimension_numbers<[1], [0], [0], [1], [0, 0, 1, 1], [], []>} : vector<8x32xf32>, vector<32x32xf32>, vector<8x32xf32> -> vector<8x32xf32>
    %cst_160 = arith.constant dense<0.000000e+00> : vector<8x32xf32>
    %414 = tpu.matmul %374, %9, %cst_160 {dimension_numbers = #tpu.dot_dimension_numbers<[1], [0], [0], [1], [0, 0, 1, 1], [], []>} : vector<8x32xf32>, vector<32x32xf32>, vector<8x32xf32> -> vector<8x32xf32>
    %415 = arith.addf %413, %414 : vector<8x32xf32>
    %416 = vector.broadcast %13 : vector<1x32xf32> to vector<8x32xf32>
    %417 = arith.addf %415, %416 : vector<8x32xf32>
    %418 = arith.negf %417 : vector<8x32xf32>
    %419 = math.exp %418 : vector<8x32xf32>
    %cst_161 = arith.constant 1.000000e+00 : f32
    %420 = vector.broadcast %cst_161 : f32 to vector<8x32xf32>
    %421 = arith.addf %420, %419 : vector<8x32xf32>
    %422 = arith.divf %420, %421 : vector<8x32xf32>
    %cst_162 = arith.constant dense<0.000000e+00> : vector<8x32xf32>
    %423 = tpu.matmul %412, %7, %cst_162 {dimension_numbers = #tpu.dot_dimension_numbers<[1], [0], [0], [1], [0, 0, 1, 1], [], []>} : vector<8x32xf32>, vector<32x32xf32>, vector<8x32xf32> -> vector<8x32xf32>
    %cst_163 = arith.constant dense<0.000000e+00> : vector<8x32xf32>
    %424 = tpu.matmul %374, %10, %cst_163 {dimension_numbers = #tpu.dot_dimension_numbers<[1], [0], [0], [1], [0, 0, 1, 1], [], []>} : vector<8x32xf32>, vector<32x32xf32>, vector<8x32xf32> -> vector<8x32xf32>
    %425 = arith.addf %423, %424 : vector<8x32xf32>
    %426 = vector.broadcast %14 : vector<1x32xf32> to vector<8x32xf32>
    %427 = arith.addf %425, %426 : vector<8x32xf32>
    %428 = arith.negf %427 : vector<8x32xf32>
    %429 = math.exp %428 : vector<8x32xf32>
    %cst_164 = arith.constant 1.000000e+00 : f32
    %430 = vector.broadcast %cst_164 : f32 to vector<8x32xf32>
    %431 = arith.addf %430, %429 : vector<8x32xf32>
    %432 = arith.divf %430, %431 : vector<8x32xf32>
    %cst_165 = arith.constant dense<0.000000e+00> : vector<8x32xf32>
    %433 = tpu.matmul %412, %8, %cst_165 {dimension_numbers = #tpu.dot_dimension_numbers<[1], [0], [0], [1], [0, 0, 1, 1], [], []>} : vector<8x32xf32>, vector<32x32xf32>, vector<8x32xf32> -> vector<8x32xf32>
    %434 = vector.broadcast %15 : vector<1x32xf32> to vector<8x32xf32>
    %435 = arith.addf %433, %434 : vector<8x32xf32>
    %cst_166 = arith.constant dense<0.000000e+00> : vector<8x32xf32>
    %436 = tpu.matmul %374, %11, %cst_166 {dimension_numbers = #tpu.dot_dimension_numbers<[1], [0], [0], [1], [0, 0, 1, 1], [], []>} : vector<8x32xf32>, vector<32x32xf32>, vector<8x32xf32> -> vector<8x32xf32>
    %437 = vector.broadcast %16 : vector<1x32xf32> to vector<8x32xf32>
    %438 = arith.addf %436, %437 : vector<8x32xf32>
    %439 = arith.mulf %422, %438 : vector<8x32xf32>
    %440 = arith.addf %435, %439 : vector<8x32xf32>
    %441 = math.tanh %440 : vector<8x32xf32>
    %cst_167 = arith.constant 1.000000e+00 : f32
    %442 = vector.broadcast %cst_167 : f32 to vector<8x32xf32>
    %443 = arith.subf %442, %432 : vector<8x32xf32>
    %444 = arith.mulf %443, %441 : vector<8x32xf32>
    %445 = arith.mulf %432, %374 : vector<8x32xf32>
    %446 = arith.addf %444, %445 : vector<8x32xf32>
    %447 = arith.index_cast %c5_i32 : i32 to index
    %c0_168 = arith.constant 0 : index
    %c0_169 = arith.constant 0 : index
    %448 = vector.load %arg18[%447, %c0_168, %c0_169] : memref<8x8x32xf32, #tpu.memory_space<vmem>>, vector<1x8x32xf32>
    %449 = vector.shape_cast %448 : vector<1x8x32xf32> to vector<8x32xf32>
    %450 = vector.shape_cast %446 : vector<8x32xf32> to vector<1x8x32xf32>
    tpu.vector_store %arg18[%447, %c0_168, %c0_169], %450 {strides = array<i32>} : memref<8x8x32xf32, #tpu.memory_space<vmem>>, vector<1x8x32xf32>,
    %c6_i32 = arith.constant 6 : i32
    %451 = arith.index_cast %c6_i32 : i32 to index
    %c0_170 = arith.constant 0 : index
    %c0_171 = arith.constant 0 : index
    %452 = vector.load %arg1[%451, %c0_170, %c0_171] : memref<8x8x32xf32, #tpu.memory_space<vmem>>, vector<1x8x32xf32>
    %453 = vector.shape_cast %452 : vector<1x8x32xf32> to vector<8x32xf32>
    %cst_172 = arith.constant dense<0.000000e+00> : vector<8x32xf32>
    %454 = tpu.matmul %412, %3, %cst_172 {dimension_numbers = #tpu.dot_dimension_numbers<[1], [0], [0], [1], [0, 0, 1, 1], [], []>} : vector<8x32xf32>, vector<32x32xf32>, vector<8x32xf32> -> vector<8x32xf32>
    %455 = arith.addf %453, %454 : vector<8x32xf32>
    %456 = arith.negf %455 : vector<8x32xf32>
    %457 = math.exp %456 : vector<8x32xf32>
    %cst_173 = arith.constant 1.000000e+00 : f32
    %458 = vector.broadcast %cst_173 : f32 to vector<8x32xf32>
    %459 = arith.addf %458, %457 : vector<8x32xf32>
    %460 = arith.divf %458, %459 : vector<8x32xf32>
    %461 = arith.index_cast %c6_i32 : i32 to index
    %c0_174 = arith.constant 0 : index
    %c0_175 = arith.constant 0 : index
    %462 = vector.load %arg2[%461, %c0_174, %c0_175] : memref<8x8x32xf32, #tpu.memory_space<vmem>>, vector<1x8x32xf32>
    %463 = vector.shape_cast %462 : vector<1x8x32xf32> to vector<8x32xf32>
    %cst_176 = arith.constant dense<0.000000e+00> : vector<8x32xf32>
    %464 = tpu.matmul %412, %4, %cst_176 {dimension_numbers = #tpu.dot_dimension_numbers<[1], [0], [0], [1], [0, 0, 1, 1], [], []>} : vector<8x32xf32>, vector<32x32xf32>, vector<8x32xf32> -> vector<8x32xf32>
    %465 = arith.addf %463, %464 : vector<8x32xf32>
    %466 = arith.negf %465 : vector<8x32xf32>
    %467 = math.exp %466 : vector<8x32xf32>
    %cst_177 = arith.constant 1.000000e+00 : f32
    %468 = vector.broadcast %cst_177 : f32 to vector<8x32xf32>
    %469 = arith.addf %468, %467 : vector<8x32xf32>
    %470 = arith.divf %468, %469 : vector<8x32xf32>
    %471 = arith.index_cast %c6_i32 : i32 to index
    %c0_178 = arith.constant 0 : index
    %c0_179 = arith.constant 0 : index
    %472 = vector.load %arg3[%471, %c0_178, %c0_179] : memref<8x8x32xf32, #tpu.memory_space<vmem>>, vector<1x8x32xf32>
    %473 = vector.shape_cast %472 : vector<1x8x32xf32> to vector<8x32xf32>
    %cst_180 = arith.constant dense<0.000000e+00> : vector<8x32xf32>
    %474 = tpu.matmul %412, %5, %cst_180 {dimension_numbers = #tpu.dot_dimension_numbers<[1], [0], [0], [1], [0, 0, 1, 1], [], []>} : vector<8x32xf32>, vector<32x32xf32>, vector<8x32xf32> -> vector<8x32xf32>
    %475 = vector.broadcast %12 : vector<1x32xf32> to vector<8x32xf32>
    %476 = arith.addf %474, %475 : vector<8x32xf32>
    %477 = arith.mulf %460, %476 : vector<8x32xf32>
    %478 = arith.addf %473, %477 : vector<8x32xf32>
    %479 = math.tanh %478 : vector<8x32xf32>
    %cst_181 = arith.constant 1.000000e+00 : f32
    %480 = vector.broadcast %cst_181 : f32 to vector<8x32xf32>
    %481 = arith.subf %480, %470 : vector<8x32xf32>
    %482 = arith.mulf %481, %479 : vector<8x32xf32>
    %483 = arith.mulf %470, %412 : vector<8x32xf32>
    %484 = arith.addf %482, %483 : vector<8x32xf32>
    %cst_182 = arith.constant dense<0.000000e+00> : vector<8x32xf32>
    %485 = tpu.matmul %484, %6, %cst_182 {dimension_numbers = #tpu.dot_dimension_numbers<[1], [0], [0], [1], [0, 0, 1, 1], [], []>} : vector<8x32xf32>, vector<32x32xf32>, vector<8x32xf32> -> vector<8x32xf32>
    %cst_183 = arith.constant dense<0.000000e+00> : vector<8x32xf32>
    %486 = tpu.matmul %446, %9, %cst_183 {dimension_numbers = #tpu.dot_dimension_numbers<[1], [0], [0], [1], [0, 0, 1, 1], [], []>} : vector<8x32xf32>, vector<32x32xf32>, vector<8x32xf32> -> vector<8x32xf32>
    %487 = arith.addf %485, %486 : vector<8x32xf32>
    %488 = vector.broadcast %13 : vector<1x32xf32> to vector<8x32xf32>
    %489 = arith.addf %487, %488 : vector<8x32xf32>
    %490 = arith.negf %489 : vector<8x32xf32>
    %491 = math.exp %490 : vector<8x32xf32>
    %cst_184 = arith.constant 1.000000e+00 : f32
    %492 = vector.broadcast %cst_184 : f32 to vector<8x32xf32>
    %493 = arith.addf %492, %491 : vector<8x32xf32>
    %494 = arith.divf %492, %493 : vector<8x32xf32>
    %cst_185 = arith.constant dense<0.000000e+00> : vector<8x32xf32>
    %495 = tpu.matmul %484, %7, %cst_185 {dimension_numbers = #tpu.dot_dimension_numbers<[1], [0], [0], [1], [0, 0, 1, 1], [], []>} : vector<8x32xf32>, vector<32x32xf32>, vector<8x32xf32> -> vector<8x32xf32>
    %cst_186 = arith.constant dense<0.000000e+00> : vector<8x32xf32>
    %496 = tpu.matmul %446, %10, %cst_186 {dimension_numbers = #tpu.dot_dimension_numbers<[1], [0], [0], [1], [0, 0, 1, 1], [], []>} : vector<8x32xf32>, vector<32x32xf32>, vector<8x32xf32> -> vector<8x32xf32>
    %497 = arith.addf %495, %496 : vector<8x32xf32>
    %498 = vector.broadcast %14 : vector<1x32xf32> to vector<8x32xf32>
    %499 = arith.addf %497, %498 : vector<8x32xf32>
    %500 = arith.negf %499 : vector<8x32xf32>
    %501 = math.exp %500 : vector<8x32xf32>
    %cst_187 = arith.constant 1.000000e+00 : f32
    %502 = vector.broadcast %cst_187 : f32 to vector<8x32xf32>
    %503 = arith.addf %502, %501 : vector<8x32xf32>
    %504 = arith.divf %502, %503 : vector<8x32xf32>
    %cst_188 = arith.constant dense<0.000000e+00> : vector<8x32xf32>
    %505 = tpu.matmul %484, %8, %cst_188 {dimension_numbers = #tpu.dot_dimension_numbers<[1], [0], [0], [1], [0, 0, 1, 1], [], []>} : vector<8x32xf32>, vector<32x32xf32>, vector<8x32xf32> -> vector<8x32xf32>
    %506 = vector.broadcast %15 : vector<1x32xf32> to vector<8x32xf32>
    %507 = arith.addf %505, %506 : vector<8x32xf32>
    %cst_189 = arith.constant dense<0.000000e+00> : vector<8x32xf32>
    %508 = tpu.matmul %446, %11, %cst_189 {dimension_numbers = #tpu.dot_dimension_numbers<[1], [0], [0], [1], [0, 0, 1, 1], [], []>} : vector<8x32xf32>, vector<32x32xf32>, vector<8x32xf32> -> vector<8x32xf32>
    %509 = vector.broadcast %16 : vector<1x32xf32> to vector<8x32xf32>
    %510 = arith.addf %508, %509 : vector<8x32xf32>
    %511 = arith.mulf %494, %510 : vector<8x32xf32>
    %512 = arith.addf %507, %511 : vector<8x32xf32>
    %513 = math.tanh %512 : vector<8x32xf32>
    %cst_190 = arith.constant 1.000000e+00 : f32
    %514 = vector.broadcast %cst_190 : f32 to vector<8x32xf32>
    %515 = arith.subf %514, %504 : vector<8x32xf32>
    %516 = arith.mulf %515, %513 : vector<8x32xf32>
    %517 = arith.mulf %504, %446 : vector<8x32xf32>
    %518 = arith.addf %516, %517 : vector<8x32xf32>
    %519 = arith.index_cast %c6_i32 : i32 to index
    %c0_191 = arith.constant 0 : index
    %c0_192 = arith.constant 0 : index
    %520 = vector.load %arg18[%519, %c0_191, %c0_192] : memref<8x8x32xf32, #tpu.memory_space<vmem>>, vector<1x8x32xf32>
    %521 = vector.shape_cast %520 : vector<1x8x32xf32> to vector<8x32xf32>
    %522 = vector.shape_cast %518 : vector<8x32xf32> to vector<1x8x32xf32>
    tpu.vector_store %arg18[%519, %c0_191, %c0_192], %522 {strides = array<i32>} : memref<8x8x32xf32, #tpu.memory_space<vmem>>, vector<1x8x32xf32>,
    %c7_i32 = arith.constant 7 : i32
    %523 = arith.index_cast %c7_i32 : i32 to index
    %c0_193 = arith.constant 0 : index
    %c0_194 = arith.constant 0 : index
    %524 = vector.load %arg1[%523, %c0_193, %c0_194] : memref<8x8x32xf32, #tpu.memory_space<vmem>>, vector<1x8x32xf32>
    %525 = vector.shape_cast %524 : vector<1x8x32xf32> to vector<8x32xf32>
    %cst_195 = arith.constant dense<0.000000e+00> : vector<8x32xf32>
    %526 = tpu.matmul %484, %3, %cst_195 {dimension_numbers = #tpu.dot_dimension_numbers<[1], [0], [0], [1], [0, 0, 1, 1], [], []>} : vector<8x32xf32>, vector<32x32xf32>, vector<8x32xf32> -> vector<8x32xf32>
    %527 = arith.addf %525, %526 : vector<8x32xf32>
    %528 = arith.negf %527 : vector<8x32xf32>
    %529 = math.exp %528 : vector<8x32xf32>
    %cst_196 = arith.constant 1.000000e+00 : f32
    %530 = vector.broadcast %cst_196 : f32 to vector<8x32xf32>
    %531 = arith.addf %530, %529 : vector<8x32xf32>
    %532 = arith.divf %530, %531 : vector<8x32xf32>
    %533 = arith.index_cast %c7_i32 : i32 to index
    %c0_197 = arith.constant 0 : index
    %c0_198 = arith.constant 0 : index
    %534 = vector.load %arg2[%533, %c0_197, %c0_198] : memref<8x8x32xf32, #tpu.memory_space<vmem>>, vector<1x8x32xf32>
    %535 = vector.shape_cast %534 : vector<1x8x32xf32> to vector<8x32xf32>
    %cst_199 = arith.constant dense<0.000000e+00> : vector<8x32xf32>
    %536 = tpu.matmul %484, %4, %cst_199 {dimension_numbers = #tpu.dot_dimension_numbers<[1], [0], [0], [1], [0, 0, 1, 1], [], []>} : vector<8x32xf32>, vector<32x32xf32>, vector<8x32xf32> -> vector<8x32xf32>
    %537 = arith.addf %535, %536 : vector<8x32xf32>
    %538 = arith.negf %537 : vector<8x32xf32>
    %539 = math.exp %538 : vector<8x32xf32>
    %cst_200 = arith.constant 1.000000e+00 : f32
    %540 = vector.broadcast %cst_200 : f32 to vector<8x32xf32>
    %541 = arith.addf %540, %539 : vector<8x32xf32>
    %542 = arith.divf %540, %541 : vector<8x32xf32>
    %543 = arith.index_cast %c7_i32 : i32 to index
    %c0_201 = arith.constant 0 : index
    %c0_202 = arith.constant 0 : index
    %544 = vector.load %arg3[%543, %c0_201, %c0_202] : memref<8x8x32xf32, #tpu.memory_space<vmem>>, vector<1x8x32xf32>
    %545 = vector.shape_cast %544 : vector<1x8x32xf32> to vector<8x32xf32>
    %cst_203 = arith.constant dense<0.000000e+00> : vector<8x32xf32>
    %546 = tpu.matmul %484, %5, %cst_203 {dimension_numbers = #tpu.dot_dimension_numbers<[1], [0], [0], [1], [0, 0, 1, 1], [], []>} : vector<8x32xf32>, vector<32x32xf32>, vector<8x32xf32> -> vector<8x32xf32>
    %547 = vector.broadcast %12 : vector<1x32xf32> to vector<8x32xf32>
    %548 = arith.addf %546, %547 : vector<8x32xf32>
    %549 = arith.mulf %532, %548 : vector<8x32xf32>
    %550 = arith.addf %545, %549 : vector<8x32xf32>
    %551 = math.tanh %550 : vector<8x32xf32>
    %cst_204 = arith.constant 1.000000e+00 : f32
    %552 = vector.broadcast %cst_204 : f32 to vector<8x32xf32>
    %553 = arith.subf %552, %542 : vector<8x32xf32>
    %554 = arith.mulf %553, %551 : vector<8x32xf32>
    %555 = arith.mulf %542, %484 : vector<8x32xf32>
    %556 = arith.addf %554, %555 : vector<8x32xf32>
    %cst_205 = arith.constant dense<0.000000e+00> : vector<8x32xf32>
    %557 = tpu.matmul %556, %6, %cst_205 {dimension_numbers = #tpu.dot_dimension_numbers<[1], [0], [0], [1], [0, 0, 1, 1], [], []>} : vector<8x32xf32>, vector<32x32xf32>, vector<8x32xf32> -> vector<8x32xf32>
    %cst_206 = arith.constant dense<0.000000e+00> : vector<8x32xf32>
    %558 = tpu.matmul %518, %9, %cst_206 {dimension_numbers = #tpu.dot_dimension_numbers<[1], [0], [0], [1], [0, 0, 1, 1], [], []>} : vector<8x32xf32>, vector<32x32xf32>, vector<8x32xf32> -> vector<8x32xf32>
    %559 = arith.addf %557, %558 : vector<8x32xf32>
    %560 = vector.broadcast %13 : vector<1x32xf32> to vector<8x32xf32>
    %561 = arith.addf %559, %560 : vector<8x32xf32>
    %562 = arith.negf %561 : vector<8x32xf32>
    %563 = math.exp %562 : vector<8x32xf32>
    %cst_207 = arith.constant 1.000000e+00 : f32
    %564 = vector.broadcast %cst_207 : f32 to vector<8x32xf32>
    %565 = arith.addf %564, %563 : vector<8x32xf32>
    %566 = arith.divf %564, %565 : vector<8x32xf32>
    %cst_208 = arith.constant dense<0.000000e+00> : vector<8x32xf32>
    %567 = tpu.matmul %556, %7, %cst_208 {dimension_numbers = #tpu.dot_dimension_numbers<[1], [0], [0], [1], [0, 0, 1, 1], [], []>} : vector<8x32xf32>, vector<32x32xf32>, vector<8x32xf32> -> vector<8x32xf32>
    %cst_209 = arith.constant dense<0.000000e+00> : vector<8x32xf32>
    %568 = tpu.matmul %518, %10, %cst_209 {dimension_numbers = #tpu.dot_dimension_numbers<[1], [0], [0], [1], [0, 0, 1, 1], [], []>} : vector<8x32xf32>, vector<32x32xf32>, vector<8x32xf32> -> vector<8x32xf32>
    %569 = arith.addf %567, %568 : vector<8x32xf32>
    %570 = vector.broadcast %14 : vector<1x32xf32> to vector<8x32xf32>
    %571 = arith.addf %569, %570 : vector<8x32xf32>
    %572 = arith.negf %571 : vector<8x32xf32>
    %573 = math.exp %572 : vector<8x32xf32>
    %cst_210 = arith.constant 1.000000e+00 : f32
    %574 = vector.broadcast %cst_210 : f32 to vector<8x32xf32>
    %575 = arith.addf %574, %573 : vector<8x32xf32>
    %576 = arith.divf %574, %575 : vector<8x32xf32>
    %cst_211 = arith.constant dense<0.000000e+00> : vector<8x32xf32>
    %577 = tpu.matmul %556, %8, %cst_211 {dimension_numbers = #tpu.dot_dimension_numbers<[1], [0], [0], [1], [0, 0, 1, 1], [], []>} : vector<8x32xf32>, vector<32x32xf32>, vector<8x32xf32> -> vector<8x32xf32>
    %578 = vector.broadcast %15 : vector<1x32xf32> to vector<8x32xf32>
    %579 = arith.addf %577, %578 : vector<8x32xf32>
    %cst_212 = arith.constant dense<0.000000e+00> : vector<8x32xf32>
    %580 = tpu.matmul %518, %11, %cst_212 {dimension_numbers = #tpu.dot_dimension_numbers<[1], [0], [0], [1], [0, 0, 1, 1], [], []>} : vector<8x32xf32>, vector<32x32xf32>, vector<8x32xf32> -> vector<8x32xf32>
    %581 = vector.broadcast %16 : vector<1x32xf32> to vector<8x32xf32>
    %582 = arith.addf %580, %581 : vector<8x32xf32>
    %583 = arith.mulf %566, %582 : vector<8x32xf32>
    %584 = arith.addf %579, %583 : vector<8x32xf32>
    %585 = math.tanh %584 : vector<8x32xf32>
    %cst_213 = arith.constant 1.000000e+00 : f32
    %586 = vector.broadcast %cst_213 : f32 to vector<8x32xf32>
    %587 = arith.subf %586, %576 : vector<8x32xf32>
    %588 = arith.mulf %587, %585 : vector<8x32xf32>
    %589 = arith.mulf %576, %518 : vector<8x32xf32>
    %590 = arith.addf %588, %589 : vector<8x32xf32>
    %591 = arith.index_cast %c7_i32 : i32 to index
    %c0_214 = arith.constant 0 : index
    %c0_215 = arith.constant 0 : index
    %592 = vector.load %arg18[%591, %c0_214, %c0_215] : memref<8x8x32xf32, #tpu.memory_space<vmem>>, vector<1x8x32xf32>
    %593 = vector.shape_cast %592 : vector<1x8x32xf32> to vector<8x32xf32>
    %594 = vector.shape_cast %590 : vector<8x32xf32> to vector<1x8x32xf32>
    tpu.vector_store %arg18[%591, %c0_214, %c0_215], %594 {strides = array<i32>} : memref<8x8x32xf32, #tpu.memory_space<vmem>>, vector<1x8x32xf32>,
    %c8_i32 = arith.constant 8 : i32
    %c0_216 = arith.constant 0 : index
    %c0_217 = arith.constant 0 : index
    %595 = vector.load %arg19[%c0_216, %c0_217] : memref<8x32xf32, #tpu.memory_space<vmem>>, vector<8x32xf32>
    tpu.vector_store %arg19[%c0_216, %c0_217], %556 {strides = array<i32>} : memref<8x32xf32, #tpu.memory_space<vmem>>, vector<8x32xf32>,
    %c0_218 = arith.constant 0 : index
    %c0_219 = arith.constant 0 : index
    %596 = vector.load %arg20[%c0_218, %c0_219] : memref<8x32xf32, #tpu.memory_space<vmem>>, vector<8x32xf32>
    tpu.vector_store %arg20[%c0_218, %c0_219], %590 {strides = array<i32>} : memref<8x32xf32, #tpu.memory_space<vmem>>, vector<8x32xf32>,
    return
  }
  func.func @transform_0(%arg0: i32) -> (i32, i32, i32) {
    %c0_i32 = arith.constant 0 : i32
    %c0_i32_0 = arith.constant 0 : i32
    %c0_i32_1 = arith.constant 0 : i32
    return %arg0, %c0_i32, %c0_i32_0 : i32, i32, i32
  }
  func.func @transform_1(%arg0: i32) -> (i32, i32, i32) {
    %c0_i32 = arith.constant 0 : i32
    %c0_i32_0 = arith.constant 0 : i32
    %c0_i32_1 = arith.constant 0 : i32
    return %arg0, %c0_i32, %c0_i32_0 : i32, i32, i32
  }
  func.func @transform_2(%arg0: i32) -> (i32, i32, i32) {
    %c0_i32 = arith.constant 0 : i32
    %c0_i32_0 = arith.constant 0 : i32
    %c0_i32_1 = arith.constant 0 : i32
    return %arg0, %c0_i32, %c0_i32_0 : i32, i32, i32
  }
  func.func @transform_3(%arg0: i32) -> (i32, i32) {
    %c0_i32 = arith.constant 0 : i32
    %c0_i32_0 = arith.constant 0 : i32
    %c0_i32_1 = arith.constant 0 : i32
    return %c0_i32, %c0_i32_0 : i32, i32
  }
  func.func @transform_4(%arg0: i32) -> (i32, i32) {
    %c0_i32 = arith.constant 0 : i32
    %c0_i32_0 = arith.constant 0 : i32
    %c0_i32_1 = arith.constant 0 : i32
    return %c0_i32, %c0_i32_0 : i32, i32
  }
  func.func @transform_5(%arg0: i32) -> (i32, i32) {
    %c0_i32 = arith.constant 0 : i32
    %c0_i32_0 = arith.constant 0 : i32
    %c0_i32_1 = arith.constant 0 : i32
    return %c0_i32, %c0_i32_0 : i32, i32
  }
  func.func @transform_6(%arg0: i32) -> (i32, i32) {
    %c0_i32 = arith.constant 0 : i32
    %c0_i32_0 = arith.constant 0 : i32
    %c0_i32_1 = arith.constant 0 : i32
    return %c0_i32, %c0_i32_0 : i32, i32
  }
  func.func @transform_7(%arg0: i32) -> (i32, i32) {
    %c0_i32 = arith.constant 0 : i32
    %c0_i32_0 = arith.constant 0 : i32
    %c0_i32_1 = arith.constant 0 : i32
    return %c0_i32, %c0_i32_0 : i32, i32
  }
  func.func @transform_8(%arg0: i32) -> (i32, i32) {
    %c0_i32 = arith.constant 0 : i32
    %c0_i32_0 = arith.constant 0 : i32
    %c0_i32_1 = arith.constant 0 : i32
    return %c0_i32, %c0_i32_0 : i32, i32
  }
  func.func @transform_9(%arg0: i32) -> (i32, i32) {
    %c0_i32 = arith.constant 0 : i32
    %c0_i32_0 = arith.constant 0 : i32
    %c0_i32_1 = arith.constant 0 : i32
    return %c0_i32, %c0_i32_0 : i32, i32
  }
  func.func @transform_10(%arg0: i32) -> (i32, i32) {
    %c0_i32 = arith.constant 0 : i32
    %c0_i32_0 = arith.constant 0 : i32
    %c0_i32_1 = arith.constant 0 : i32
    return %c0_i32, %c0_i32_0 : i32, i32
  }
  func.func @transform_11(%arg0: i32) -> (i32, i32) {
    %c0_i32 = arith.constant 0 : i32
    %c0_i32_0 = arith.constant 0 : i32
    %c0_i32_1 = arith.constant 0 : i32
    return %c0_i32, %c0_i32_0 : i32, i32
  }
  func.func @transform_12(%arg0: i32) -> (i32, i32) {
    %c0_i32 = arith.constant 0 : i32
    %c0_i32_0 = arith.constant 0 : i32
    %c0_i32_1 = arith.constant 0 : i32
    return %c0_i32, %c0_i32_0 : i32, i32
  }
  func.func @transform_13(%arg0: i32) -> (i32, i32) {
    %c0_i32 = arith.constant 0 : i32
    %c0_i32_0 = arith.constant 0 : i32
    %c0_i32_1 = arith.constant 0 : i32
    return %c0_i32, %c0_i32_0 : i32, i32
  }
  func.func @transform_14(%arg0: i32) -> (i32, i32) {
    %c0_i32 = arith.constant 0 : i32
    %c0_i32_0 = arith.constant 0 : i32
    %c0_i32_1 = arith.constant 0 : i32
    return %c0_i32, %c0_i32_0 : i32, i32
  }
  func.func @transform_15(%arg0: i32) -> (i32, i32) {
    %c0_i32 = arith.constant 0 : i32
    %c0_i32_0 = arith.constant 0 : i32
    %c0_i32_1 = arith.constant 0 : i32
    return %c0_i32, %c0_i32_0 : i32, i32
  }
  func.func @transform_16(%arg0: i32) -> (i32, i32) {
    %c0_i32 = arith.constant 0 : i32
    %c0_i32_0 = arith.constant 0 : i32
    %c0_i32_1 = arith.constant 0 : i32
    return %c0_i32, %c0_i32_0 : i32, i32
  }
  func.func @transform_17(%arg0: i32) -> (i32, i32, i32) {
    %c0_i32 = arith.constant 0 : i32
    %c0_i32_0 = arith.constant 0 : i32
    %c0_i32_1 = arith.constant 0 : i32
    return %arg0, %c0_i32, %c0_i32_0 : i32, i32, i32
  }
}

</mosaic_0001>

<bundles_post_ra>
// kernel: vgru_forward.1
= control target key start
LH: loop header
LB: loop body
LE: loop exit
PB: predicated region body
PF: predicated region fallthrough
CT: control target
= control target key end

     0   :  { %vm60_vm0 = vcmask 261120   ;;  %v2770_v3 = vmov 0.0   ;;  %s4037_s3 = inlined_call_operand.vmem [shape: f32[32,32], index: 3, kind: input, shape index: {}]   ;;  %s4038_s4 = inlined_call_operand.vmem [shape: f32[32,32], index: 4, kind: input, shape index: {}]   ;;  %s4039_s5 = inlined_call_operand.vmem [shape: f32[32,32], index: 5, kind: input, shape index: {}]   ;;  %s4040_s12 = inlined_call_operand.vmem [shape: f32[1,32], index: 12, kind: input, shape index: {}]   ;;  %s4041_s0 = inlined_call_operand.vmem [shape: f32[8,8,32], index: 0, kind: input, shape index: {}]   ;;  %s4042_s1 = inlined_call_operand.vmem [shape: f32[8,8,32], index: 1, kind: input, shape index: {}]   ;;  %s4043_s9 = inlined_call_operand.vmem [shape: f32[32,32], index: 9, kind: input, shape index: {}]   ;;  %s4044_s10 = inlined_call_operand.vmem [shape: f32[32,32], index: 10, kind: input, shape index: {}]   ;;  %s4045_s6 = inlined_call_operand.vmem [shape: f32[32,32], index: 6, kind: input, shape index: {}]   ;;  %s4046_s7 = inlined_call_operand.vmem [shape: f32[32,32], index: 7, kind: input, shape index: {}]   ;;  %s4047_s8 = inlined_call_operand.vmem [shape: f32[32,32], index: 8, kind: input, shape index: {}]   ;;  %s4048_s13 = inlined_call_operand.vmem [shape: f32[1,32], index: 13, kind: input, shape index: {}]   ;;  %s4049_s11 = inlined_call_operand.vmem [shape: f32[32,32], index: 11, kind: input, shape index: {}]   ;;  %s4050_s2 = inlined_call_operand.vmem [shape: f32[8,8,32], index: 2, kind: input, shape index: {}]   ;;  %s4051_s15 = inlined_call_operand.vmem [shape: f32[1,32], index: 15, kind: input, shape index: {}]   ;;  %s4052_s14 = inlined_call_operand.vmem [shape: f32[1,32], index: 14, kind: input, shape index: {}]   ;;  %s4053_s16 = inlined_call_operand.vmem [shape: f32[1,32], index: 16, kind: input, shape index: {}]   ;;  %s4054_s17 = inlined_call_operand.vmem [shape: f32[8,8,32], index: 17, kind: output, shape index: {}]  }
   0x1   :  { %4082 = sst [smem:[#allocation10_spill]] %s4037_s3  ;;  %61 = vst.msk [vmem:[#allocation2] sm:$0xff] %vm60_vm0, %v2770_v3  ;;  %v2898_v7 = vld [vmem:[%s4039_s5 + $0x18] sm:$0xff]  ;;  %v2905_v8 = vld [vmem:[%s4039_s5 + $0x10] sm:$0xff]  ;;  %v2924_v11 = vld [vmem:[%s4039_s5 + $0x8] sm:$0xff] }
   0x2   :  { %4083 = sst [smem:[#allocation11_spill]] %s4038_s4  ;;  %62 = vst.msk [vmem:[#allocation3] sm:$0xff] %vm60_vm0, %v2770_v3  ;;  %208 = vmatpush.msra.mxu2 %v2898_v7  ;;  %v2937_v13 = vld [vmem:[%s4039_s5] sm:$0xff]  ;;  %v2952_v16 = vld [vmem:[%s4043_s9 + $0x18] sm:$0xff]  ;;  %v2964_v22 = vld [vmem:[%s4043_s9 + $0x10] sm:$0xff] }
   0x3   :  { %s4084_s26 = sld [smem:[#allocation10_spill]]  ;;  %v106_v14 = vld [vmem:[%s4041_s0] sm:$0xff]  ;;  %v2957_v17 = vld [vmem:[%s4044_s10 + $0x18] sm:$0xff]  ;;  %238 = vmatpush.msra.mxu3 %v2952_v16  ;;  %v2969_v23 = vld [vmem:[%s4044_s10 + $0x10] sm:$0xff] }
   0x4   :  { %s4085_s29 = sld [smem:[#allocation11_spill]]  ;;  %209 = vmatpush.msra.mxu2 %v2905_v8  ;;  %v151_v15 = vld [vmem:[%s4042_s1] sm:$0xff]  ;;  %v2976_v26 = vld [vmem:[%s4043_s9 + $0x8] sm:$0xff]  ;;  %v3004_v31 = vld [vmem:[%s4045_s6 + $0x18] sm:$0xff] }
   0x5   :  { %239 = vmatpush.msra.mxu3 %v2964_v22  ;;  %v2981_v27 = vld [vmem:[%s4044_s10 + $0x8] sm:$0xff]  ;;  %v2988_v28 = vld [vmem:[%s4043_s9] sm:$0xff]  ;;  %v3011_v32 = vld [vmem:[%s4046_s7 + $0x18] sm:$0xff] }
   0x6   :  { %210 = vmatpush.msra.mxu2 %v2924_v11  ;;  %v2993_v29 = vld [vmem:[%s4044_s10] sm:$0xff]  ;;  %v3016_v33 = vld [vmem:[%s4047_s8 + $0x18] sm:$0xff]  ;;  %v3025_v34 = vld [vmem:[%s4045_s6 + $0x10] sm:$0xff] }
   0x7   :  { %240 = vmatpush.msra.mxu3 %v2976_v26  ;;  %v3030_v35 = vld [vmem:[%s4046_s7 + $0x10] sm:$0xff]  ;;  %v3044_v38 = vld [vmem:[%s4045_s6 + $0x8] sm:$0xff]  ;;  %v3061_v43 = vld [vmem:[%s4045_s6] sm:$0xff] }
   0x8   :  { %v2928_v12 = vld [vmem:[#allocation2] sm:$0xff]  ;;  %211 = vmatpush.msra.mxu2 %v2937_v13  ;;  %v3035_v36 = vld [vmem:[%s4047_s8 + $0x10] sm:$0xff]  ;;  %v3049_v39 = vld [vmem:[%s4046_s7 + $0x8] sm:$0xff] }
   0x9   :  { %v2864_v0 = vld [vmem:[%s4084_s26 + $0x18] sm:$0xff]  ;;  %v2874_v2 = vld [vmem:[%s4084_s26 + $0x10] sm:$0xff]  ;;  %v2888_v5 = vld [vmem:[%s4084_s26 + $0x8] sm:$0xff]  ;;  %2435 = vmatmul.msk.f32.vlgmr.msra.gmra.mxu2 %vm60_vm0, %v2928_v12  ;;  %241 = vmatpush.msra.mxu3 %v2988_v28 }
   0xa   :  { %v2869_v1 = vld [vmem:[%s4085_s29 + $0x18] sm:$0xff]  ;;  %123 = vmatpush.msra.mxu0 %v2864_v0  ;;  %v2882_v4 = vld [vmem:[%s4085_s29 + $0x10] sm:$0xff]  ;;  %v2893_v6 = vld [vmem:[%s4085_s29 + $0x8] sm:$0xff]  ;;  %324 = vmatpush.msrb.mxu2 %v3011_v32 }
   0xb   :  { %164 = vmatpush.msra.mxu1 %v2869_v1  ;;  %v2910_v9 = vld [vmem:[%s4084_s26] sm:$0xff]  ;;  %v2997_v30 = vld [vmem:[#allocation3] sm:$0xff]  ;;  %370 = vmatpush.msrb.mxu3 %v3016_v33  ;;  %v3102_v53 = vld [vmem:[%s4049_s11 + $0x18] sm:$0xff] }
   0xc   :  { %124 = vmatpush.msra.mxu0 %v2874_v2  ;;  %v2915_v10 = vld [vmem:[%s4085_s29] sm:$0xff]  ;;  %2436 = vmatmul.msk.f32.vlgmr.msra.gmra.mxu3 %vm60_vm0, %v2997_v30  ;;  %v3054_v40 = vld [vmem:[%s4047_s8 + $0x8] sm:$0xff]  ;;  %v3107_v54 = vld [vmem:[%s4049_s11 + $0x10] sm:$0xff] }
   0xd   :  { %165 = vmatpush.msra.mxu1 %v2882_v4  ;;  %4086 = vst [vmem:[#allocation4_spill] sm:$0xff] %v2915_v10  ;;  %325 = vmatpush.msrb.mxu2 %v3030_v35  ;;  %v3066_v44 = vld [vmem:[%s4046_s7] sm:$0xff]  ;;  %v3114_v60 = vld [vmem:[%s4049_s11 + $0x8] sm:$0xff] }
   0xe   :  { %125 = vmatpush.msra.mxu0 %v2888_v5  ;;  %371 = vmatpush.msrb.mxu3 %v3035_v36  ;;  %v3071_v45 = vld [vmem:[%s4047_s8] sm:$0xff] }
   0xf   :  { %166 = vmatpush.msra.mxu1 %v2893_v6  ;;  %326 = vmatpush.msrb.mxu2 %v3049_v39  ;;  %v3097_v52 = vld [vmem:[%s4040_s12] ss:$0 sm:$0xff] }
  0x10   :  { %126 = vmatpush.msra.mxu0 %v2910_v9  ;;  %372 = vmatpush.msrb.mxu3 %v3054_v40  ;;  %4087 = vst [vmem:[#allocation5_spill] sm:$0xff] %v3097_v52  ;;  %v3121_v3 = vld [vmem:[%s4049_s11] sm:$0xff] }
  0x11   :  { %167 = vmatpush.msra.mxu1 %v2915_v10  ;;  %2431 = vmatmul.msk.f32.vlgmr.msra.gmra.mxu0 %vm60_vm0, %v2928_v12  ;;  %4088 = vst [vmem:[#allocation6_spill] sm:$0xff] %v3121_v3 }
  0x12   :  { %2433 = vmatmul.msk.f32.vlgmr.msra.gmra.mxu1 %vm60_vm0, %v2928_v12  ;;  %261 = vmatpush.msrb.mxu0 %v3004_v31 }
  0x13   :  { %304 = vmatpush.msrb.mxu1 %v2957_v17  ;;  %327 = vmatpush.msrb.mxu2 %v3066_v44 }
  0x14   :  { %262 = vmatpush.msrb.mxu0 %v3025_v34  ;;  %373 = vmatpush.msrb.mxu3 %v3071_v45 }
  0x15   :  { %305 = vmatpush.msrb.mxu1 %v2969_v23  ;;  %465 = vmatpush.msra.mxu2 %v2869_v1 }
  0x16   :  { %263 = vmatpush.msrb.mxu0 %v3044_v38  ;;  %507 = vmatpush.msra.mxu3 %v2898_v7 }
  0x17   :  { %306 = vmatpush.msrb.mxu1 %v2981_v27  ;;  %466 = vmatpush.msra.mxu2 %v2882_v4 }
  0x18   :  { %264 = vmatpush.msrb.mxu0 %v3061_v43  ;;  %508 = vmatpush.msra.mxu3 %v2905_v8 }
  0x19   :  { %307 = vmatpush.msrb.mxu1 %v2993_v29  ;;  %467 = vmatpush.msra.mxu2 %v2893_v6 }
  0x1a   :  { %2439 = vmatmul.msk.f32.vlgmr.msrb.gmra.mxu1 %vm60_vm0, %v2997_v30  ;;  %509 = vmatpush.msra.mxu3 %v2924_v11 }
  0x1b   :  { %423 = vmatpush.msra.mxu1 %v2864_v0  ;;  %468 = vmatpush.msra.mxu2 %v2915_v10 }
  0x1c   :  { %510 = vmatpush.msra.mxu3 %v2937_v13  ;;  %393 = vmatpush.msra.mxu0 %v3102_v53 }
  0x1d   :  { %424 = vmatpush.msra.mxu1 %v2874_v2 }
  0x1e   :  { %394 = vmatpush.msra.mxu0 %v3107_v54 }
  0x1f   :  { %425 = vmatpush.msra.mxu1 %v2888_v5 }
  0x20   :  { %395 = vmatpush.msra.mxu0 %v3114_v60 }
  0x21   :  { %426 = vmatpush.msra.mxu1 %v2910_v9 }
  0x22   :  { %396 = vmatpush.msra.mxu0 %v3121_v3 }
  0x23   :  { %560 = vmatpush.msrb.mxu1 %v3004_v31 }
  0x25   :  { %561 = vmatpush.msrb.mxu1 %v3025_v34 }
  0x27   :  { %562 = vmatpush.msrb.mxu1 %v3044_v38 }
  0x29   :  { %563 = vmatpush.msrb.mxu1 %v3061_v43 }
  0x8c   :  { %v213_v57 = vpop.f32.mrf.mxu2 }
  0x8d   :  { %v214_v63 = vadd.f32 %v3097_v52, %v213_v57 }
  0x8e   :  { %v128_v18 = vpop.f32.mrf.mxu0 }
  0x8f   :  { %v169_v19 = vpop.f32.mrf.mxu1  ;;  %v131_v20 = vadd.f32 %v128_v18, %v106_v14  ;;  %v243_v57 = vpop.f32.mrf.mxu3 }
  0x90   :  { %v172_v21 = vadd.f32 %v169_v19, %v151_v15 }
  0x91   :  { %v2432_v24 = vmul.f32 -1.442695, %v131_v20  ;;  %v192_v20 = vld [vmem:[%s4050_s2] sm:$0xff] }
  0x92   :  { %v2434_v25 = vmul.f32 -1.442695, %v172_v21 }
  0x93   :  { %2569 = vpow2.f32 %v2432_v24 }
  0x94   :  { %2571 = vpow2.f32 %v2434_v25 }
  0x99   :  { %v2570_v37 = vpop.eup %2569 }
  0x9a   :  { %v2572_v41 = vpop.eup %2571  ;;  %v135_v42 = vadd.f32 1.0, %v2570_v37 }
  0x9b   :  { %v3073_v46 = vadd.f32 1.0, %v2572_v41 }
  0x9c   :  { %2573 = vrcp.f32 %v135_v42  ;;  %v147_v56 = vand.u32 2147483648, %v135_v42  ;;  %v145_v59 = vand.u32 2147483647, %v135_v42  ;;  %vm141_vm2 = vweird.f32 %v135_v42 }
  0x9d   :  { %2575 = vrcp.f32 %v3073_v46  ;;  %vm182_vm5 = vweird.f32 %v3073_v46  ;;  %v188_v21 = vand.u32 2147483648, %v3073_v46  ;;  %v186_v25 = vand.u32 2147483647, %v3073_v46 }
  0x9e   :  { %v148_v14 = vor.u32 1.1754944e-38, %v147_v56  ;;  %vm146_vm4 = vcmp.eq.f32.partialorder %v145_v59, 8.507059e+37 }
  0x9f   :  { %vm187_vm8 = vcmp.eq.f32.partialorder %v186_v25, 8.507059e+37 }
  0xa2   :  { %v2574_v47 = vpop.eup %2573 }
  0xa3   :  { %v2576_v48 = vpop.eup %2575  ;;  %v137_v49 = vmul.f32 %v2574_v47, %v135_v42  ;;  %vm142_vm1 = vweird.f32 %v2574_v47  ;;  %v189_v42 = vor.u32 1.1754944e-38, %v188_v21 }
  0xa4   :  { %v178_v50 = vmul.f32 %v2576_v48, %v3073_v46  ;;  %vm143_vm3 = vmor %vm141_vm2, %vm142_vm1  ;;  %vm183_vm6 = vweird.f32 %v2576_v48  ;;  %v3179_v46 = vld [vmem:[%s4048_s13] ss:$0 sm:$0xff] }
  0xa5   :  { %v138_v51 = vsub.f32 1.0, %v137_v49  ;;  %vm184_vm7 = vmor %vm182_vm5, %vm183_vm6  ;;  %4089 = vst [vmem:[#allocation7_spill] sm:$0xff] %v3179_v46 }
  0xa6   :  { %v179_v55 = vsub.f32 1.0, %v178_v50 }
  0xa7   :  { %v139_v58 = vmul.f32 %v2574_v47, %v138_v51 }
  0xa8   :  { %v180_v61 = vmul.f32 %v2576_v48, %v179_v55 }
  0xa9   :  { %v140_v62 = vadd.f32 %v2574_v47, %v139_v58 }
  0xaa   :  { %v181_v18 = vadd.f32 %v2576_v48, %v180_v61 }
  0xab   :  { %v144_v15 = vsel %vm143_vm3, %v2574_v47, %v140_v62 }
  0xac   :  { %v149_v19 = vsel %vm146_vm4, %v148_v14, %v144_v15  ;;  %v185_v41 = vsel %vm184_vm7, %v2576_v48, %v181_v18  ;;  %v2444_v48 = vld [vmem:[%s4041_s0 + $0x8] sm:$0xff]  ;;  %v3188_v18 = vld [vmem:[%s4052_s14] ss:$0 sm:$0xff] }
  0xad   :  { %v216_v24 = vmul.f32 %v214_v63, %v149_v19  ;;  %v190_v47 = vsel %vm187_vm8, %v189_v42, %v185_v41  ;;  %4090 = vst [vmem:[#allocation8_spill] sm:$0xff] %v3188_v18 }
  0xae   :  { %v219_v49 = vsub.f32 1.0, %v190_v47  ;;  %v221_v55 = vmul.f32 %v190_v47, %v2928_v12  ;;  %v309_v12 = vpop.f32.mrf.mxu1 }
  0xaf   :  { %v217_v37 = vadd.f32 %v216_v24, %v192_v20 }
  0xb1   :  { %2577 = vtanh.f32 %v217_v37  ;;  %v2447_v37 = vld [vmem:[%s4042_s1 + $0x8] sm:$0xff] }
  0xb7   :  { %v2578_v50 = vpop.eup %2577 }
  0xb8   :  { %v220_v51 = vmul.f32 %v2578_v50, %v219_v49 }
  0xba   :  { %v3132_v56 = vadd.f32 %v221_v55, %v220_v51 }
  0xbc   :  { %2437 = vmatmul.msk.f32.vlgmr.msrb.gmra.mxu0 %vm60_vm0, %v3132_v56  ;;  %2440 = vmatmul.msk.f32.vlgmr.msrb.gmra.mxu2 %vm60_vm0, %v3132_v56 }
  0xbd   :  { %2442 = vmatmul.msk.f32.vlgmr.msrb.gmra.mxu3 %vm60_vm0, %v3132_v56  ;;  %2445 = vmatmul.msk.f32.vlgmr.msra.gmra.mxu1 %vm60_vm0, %v3132_v56 }
  0xbe   :  { %600 = vmatpush.msrb.mxu2 %v2957_v17  ;;  %537 = vmatpush.msrb.mxu0 %v2952_v16 }
  0xbf   :  { %620 = vmatpush.msrb.mxu3 %v3011_v32  ;;  %680 = vmatpush.msra.mxu1 %v3102_v53 }
  0xc0   :  { %601 = vmatpush.msrb.mxu2 %v2969_v23  ;;  %538 = vmatpush.msrb.mxu0 %v2964_v22 }
  0xc1   :  { %621 = vmatpush.msrb.mxu3 %v3030_v35  ;;  %681 = vmatpush.msra.mxu1 %v3107_v54 }
  0xc2   :  { %602 = vmatpush.msrb.mxu2 %v2981_v27  ;;  %539 = vmatpush.msrb.mxu0 %v2976_v26 }
  0xc3   :  { %622 = vmatpush.msrb.mxu3 %v3049_v39  ;;  %682 = vmatpush.msra.mxu1 %v3114_v60 }
  0xc4   :  { %2448 = vmatmul.msk.f32.vlgmr.msra.gmra.mxu2 %vm60_vm0, %v3132_v56  ;;  %2443 = vmatmul.msk.f32.vlgmr.msra.gmra.mxu0 %vm60_vm0, %v2997_v30 }
  0xc5   :  { %2451 = vmatmul.msk.f32.vlgmr.msra.gmra.mxu3 %vm60_vm0, %v3132_v56  ;;  %603 = vmatpush.msrb.mxu2 %v2993_v29 }
  0xc6   :  { %540 = vmatpush.msrb.mxu0 %v2988_v28  ;;  %623 = vmatpush.msrb.mxu3 %v3066_v44 }
  0xc7   :  { %711 = vmatpush.msra.mxu2 %v2864_v0  ;;  %683 = vmatpush.msra.mxu1 %v3121_v3 }
  0xc8   :  { %660 = vmatpush.msra.mxu0 %v3016_v33  ;;  %753 = vmatpush.msra.mxu3 %v2869_v1 }
  0xc9   :  { %712 = vmatpush.msra.mxu2 %v2874_v2 }
  0xca   :  { %661 = vmatpush.msra.mxu0 %v3035_v36  ;;  %754 = vmatpush.msra.mxu3 %v2882_v4 }
  0xcb   :  { %713 = vmatpush.msra.mxu2 %v2888_v5 }
  0xcc   :  { %662 = vmatpush.msra.mxu0 %v3054_v40  ;;  %755 = vmatpush.msra.mxu3 %v2893_v6 }
  0xcd   :  { %714 = vmatpush.msra.mxu2 %v2910_v9 }
  0xce   :  { %663 = vmatpush.msra.mxu0 %v3071_v45  ;;  %756 = vmatpush.msra.mxu3 %v2915_v10 }
 0x139   :  { %v266_v58 = vpop.f32.mrf.mxu0 }
 0x13a   :  { %v267_v59 = vadd.f32 %v266_v58, %v243_v57  ;;  %v428_v61 = vpop.f32.mrf.mxu1 }
 0x13b   :  { %v431_v62 = vadd.f32 %v2444_v48, %v428_v61 }
 0x13c   :  { %v272_v63 = vadd.f32 %v3179_v46, %v267_v59 }
 0x13d   :  { %v2446_v14 = vmul.f32 -1.442695, %v431_v62 }
 0x13e   :  { %v2438_v15 = vmul.f32 -1.442695, %v272_v63  ;;  %v3200_v63 = vld [vmem:[%s4053_s16] ss:$0 sm:$0xff] }
 0x13f   :  { %2579 = vpow2.f32 %v2446_v14  ;;  %v329_v19 = vpop.f32.mrf.mxu2  ;;  %4091 = vst [vmem:[#allocation9_spill] sm:$0xff] %v3200_v63 }
 0x140   :  { %2581 = vpow2.f32 %v2438_v15  ;;  %v330_v20 = vadd.f32 %v329_v19, %v309_v12  ;;  %v375_v51 = vpop.f32.mrf.mxu3 }
 0x142   :  { %v335_v21 = vadd.f32 %v3188_v18, %v330_v20 }
 0x144   :  { %v2441_v24 = vmul.f32 -1.442695, %v335_v21  ;;  %v398_v21 = vpop.f32.mrf.mxu0 }
 0x145   :  { %v2580_v25 = vpop.eup %2579 }
 0x146   :  { %v2582_v41 = vpop.eup %2581  ;;  %v435_v42 = vadd.f32 1.0, %v2580_v25  ;;  %2583 = vpow2.f32 %v2441_v24 }
 0x147   :  { %v276_v47 = vadd.f32 1.0, %v2582_v41  ;;  %v470_v49 = vpop.f32.mrf.mxu2 }
 0x148   :  { %2585 = vrcp.f32 %v435_v42  ;;  %v473_v50 = vadd.f32 %v2447_v37, %v470_v49  ;;  %v445_v15 = vand.u32 2147483647, %v435_v42  ;;  %v447_v19 = vand.u32 2147483648, %v435_v42  ;;  %v512_v41 = vpop.f32.mrf.mxu3 }
 0x149   :  { %2587 = vrcp.f32 %v276_v47  ;;  %v288_v37 = vand.u32 2147483648, %v276_v47  ;;  %vm441_vm11 = vweird.f32 %v435_v42  ;;  %vm282_vm13 = vweird.f32 %v276_v47 }
 0x14a   :  { %v2449_v55 = vmul.f32 -1.442695, %v473_v50  ;;  %v286_v50 = vand.u32 2147483647, %v276_v47  ;;  %vm446_vm14 = vcmp.eq.f32.partialorder %v445_v15, 8.507059e+37 }
 0x14c   :  { %v2584_v48 = vpop.eup %2583  ;;  %2589 = vpow2.f32 %v2449_v55  ;;  %vm287_vm1 = vcmp.eq.f32.partialorder %v286_v50, 8.507059e+37 }
 0x14d   :  { %v3194_v12 = vadd.f32 1.0, %v2584_v48  ;;  %v399_v48 = vadd.f32 %v3200_v63, %v398_v21 }
 0x14e   :  { %v2586_v57 = vpop.eup %2585 }
 0x14f   :  { %v2588_v58 = vpop.eup %2587  ;;  %2591 = vrcp.f32 %v3194_v12  ;;  %v437_v59 = vmul.f32 %v2586_v57, %v435_v42  ;;  %vm442_vm9 = vweird.f32 %v2586_v57  ;;  %v289_v42 = vor.u32 1.1754944e-38, %v288_v37 }
 0x150   :  { %v278_v61 = vmul.f32 %v2588_v58, %v276_v47  ;;  %vm283_vm10 = vweird.f32 %v2588_v58  ;;  %vm443_vm12 = vmor %vm441_vm11, %vm442_vm9  ;;  %v2450_v47 = vld [vmem:[%s4050_s2 + $0x8] sm:$0xff]  ;;  %vm345_vm3 = vweird.f32 %v3194_v12 }
 0x151   :  { %v438_v62 = vsub.f32 1.0, %v437_v59  ;;  %vm284_vm15 = vmor %vm282_vm13, %vm283_vm10 }
 0x152   :  { %v2590_v14 = vpop.eup %2589  ;;  %v279_v20 = vsub.f32 1.0, %v278_v61  ;;  %v3207_v61 = vld [vmem:[%s4051_s15] ss:$0 sm:$0xff] }
 0x153   :  { %v477_v24 = vadd.f32 1.0, %v2590_v14  ;;  %v439_v25 = vmul.f32 %v2586_v57, %v438_v62  ;;  %v448_v62 = vor.u32 1.1754944e-38, %v447_v19  ;;  %v513_v14 = vadd.f32 %v3097_v52, %v512_v41 }
 0x154   :  { %v280_v49 = vmul.f32 %v2588_v58, %v279_v20  ;;  %v351_v41 = vand.u32 2147483648, %v3194_v12  ;;  %v376_v52 = vadd.f32 %v3207_v61, %v375_v51 }
 0x155   :  { %v2592_v55 = vpop.eup %2591  ;;  %2593 = vrcp.f32 %v477_v24  ;;  %v440_v18 = vadd.f32 %v2586_v57, %v439_v25  ;;  %vm483_vm7 = vweird.f32 %v477_v24 }
 0x156   :  { %v341_v59 = vmul.f32 %v2592_v55, %v3194_v12  ;;  %v281_v46 = vadd.f32 %v2588_v58, %v280_v49  ;;  %vm346_vm2 = vweird.f32 %v2592_v55 }
 0x157   :  { %v444_v21 = vsel %vm443_vm12, %v2586_v57, %v440_v18  ;;  %v349_v57 = vand.u32 2147483647, %v3194_v12  ;;  %vm347_vm4 = vmor %vm345_vm3, %vm346_vm2 }
 0x158   :  { %v342_v20 = vsub.f32 1.0, %v341_v59  ;;  %v285_v63 = vsel %vm284_vm15, %v2588_v58, %v281_v46  ;;  %v449_v25 = vsel %vm446_vm14, %v448_v62, %v444_v21  ;;  %v352_v59 = vor.u32 1.1754944e-38, %v351_v41 }
 0x159   :  { %v290_v10 = vsel %vm287_vm1, %v289_v42, %v285_v63  ;;  %v515_v3 = vmul.f32 %v513_v14, %v449_v25  ;;  %v489_v62 = vand.u32 2147483648, %v477_v24  ;;  %vm350_vm6 = vcmp.eq.f32.partialorder %v349_v57, 8.507059e+37 }
 0x15a   :  { %v343_v49 = vmul.f32 %v2592_v55, %v342_v20  ;;  %v401_v15 = vmul.f32 %v399_v48, %v290_v10  ;;  %v487_v48 = vand.u32 2147483647, %v477_v24 }
 0x15b   :  { %v2594_v19 = vpop.eup %2593  ;;  %v516_v58 = vadd.f32 %v2450_v47, %v515_v3  ;;  %v490_v42 = vor.u32 1.1754944e-38, %v489_v62 }
 0x15c   :  { %v479_v18 = vmul.f32 %v2594_v19, %v477_v24  ;;  %v344_v46 = vadd.f32 %v2592_v55, %v343_v49  ;;  %v402_v63 = vadd.f32 %v401_v15, %v376_v52  ;;  %vm484_vm5 = vweird.f32 %v2594_v19  ;;  %v4094_v24 = vld [vmem:[#allocation7_spill] sm:$0xff] }
 0x15d   :  { %vm485_vm8 = vmor %vm483_vm7, %vm484_vm5  ;;  %vm488_vm9 = vcmp.eq.f32.partialorder %v487_v48, 8.507059e+37 }
 0x15e   :  { %v480_v37 = vsub.f32 1.0, %v479_v18  ;;  %v348_v50 = vsel %vm347_vm4, %v2592_v55, %v344_v46  ;;  %2595 = vtanh.f32 %v402_v63 }
 0x15f   :  { %2597 = vtanh.f32 %v516_v58  ;;  %v353_v51 = vsel %vm350_vm6, %v352_v59, %v348_v50  ;;  %v4095_v58 = vld [vmem:[#allocation8_spill] sm:$0xff] }
 0x160   :  { %v481_v10 = vmul.f32 %v2594_v19, %v480_v37  ;;  %v404_v20 = vsub.f32 1.0, %v353_v51  ;;  %v406_v25 = vmul.f32 %v353_v51, %v2997_v30  ;;  %v2464_v50 = vld [vmem:[%s4042_s1 + $0x10] sm:$0xff] }
 0x162   :  { %v482_v14 = vadd.f32 %v2594_v19, %v481_v10 }
 0x164   :  { %v486_v12 = vsel %vm485_vm8, %v2594_v19, %v482_v14  ;;  %v2596_v3 = vpop.eup %2595 }
 0x165   :  { %v491_v52 = vsel %vm488_vm9, %v490_v42, %v486_v12  ;;  %v405_v55 = vmul.f32 %v2596_v3, %v404_v20  ;;  %v2598_v49 = vpop.eup %2597 }
 0x166   :  { %v518_v21 = vsub.f32 1.0, %v491_v52  ;;  %v520_v15 = vmul.f32 %v491_v52, %v3132_v56 }
 0x167   :  { %v3220_v41 = vadd.f32 %v406_v25, %v405_v55 }
 0x168   :  { %v519_v47 = vmul.f32 %v2598_v49, %v518_v21 }
 0x169   :  { %408 = vst.msk [vmem:[%s4054_s17] sm:$0xff] %vm60_vm0, %v3220_v41  ;;  %2452 = vmatmul.msk.f32.vlgmr.msrb.gmra.mxu0 %vm60_vm0, %v3220_v41  ;;  %2455 = vmatmul.msk.f32.vlgmr.msrb.gmra.mxu2 %vm60_vm0, %v3220_v41 }
 0x16a   :  { %v3222_v18 = vadd.f32 %v520_v15, %v519_v47  ;;  %795 = vmatpush.msrb.mxu0 %v2898_v7  ;;  %848 = vmatpush.msrb.mxu2 %v3004_v31 }
 0x16c   :  { %2453 = vmatmul.msk.f32.vlgmr.msrb.gmra.mxu1 %vm60_vm0, %v3222_v18  ;;  %2456 = vmatmul.msk.f32.vlgmr.msrb.gmra.mxu3 %vm60_vm0, %v3222_v18 }
 0x16d   :  { %796 = vmatpush.msrb.mxu0 %v2905_v8  ;;  %825 = vmatpush.msrb.mxu1 %v2952_v16 }
 0x16e   :  { %888 = vmatpush.msrb.mxu3 %v2957_v17  ;;  %849 = vmatpush.msrb.mxu2 %v3025_v34 }
 0x16f   :  { %797 = vmatpush.msrb.mxu0 %v2924_v11  ;;  %826 = vmatpush.msrb.mxu1 %v2964_v22 }
 0x170   :  { %889 = vmatpush.msrb.mxu3 %v2969_v23  ;;  %850 = vmatpush.msrb.mxu2 %v3044_v38 }
 0x171   :  { %798 = vmatpush.msrb.mxu0 %v2937_v13  ;;  %827 = vmatpush.msrb.mxu1 %v2976_v26 }
 0x172   :  { %2458 = vmatmul.msk.f32.vlgmr.msra.gmra.mxu0 %vm60_vm0, %v3222_v18  ;;  %2462 = vmatmul.msk.f32.vlgmr.msra.gmra.mxu2 %vm60_vm0, %v3222_v18 }
 0x173   :  { %890 = vmatpush.msrb.mxu3 %v2981_v27  ;;  %828 = vmatpush.msrb.mxu1 %v2988_v28 }
 0x174   :  { %2459 = vmatmul.msk.f32.vlgmr.msra.gmra.mxu1 %vm60_vm0, %v3220_v41  ;;  %2465 = vmatmul.msk.f32.vlgmr.msra.gmra.mxu3 %vm60_vm0, %v3222_v18 }
 0x175   :  { %891 = vmatpush.msrb.mxu3 %v2993_v29  ;;  %908 = vmatpush.msra.mxu0 %v3011_v32 }
 0x176   :  { %948 = vmatpush.msra.mxu1 %v3016_v33  ;;  %851 = vmatpush.msrb.mxu2 %v3061_v43 }
 0x177   :  { %999 = vmatpush.msra.mxu3 %v2864_v0  ;;  %909 = vmatpush.msra.mxu0 %v3030_v35  ;;  %v4092_v0 = vld [vmem:[#allocation6_spill] sm:$0xff] }
 0x178   :  { %949 = vmatpush.msra.mxu1 %v3035_v36  ;;  %968 = vmatpush.msra.mxu2 %v3102_v53 }
 0x179   :  { %1000 = vmatpush.msra.mxu3 %v2874_v2  ;;  %910 = vmatpush.msra.mxu0 %v3049_v39  ;;  %v4093_v2 = vld [vmem:[#allocation4_spill] sm:$0xff] }
 0x17a   :  { %2468 = vmatmul.msk.f32.vlgmr.msrb.gmra.mxu0 %vm60_vm0, %v3222_v18  ;;  %950 = vmatpush.msra.mxu1 %v3054_v40 }
 0x17b   :  { %1001 = vmatpush.msra.mxu3 %v2888_v5  ;;  %911 = vmatpush.msra.mxu0 %v3066_v44 }
 0x17c   :  { %951 = vmatpush.msra.mxu1 %v3071_v45  ;;  %969 = vmatpush.msra.mxu2 %v3107_v54 }
 0x17d   :  { %1041 = vmatpush.msrb.mxu0 %v2869_v1  ;;  %1002 = vmatpush.msra.mxu3 %v2910_v9 }
 0x17e   :  { %970 = vmatpush.msra.mxu2 %v3114_v60 }
 0x17f   :  { %1042 = vmatpush.msrb.mxu0 %v2882_v4 }
 0x180   :  { %971 = vmatpush.msra.mxu2 %v4092_v0 }
 0x181   :  { %1043 = vmatpush.msrb.mxu0 %v2893_v6  ;;  %v2461_v6 = vld [vmem:[%s4041_s0 + $0x10] sm:$0xff] }
 0x183   :  { %1044 = vmatpush.msrb.mxu0 %v4093_v2 }
 0x1e6   :  { %v542_v5 = vpop.f32.mrf.mxu0 }
 0x1e9   :  { %v565_v30 = vpop.f32.mrf.mxu1 }
 0x1ea   :  { %v566_v56 = vadd.f32 %v565_v30, %v542_v5 }
 0x1ec   :  { %v568_v19 = vadd.f32 %v4094_v24, %v566_v56  ;;  %v605_v1 = vpop.f32.mrf.mxu2 }
 0x1ee   :  { %v2454_v46 = vmul.f32 -1.442695, %v568_v19 }
 0x1ef   :  { %v625_v9 = vpop.f32.mrf.mxu3  ;;  %v665_v56 = vpop.f32.mrf.mxu0 }
 0x1f0   :  { %2599 = vpow2.f32 %v2454_v46  ;;  %v626_v57 = vadd.f32 %v625_v9, %v605_v1 }
 0x1f1   :  { %v685_v19 = vpop.f32.mrf.mxu1 }
 0x1f2   :  { %v628_v4 = vadd.f32 %v4095_v58, %v626_v57 }
 0x1f4   :  { %v2457_v63 = vmul.f32 -1.442695, %v628_v4 }
 0x1f5   :  { %v716_v37 = vpop.f32.mrf.mxu2 }
 0x1f6   :  { %v2600_v59 = vpop.eup %2599  ;;  %2601 = vpow2.f32 %v2457_v63  ;;  %v719_v62 = vadd.f32 %v2461_v6, %v716_v37  ;;  %v4096_v6 = vld [vmem:[#allocation9_spill] sm:$0xff] }
 0x1f7   :  { %v572_v10 = vadd.f32 1.0, %v2600_v59  ;;  %v758_v48 = vpop.f32.mrf.mxu3  ;;  %v686_v63 = vadd.f32 %v4096_v6, %v685_v19 }
 0x1f8   :  { %v2463_v51 = vmul.f32 -1.442695, %v719_v62  ;;  %v761_v14 = vadd.f32 %v2464_v50, %v758_v48  ;;  %v666_v50 = vadd.f32 %v3207_v61, %v665_v56  ;;  %v800_v56 = vpop.f32.mrf.mxu0 }
 0x1f9   :  { %2603 = vrcp.f32 %v572_v10  ;;  %v584_v47 = vand.u32 2147483648, %v572_v10  ;;  %v582_v2 = vand.u32 2147483647, %v572_v10  ;;  %vm578_vm11 = vweird.f32 %v572_v10 }
 0x1fa   :  { %2605 = vpow2.f32 %v2463_v51  ;;  %v2466_v42 = vmul.f32 -1.442695, %v761_v14 }
 0x1fb   :  { %v585_v9 = vor.u32 1.1754944e-38, %v584_v47  ;;  %vm583_vm13 = vcmp.eq.f32.partialorder %v582_v2, 8.507059e+37 }
 0x1fc   :  { %v2602_v12 = vpop.eup %2601  ;;  %2607 = vpow2.f32 %v2466_v42 }
 0x1fd   :  { %v632_v20 = vadd.f32 1.0, %v2602_v12 }
 0x1ff   :  { %v2604_v3 = vpop.eup %2603  ;;  %2609 = vrcp.f32 %v632_v20  ;;  %v644_v59 = vand.u32 2147483648, %v632_v20  ;;  %v642_v42 = vand.u32 2147483647, %v632_v20  ;;  %vm638_vm15 = vweird.f32 %v632_v20 }
 0x200   :  { %v2606_v52 = vpop.eup %2605  ;;  %v574_v21 = vmul.f32 %v2604_v3, %v572_v10  ;;  %vm579_vm10 = vweird.f32 %v2604_v3 }
 0x201   :  { %v723_v55 = vadd.f32 1.0, %v2606_v52  ;;  %vm580_vm12 = vmor %vm578_vm11, %vm579_vm10  ;;  %vm643_vm3 = vcmp.eq.f32.partialorder %v642_v42, 8.507059e+37 }
 0x202   :  { %v2608_v25 = vpop.eup %2607  ;;  %v575_v49 = vsub.f32 1.0, %v574_v21 }
 0x203   :  { %2611 = vrcp.f32 %v723_v55  ;;  %v3291_v5 = vadd.f32 1.0, %v2608_v25  ;;  %v733_v25 = vand.u32 2147483647, %v723_v55  ;;  %vm729_vm4 = vweird.f32 %v723_v55 }
 0x204   :  { %v576_v15 = vmul.f32 %v2604_v3, %v575_v49  ;;  %v735_v49 = vand.u32 2147483648, %v723_v55 }
 0x205   :  { %v2610_v30 = vpop.eup %2609  ;;  %2613 = vrcp.f32 %v3291_v5  ;;  %vm734_vm6 = vcmp.eq.f32.partialorder %v733_v25, 8.507059e+37  ;;  %vm771_vm8 = vweird.f32 %v3291_v5 }
 0x206   :  { %v634_v1 = vmul.f32 %v2610_v30, %v632_v20  ;;  %v577_v46 = vadd.f32 %v2604_v3, %v576_v15  ;;  %vm639_vm14 = vweird.f32 %v2610_v30  ;;  %v736_v20 = vor.u32 1.1754944e-38, %v735_v49 }
 0x207   :  { %vm640_vm1 = vmor %vm638_vm15, %vm639_vm14 }
 0x208   :  { %v635_v57 = vsub.f32 1.0, %v634_v1  ;;  %v581_v4 = vsel %vm580_vm12, %v2604_v3, %v577_v46  ;;  %v645_v3 = vor.u32 1.1754944e-38, %v644_v59 }
 0x209   :  { %v2612_v37 = vpop.eup %2611  ;;  %v586_v62 = vsel %vm583_vm13, %v585_v9, %v581_v4  ;;  %v4097_v4 = vld [vmem:[#allocation5_spill] sm:$0xff] }
 0x20a   :  { %v636_v48 = vmul.f32 %v2610_v30, %v635_v57  ;;  %v688_v51 = vmul.f32 %v686_v63, %v586_v62  ;;  %v725_v14 = vmul.f32 %v2612_v37, %v723_v55  ;;  %vm730_vm2 = vweird.f32 %v2612_v37 }
 0x20b   :  { %v2614_v10 = vpop.eup %2613  ;;  %vm731_vm5 = vmor %vm729_vm4, %vm730_vm2  ;;  %v801_v63 = vadd.f32 %v4097_v4, %v800_v56 }
 0x20c   :  { %v637_v12 = vadd.f32 %v2610_v30, %v636_v48  ;;  %v689_v52 = vadd.f32 %v688_v51, %v666_v50  ;;  %v726_v21 = vsub.f32 1.0, %v725_v14  ;;  %v767_v47 = vmul.f32 %v2614_v10, %v3291_v5 }
 0x20d   :  { %vm772_vm7 = vweird.f32 %v2614_v10  ;;  %v777_v14 = vand.u32 2147483648, %v3291_v5 }
 0x20e   :  { %v641_v15 = vsel %vm640_vm1, %v2610_v30, %v637_v12  ;;  %2615 = vtanh.f32 %v689_v52  ;;  %v727_v2 = vmul.f32 %v2612_v37, %v726_v21  ;;  %v768_v19 = vsub.f32 1.0, %v767_v47  ;;  %v2467_v30 = vld [vmem:[%s4050_s2 + $0x10] sm:$0xff]  ;;  %vm773_vm9 = vmor %vm771_vm8, %vm772_vm7 }
 0x20f   :  { %v646_v1 = vsel %vm643_vm3, %v645_v3, %v641_v15  ;;  %v778_v3 = vor.u32 1.1754944e-38, %v777_v14 }
 0x210   :  { %v728_v46 = vadd.f32 %v2612_v37, %v727_v2  ;;  %v769_v9 = vmul.f32 %v2614_v10, %v768_v19  ;;  %v691_v50 = vsub.f32 1.0, %v646_v1  ;;  %v693_v42 = vmul.f32 %v646_v1, %v3220_v41 }
 0x212   :  { %v732_v57 = vsel %vm731_vm5, %v2612_v37, %v728_v46  ;;  %v770_v62 = vadd.f32 %v2614_v10, %v769_v9  ;;  %v775_v37 = vand.u32 2147483647, %v3291_v5 }
 0x213   :  { %v737_v59 = vsel %vm734_vm6, %v736_v20, %v732_v57 }
 0x214   :  { %v2616_v48 = vpop.eup %2615  ;;  %v803_v51 = vmul.f32 %v801_v63, %v737_v59  ;;  %v774_v52 = vsel %vm773_vm9, %v2614_v10, %v770_v62  ;;  %vm776_vm10 = vcmp.eq.f32.partialorder %v775_v37, 8.507059e+37 }
 0x215   :  { %v692_v55 = vmul.f32 %v2616_v48, %v691_v50  ;;  %v779_v41 = vsel %vm776_vm10, %v778_v3, %v774_v52 }
 0x216   :  { %v804_v12 = vadd.f32 %v2467_v30, %v803_v51  ;;  %v806_v5 = vsub.f32 1.0, %v779_v41  ;;  %v808_v49 = vmul.f32 %v779_v41, %v3222_v18 }
 0x217   :  { %v3305_v21 = vadd.f32 %v693_v42, %v692_v55 }
 0x218   :  { %2617 = vtanh.f32 %v804_v12 }
 0x219   :  { %2460 = vst.msk [vmem:[%s4054_s17 + $0x8] sm:$0xff] %vm60_vm0, %v3305_v21  ;;  %2469 = vmatmul.msk.f32.vlgmr.msrb.gmra.mxu1 %vm60_vm0, %v3305_v21  ;;  %2472 = vmatmul.msk.f32.vlgmr.msrb.gmra.mxu3 %vm60_vm0, %v3305_v21 }
 0x21a   :  { %1083 = vmatpush.msrb.mxu1 %v2898_v7  ;;  %1136 = vmatpush.msrb.mxu3 %v3004_v31 }
 0x21c   :  { %1084 = vmatpush.msrb.mxu1 %v2905_v8  ;;  %1137 = vmatpush.msrb.mxu3 %v3025_v34  ;;  %v3359_v8 = vld [vmem:[%s4085_s29 + $0x18] sm:$0xff] }
 0x21e   :  { %v2618_v10 = vpop.eup %2617  ;;  %1085 = vmatpush.msrb.mxu1 %v2924_v11  ;;  %1138 = vmatpush.msrb.mxu3 %v3044_v38  ;;  %v3366_v11 = vld [vmem:[%s4084_s26 + $0x18] sm:$0xff] }
 0x21f   :  { %v807_v25 = vmul.f32 %v2618_v10, %v806_v5 }
 0x220   :  { %1086 = vmatpush.msrb.mxu1 %v2937_v13  ;;  %1139 = vmatpush.msrb.mxu3 %v3061_v43  ;;  %v3373_v13 = vld [vmem:[%s4085_s29 + $0x10] sm:$0xff] }
 0x221   :  { %v3325_v7 = vadd.f32 %v808_v49, %v807_v25 }
 0x223   :  { %2470 = vmatmul.msk.f32.vlgmr.msrb.gmra.mxu2 %vm60_vm0, %v3325_v7  ;;  %2473 = vmatmul.msk.f32.vlgmr.msra.gmra.mxu0 %vm60_vm0, %v3325_v7 }
 0x224   :  { %2475 = vmatmul.msk.f32.vlgmr.msra.gmra.mxu1 %vm60_vm0, %v3325_v7  ;;  %2479 = vmatmul.msk.f32.vlgmr.msra.gmra.mxu3 %vm60_vm0, %v3325_v7 }
 0x225   :  { %1196 = vmatpush.msra.mxu1 %v3011_v32  ;;  %1113 = vmatpush.msrb.mxu2 %v2952_v16  ;;  %v3380_v16 = vld [vmem:[%s4084_s26 + $0x10] sm:$0xff] }
 0x226   :  { %1176 = vmatpush.msra.mxu0 %v2957_v17  ;;  %1256 = vmatpush.msra.mxu3 %v3102_v53  ;;  %v3386_v17 = vld [vmem:[%s4085_s29 + $0x8] sm:$0xff] }
 0x227   :  { %1197 = vmatpush.msra.mxu1 %v3030_v35  ;;  %1114 = vmatpush.msrb.mxu2 %v2964_v22  ;;  %4098 = vst [vmem:[#allocation6_spill] sm:$0xff] %v3386_v17  ;;  %v3393_v22 = vld [vmem:[%s4084_s26 + $0x8] sm:$0xff] }
 0x228   :  { %1177 = vmatpush.msra.mxu0 %v2969_v23  ;;  %1257 = vmatpush.msra.mxu3 %v3107_v54  ;;  %v3399_v23 = vld [vmem:[%s4085_s29] sm:$0xff] }
 0x229   :  { %1198 = vmatpush.msra.mxu1 %v3049_v39  ;;  %1115 = vmatpush.msrb.mxu2 %v2976_v26  ;;  %4099 = vst [vmem:[#allocation4_spill] sm:$0xff] %v3399_v23  ;;  %v3406_v26 = vld [vmem:[%s4084_s26] sm:$0xff] }
 0x22a   :  { %1178 = vmatpush.msra.mxu0 %v2981_v27  ;;  %1258 = vmatpush.msra.mxu3 %v3114_v60 }
 0x22b   :  { %2476 = vmatmul.msk.f32.vlgmr.msra.gmra.mxu2 %vm60_vm0, %v3305_v21  ;;  %2482 = vmatmul.msk.f32.vlgmr.msrb.gmra.mxu0 %vm60_vm0, %v3325_v7 }
 0x22c   :  { %2485 = vmatmul.msk.f32.vlgmr.msrb.gmra.mxu1 %vm60_vm0, %v3325_v7  ;;  %1116 = vmatpush.msrb.mxu2 %v2988_v28 }
 0x22d   :  { %1199 = vmatpush.msra.mxu1 %v3066_v44  ;;  %1179 = vmatpush.msra.mxu0 %v2993_v29 }
 0x22e   :  { %1236 = vmatpush.msra.mxu2 %v3016_v33  ;;  %1259 = vmatpush.msra.mxu3 %v4092_v0  ;;  %v2478_v33 = vld [vmem:[%s4041_s0 + $0x18] sm:$0xff] }
 0x22f   :  { %1329 = vmatpush.msrb.mxu1 %v3359_v8  ;;  %1287 = vmatpush.msrb.mxu0 %v3366_v11 }
 0x230   :  { %1237 = vmatpush.msra.mxu2 %v3035_v36  ;;  %v2481_v36 = vld [vmem:[%s4042_s1 + $0x18] sm:$0xff] }
 0x231   :  { %1330 = vmatpush.msrb.mxu1 %v3373_v13  ;;  %1288 = vmatpush.msrb.mxu0 %v3380_v16 }
 0x232   :  { %1238 = vmatpush.msra.mxu2 %v3054_v40 }
 0x233   :  { %1331 = vmatpush.msrb.mxu1 %v3386_v17  ;;  %1289 = vmatpush.msrb.mxu0 %v3393_v22 }
 0x234   :  { %1239 = vmatpush.msra.mxu2 %v3071_v45 }
 0x235   :  { %1332 = vmatpush.msrb.mxu1 %v3399_v23  ;;  %1290 = vmatpush.msrb.mxu0 %v3406_v26 }
 0x296   :  { %v830_v34 = vpop.f32.mrf.mxu1 }
 0x29c   :  { %v893_v27 = vpop.f32.mrf.mxu3 }
 0x2a0   :  { %v913_v28 = vpop.f32.mrf.mxu0 }
 0x2a1   :  { %v914_v29 = vadd.f32 %v913_v28, %v893_v27  ;;  %v953_v19 = vpop.f32.mrf.mxu1 }
 0x2a2   :  { %v954_v48 = vadd.f32 %v3207_v61, %v953_v19 }
 0x2a3   :  { %v916_v31 = vadd.f32 %v4095_v58, %v914_v29 }
 0x2a5   :  { %v2474_v32 = vmul.f32 -1.442695, %v916_v31 }
 0x2a6   :  { %v853_v35 = vpop.f32.mrf.mxu2 }
 0x2a7   :  { %2619 = vpow2.f32 %v2474_v32  ;;  %v854_v38 = vadd.f32 %v853_v35, %v830_v34  ;;  %v1004_v39 = vpop.f32.mrf.mxu3 }
 0x2a8   :  { %v1007_v40 = vadd.f32 %v2478_v33, %v1004_v39  ;;  %v1046_v43 = vpop.f32.mrf.mxu0 }
 0x2a9   :  { %v856_v44 = vadd.f32 %v4094_v24, %v854_v38  ;;  %v1049_v45 = vadd.f32 %v2481_v36, %v1046_v43  ;;  %v1088_v55 = vpop.f32.mrf.mxu1  ;;  %v2484_v38 = vld [vmem:[%s4050_s2 + $0x18] sm:$0xff] }
 0x2aa   :  { %v2480_v53 = vmul.f32 -1.442695, %v1007_v40  ;;  %v1089_v25 = vadd.f32 %v4097_v4, %v1088_v55  ;;  %v3486_v55 = vld [vmem:[%s4044_s10 + $0x18] sm:$0xff] }
 0x2ab   :  { %v2471_v54 = vmul.f32 -1.442695, %v856_v44  ;;  %v2483_v60 = vmul.f32 -1.442695, %v1049_v45 }
 0x2ac   :  { %2621 = vpow2.f32 %v2480_v53 }
 0x2ad   :  { %v2620_v18 = vpop.eup %2619  ;;  %2623 = vpow2.f32 %v2471_v54 }
 0x2ae   :  { %v3417_v0 = vadd.f32 1.0, %v2620_v18  ;;  %2625 = vpow2.f32 %v2483_v60  ;;  %v973_v37 = vpop.f32.mrf.mxu2 }
 0x2af   :  { %v974_v27 = vadd.f32 %v4096_v6, %v973_v37  ;;  %v3492_v37 = vld [vmem:[%s4039_s5 + $0x10] sm:$0xff] }
 0x2b0   :  { %2627 = vrcp.f32 %v3417_v0  ;;  %v932_v53 = vand.u32 2147483648, %v3417_v0  ;;  %vm926_vm7 = vweird.f32 %v3417_v0 }
 0x2b2   :  { %v2622_v47 = vpop.eup %2621 }
 0x2b3   :  { %v2624_v15 = vpop.eup %2623  ;;  %v1011_v2 = vadd.f32 1.0, %v2622_v47  ;;  %v930_v47 = vand.u32 2147483647, %v3417_v0 }
 0x2b4   :  { %v2626_v56 = vpop.eup %2625  ;;  %v860_v1 = vadd.f32 1.0, %v2624_v15 }
 0x2b5   :  { %2629 = vrcp.f32 %v1011_v2  ;;  %v3420_v46 = vadd.f32 1.0, %v2626_v56  ;;  %v1021_v42 = vand.u32 2147483647, %v1011_v2  ;;  %v1023_v12 = vand.u32 2147483648, %v1011_v2 }
 0x2b6   :  { %2631 = vrcp.f32 %v860_v1  ;;  %v3422_v20 = vpop.eup %2627  ;;  %v870_v3 = vand.u32 2147483647, %v860_v1  ;;  %v872_v10 = vand.u32 2147483648, %v860_v1  ;;  %vm1017_vm13 = vweird.f32 %v1011_v2 }
 0x2b7   :  { %2633 = vrcp.f32 %v3420_v46  ;;  %v922_v9 = vmul.f32 %v3422_v20, %v3417_v0  ;;  %vm927_vm14 = vweird.f32 %v3422_v20  ;;  %v1024_v32 = vor.u32 1.1754944e-38, %v1023_v12  ;;  %v3504_v12 = vld [vmem:[%s4045_s6 + $0x10] sm:$0xff] }
 0x2b8   :  { %vm866_vm1 = vweird.f32 %v860_v1  ;;  %vm1022_vm2 = vcmp.eq.f32.partialorder %v1021_v42, 8.507059e+37  ;;  %vm871_vm4 = vcmp.eq.f32.partialorder %v870_v3, 8.507059e+37  ;;  %v873_v4 = vor.u32 1.1754944e-38, %v872_v10  ;;  %vm928_vm9 = vmor %vm926_vm7, %vm927_vm14  ;;  %v3498_v42 = vld [vmem:[%s4043_s9 + $0x10] sm:$0xff]  ;;  %v3516_v3 = vld [vmem:[%s4039_s5 + $0x8] sm:$0xff] }
 0x2b9   :  { %v923_v62 = vsub.f32 1.0, %v922_v9  ;;  %v1065_v40 = vand.u32 2147483648, %v3420_v46  ;;  %vm1059_vm6 = vweird.f32 %v3420_v46  ;;  %v1063_v54 = vand.u32 2147483647, %v3420_v46  ;;  %v3534_v10 = vld [vmem:[%s4044_s10 + $0x8] sm:$0xff] }
 0x2bb   :  { %v2630_v57 = vpop.eup %2629  ;;  %v924_v28 = vmul.f32 %v3422_v20, %v923_v62  ;;  %v1066_v56 = vor.u32 1.1754944e-38, %v1065_v40  ;;  %vm1064_vm10 = vcmp.eq.f32.partialorder %v1063_v54, 8.507059e+37  ;;  %v3638_v40 = vld [vmem:[%s4047_s8] sm:$0xff] }
 0x2bc   :  { %v2632_v63 = vpop.eup %2631  ;;  %v1013_v50 = vmul.f32 %v2630_v57, %v1011_v2  ;;  %vm1018_vm11 = vweird.f32 %v2630_v57 }
 0x2bd   :  { %v2634_v59 = vpop.eup %2633  ;;  %v862_v30 = vmul.f32 %v2632_v63, %v860_v1  ;;  %vm867_vm12 = vweird.f32 %v2632_v63  ;;  %vm1019_vm15 = vmor %vm1017_vm13, %vm1018_vm11  ;;  %v925_v45 = vadd.f32 %v3422_v20, %v924_v28  ;;  %v933_v1 = vor.u32 1.1754944e-38, %v932_v53  ;;  %v3566_v28 = vld [vmem:[%s4045_s6] sm:$0xff] }
 0x2be   :  { %v1055_v51 = vmul.f32 %v2634_v59, %v3420_v46  ;;  %v1014_v14 = vsub.f32 1.0, %v1013_v50  ;;  %vm868_vm3 = vmor %vm866_vm1, %vm867_vm12  ;;  %vm1060_vm5 = vweird.f32 %v2634_v59  ;;  %vm931_vm11 = vcmp.eq.f32.partialorder %v930_v47, 8.507059e+37 }
 0x2bf   :  { %v863_v52 = vsub.f32 1.0, %v862_v30  ;;  %vm1061_vm8 = vmor %vm1059_vm6, %vm1060_vm5  ;;  %v929_v19 = vsel %vm928_vm9, %v3422_v20, %v925_v45  ;;  %v3480_v20 = vld [vmem:[%s4045_s6 + $0x18] sm:$0xff] }
 0x2c0   :  { %v1056_v41 = vsub.f32 1.0, %v1055_v51  ;;  %v1015_v5 = vmul.f32 %v2630_v57, %v1014_v14  ;;  %v934_v9 = vsel %vm931_vm11, %v933_v1, %v929_v19 }
 0x2c1   :  { %v864_v49 = vmul.f32 %v2632_v63, %v863_v52  ;;  %v979_v50 = vsub.f32 1.0, %v934_v9  ;;  %v3510_v52 = vld [vmem:[%s4044_s10 + $0x10] sm:$0xff] }
 0x2c2   :  { %v1057_v29 = vmul.f32 %v2634_v59, %v1056_v41  ;;  %v1016_v31 = vadd.f32 %v2630_v57, %v1015_v5  ;;  %v3522_v41 = vld [vmem:[%s4043_s9 + $0x8] sm:$0xff] }
 0x2c3   :  { %v865_v33 = vadd.f32 %v2632_v63, %v864_v49  ;;  %v3528_v5 = vld [vmem:[%s4045_s6 + $0x8] sm:$0xff]  ;;  %v3554_v49 = vld [vmem:[%s4043_s9] sm:$0xff] }
 0x2c4   :  { %v1020_v34 = vsel %vm1019_vm15, %v2630_v57, %v1016_v31  ;;  %v1058_v35 = vadd.f32 %v2634_v59, %v1057_v29  ;;  %v3572_v29 = vld [vmem:[%s4044_s10] sm:$0xff]  ;;  %v3578_v31 = vld [vmem:[%s4047_s8 + $0x18] sm:$0xff] }
 0x2c5   :  { %v1025_v36 = vsel %vm1022_vm2, %v1024_v32, %v1020_v34  ;;  %v869_v39 = vsel %vm868_vm3, %v2632_v63, %v865_v33  ;;  %v3584_v32 = vld [vmem:[%s4046_s7 + $0x10] sm:$0xff]  ;;  %v3590_v33 = vld [vmem:[%s4049_s11 + $0x18] sm:$0xff] }
 0x2c6   :  { %v1091_v43 = vmul.f32 %v1089_v25, %v1025_v36  ;;  %v874_v44 = vsel %vm871_vm4, %v873_v4, %v869_v39  ;;  %v1062_v15 = vsel %vm1061_vm8, %v2634_v59, %v1058_v35  ;;  %v981_v59 = vmul.f32 %v934_v9, %v3305_v21  ;;  %v3468_v21 = vld [vmem:[%s4039_s5 + $0x18] sm:$0xff]  ;;  %v3548_v25 = vld [vmem:[%s4039_s5] sm:$0xff]  ;;  %v3597_v34 = vld [vmem:[%s4047_s8 + $0x10] sm:$0xff] }
 0x2c7   :  { %v976_v60 = vmul.f32 %v974_v27, %v874_v44  ;;  %v1067_v46 = vsel %vm1064_vm10, %v1066_v56, %v1062_v15  ;;  %v3560_v27 = vld [vmem:[%s4046_s7 + $0x18] sm:$0xff]  ;;  %v3603_v4 = vld [vmem:[%s4046_s7 + $0x8] sm:$0xff]  ;;  %v3609_v35 = vld [vmem:[%s4049_s11 + $0x10] sm:$0xff] }
 0x2c8   :  { %v1092_v18 = vadd.f32 %v2484_v38, %v1091_v43  ;;  %v1094_v57 = vsub.f32 1.0, %v1067_v46  ;;  %v1096_v62 = vmul.f32 %v1067_v46, %v3325_v7  ;;  %v3474_v7 = vld [vmem:[%s4043_s9 + $0x18] sm:$0xff]  ;;  %v3616_v36 = vld [vmem:[%s4047_s8 + $0x8] sm:$0xff]  ;;  %v3630_v39 = vld [vmem:[%s4046_s7] sm:$0xff] }
 0x2c9   :  { %v977_v2 = vadd.f32 %v976_v60, %v954_v48  ;;  %v3624_v38 = vld [vmem:[%s4049_s11 + $0x8] sm:$0xff]  ;;  %v3644_v43 = vld [vmem:[%s4049_s11] sm:$0xff] }
 0x2ca   :  { %2635 = vtanh.f32 %v1092_v18  ;;  %4100 = vst [vmem:[#allocation7_spill] sm:$0xff] %v3644_v43  ;;  %v2498_v18 = vld [vmem:[%s4042_s1 + $0x20] sm:$0xff] }
 0x2cb   :  { %2637 = vtanh.f32 %v977_v2  ;;  %v2495_v2 = vld [vmem:[%s4041_s0 + $0x20] sm:$0xff] }
 0x2d0   :  { %v2636_v63 = vpop.eup %2635 }
 0x2d1   :  { %v2638_v30 = vpop.eup %2637  ;;  %v1095_v0 = vmul.f32 %v2636_v63, %v1094_v57 }
 0x2d2   :  { %v980_v51 = vmul.f32 %v2638_v30, %v979_v50 }
 0x2d3   :  { %v3448_v48 = vadd.f32 %v1096_v62, %v1095_v0 }
 0x2d4   :  { %v3450_v14 = vadd.f32 %v981_v59, %v980_v51 }
 0x2d5   :  { %2487 = vmatmul.msk.f32.vlgmr.msrb.gmra.mxu3 %vm60_vm0, %v3448_v48  ;;  %2490 = vmatmul.msk.f32.vlgmr.msra.gmra.mxu1 %vm60_vm0, %v3448_v48 }
 0x2d6   :  { %2477 = vst.msk [vmem:[%s4054_s17 + $0x10] sm:$0xff] %vm60_vm0, %v3450_v14  ;;  %2486 = vmatmul.msk.f32.vlgmr.msrb.gmra.mxu2 %vm60_vm0, %v3450_v14  ;;  %2489 = vmatmul.msk.f32.vlgmr.msra.gmra.mxu0 %vm60_vm0, %v3450_v14 }
 0x2d7   :  { %1371 = vmatpush.msrb.mxu2 %v3468_v21  ;;  %1401 = vmatpush.msrb.mxu3 %v3474_v7 }
 0x2d8   :  { %1424 = vmatpush.msra.mxu0 %v3480_v20  ;;  %1464 = vmatpush.msra.mxu1 %v3486_v55 }
 0x2d9   :  { %1372 = vmatpush.msrb.mxu2 %v3492_v37  ;;  %1402 = vmatpush.msrb.mxu3 %v3498_v42 }
 0x2da   :  { %1425 = vmatpush.msra.mxu0 %v3504_v12  ;;  %1465 = vmatpush.msra.mxu1 %v3510_v52 }
 0x2db   :  { %1373 = vmatpush.msrb.mxu2 %v3516_v3  ;;  %1403 = vmatpush.msrb.mxu3 %v3522_v41 }
 0x2dc   :  { %1426 = vmatpush.msra.mxu0 %v3528_v5  ;;  %1466 = vmatpush.msra.mxu1 %v3534_v10 }
 0x2dd   :  { %2493 = vmatmul.msk.f32.vlgmr.msra.gmra.mxu3 %vm60_vm0, %v3450_v14  ;;  %2499 = vmatmul.msk.f32.vlgmr.msrb.gmra.mxu1 %vm60_vm0, %v3448_v48 }
 0x2de   :  { %2492 = vmatmul.msk.f32.vlgmr.msra.gmra.mxu2 %vm60_vm0, %v3448_v48  ;;  %2496 = vmatmul.msk.f32.vlgmr.msrb.gmra.mxu0 %vm60_vm0, %v3448_v48 }
 0x2df   :  { %1374 = vmatpush.msrb.mxu2 %v3548_v25  ;;  %1404 = vmatpush.msrb.mxu3 %v3554_v49 }
 0x2e0   :  { %1427 = vmatpush.msra.mxu0 %v3566_v28  ;;  %1467 = vmatpush.msra.mxu1 %v3572_v29 }
 0x2e1   :  { %1484 = vmatpush.msra.mxu2 %v3560_v27  ;;  %1524 = vmatpush.msra.mxu3 %v3578_v31 }
 0x2e2   :  { %1544 = vmatpush.msrb.mxu0 %v3590_v33  ;;  %1575 = vmatpush.msrb.mxu1 %v3366_v11 }
 0x2e3   :  { %1485 = vmatpush.msra.mxu2 %v3584_v32  ;;  %1525 = vmatpush.msra.mxu3 %v3597_v34 }
 0x2e4   :  { %1545 = vmatpush.msrb.mxu0 %v3609_v35  ;;  %1576 = vmatpush.msrb.mxu1 %v3380_v16 }
 0x2e5   :  { %1486 = vmatpush.msra.mxu2 %v3603_v4  ;;  %1526 = vmatpush.msra.mxu3 %v3616_v36 }
 0x2e6   :  { %2502 = vmatmul.msk.f32.vlgmr.msrb.gmra.mxu2 %vm60_vm0, %v3448_v48  ;;  %1546 = vmatpush.msrb.mxu0 %v3624_v38 }
 0x2e7   :  { %1487 = vmatpush.msra.mxu2 %v3630_v39  ;;  %1577 = vmatpush.msrb.mxu1 %v3393_v22 }
 0x2e8   :  { %1527 = vmatpush.msra.mxu3 %v3638_v40  ;;  %1547 = vmatpush.msrb.mxu0 %v3644_v43 }
 0x2e9   :  { %1617 = vmatpush.msrb.mxu2 %v3359_v8  ;;  %1578 = vmatpush.msrb.mxu1 %v3406_v26 }
 0x2eb   :  { %1618 = vmatpush.msrb.mxu2 %v3373_v13 }
 0x2ed   :  { %1619 = vmatpush.msrb.mxu2 %v3386_v17 }
 0x2ef   :  { %1620 = vmatpush.msrb.mxu2 %v3399_v23 }
 0x352   :  { %v1201_v44 = vpop.f32.mrf.mxu1 }
 0x353   :  { %v1181_v45 = vpop.f32.mrf.mxu0 }
 0x354   :  { %v1202_v53 = vadd.f32 %v1201_v44, %v1181_v45 }
 0x356   :  { %v1204_v54 = vadd.f32 %v4095_v58, %v1202_v53 }
 0x358   :  { %v2491_v60 = vmul.f32 -1.442695, %v1204_v54  ;;  %v1141_v47 = vpop.f32.mrf.mxu3 }
 0x359   :  { %v1118_v15 = vpop.f32.mrf.mxu2 }
 0x35a   :  { %2639 = vpow2.f32 %v2491_v60  ;;  %v1142_v56 = vadd.f32 %v1141_v47, %v1118_v15  ;;  %v1334_v19 = vpop.f32.mrf.mxu1 }
 0x35b   :  { %v1337_v1 = vadd.f32 %v2498_v18, %v1334_v19  ;;  %v1292_v46 = vpop.f32.mrf.mxu0 }
 0x35c   :  { %v1144_v9 = vadd.f32 %v4094_v24, %v1142_v56  ;;  %v1295_v57 = vadd.f32 %v2495_v2, %v1292_v46 }
 0x35d   :  { %v2500_v58 = vmul.f32 -1.442695, %v1337_v1 }
 0x35e   :  { %v2488_v63 = vmul.f32 -1.442695, %v1144_v9  ;;  %v2497_v50 = vmul.f32 -1.442695, %v1295_v57 }
 0x35f   :  { %2641 = vpow2.f32 %v2500_v58 }
 0x360   :  { %v2640_v30 = vpop.eup %2639  ;;  %2643 = vpow2.f32 %v2488_v63  ;;  %v1261_v56 = vpop.f32.mrf.mxu3 }
 0x361   :  { %v3659_v0 = vadd.f32 1.0, %v2640_v30  ;;  %2645 = vpow2.f32 %v2497_v50  ;;  %v1241_v60 = vpop.f32.mrf.mxu2  ;;  %v1262_v63 = vadd.f32 %v4096_v6, %v1261_v56 }
 0x363   :  { %2647 = vrcp.f32 %v3659_v0  ;;  %vm1214_vm15 = vweird.f32 %v3659_v0 }
 0x365   :  { %v2642_v62 = vpop.eup %2641 }
 0x366   :  { %v2644_v51 = vpop.eup %2643  ;;  %v3662_v59 = vadd.f32 1.0, %v2642_v62 }
 0x367   :  { %v2646_v44 = vpop.eup %2645  ;;  %v1148_v45 = vadd.f32 1.0, %v2644_v51 }
 0x368   :  { %2649 = vrcp.f32 %v3662_v59  ;;  %v1299_v24 = vadd.f32 1.0, %v2646_v44  ;;  %v1242_v44 = vadd.f32 %v3207_v61, %v1241_v60  ;;  %vm1347_vm9 = vweird.f32 %v3662_v59 }
 0x369   :  { %2651 = vrcp.f32 %v1148_v45  ;;  %v3665_v53 = vpop.eup %2647  ;;  %v1160_v58 = vand.u32 2147483648, %v1148_v45  ;;  %v1158_v30 = vand.u32 2147483647, %v1148_v45  ;;  %vm1154_vm13 = vweird.f32 %v1148_v45  ;;  %v1376_v56 = vpop.f32.mrf.mxu2 }
 0x36a   :  { %2653 = vrcp.f32 %v1299_v24  ;;  %v1210_v54 = vmul.f32 %v3665_v53, %v3659_v0  ;;  %v1311_v23 = vand.u32 2147483648, %v1299_v24  ;;  %vm1305_vm3 = vweird.f32 %v1299_v24 }
 0x36b   :  { %vm1159_vm2 = vcmp.eq.f32.partialorder %v1158_v30, 8.507059e+37  ;;  %vm1215_vm4 = vweird.f32 %v3665_v53  ;;  %v1351_v30 = vand.u32 2147483647, %v3662_v59 }
 0x36c   :  { %v1211_v1 = vsub.f32 1.0, %v1210_v54  ;;  %v1309_v54 = vand.u32 2147483647, %v1299_v24  ;;  %v1312_v60 = vor.u32 1.1754944e-38, %v1311_v23  ;;  %v2501_v23 = vld [vmem:[%s4050_s2 + $0x20] sm:$0xff]  ;;  %vm1216_vm8 = vmor %vm1214_vm15, %vm1215_vm4 }
 0x36e   :  { %v3669_v18 = vpop.eup %2649  ;;  %v1212_v51 = vmul.f32 %v3665_v53, %v1211_v1  ;;  %vm1310_vm6 = vcmp.eq.f32.partialorder %v1309_v54, 8.507059e+37 }
 0x36f   :  { %v2652_v47 = vpop.eup %2651  ;;  %v1343_v15 = vmul.f32 %v3669_v18, %v3662_v59  ;;  %vm1348_vm7 = vweird.f32 %v3669_v18 }
 0x370   :  { %v1150_v2 = vmul.f32 %v2652_v47, %v1148_v45  ;;  %v2654_v19 = vpop.eup %2653  ;;  %vm1155_vm12 = vweird.f32 %v2652_v47  ;;  %v1213_v61 = vadd.f32 %v3665_v53, %v1212_v51  ;;  %vm1349_vm10 = vmor %vm1347_vm9, %vm1348_vm7 }
 0x371   :  { %v1301_v9 = vmul.f32 %v2654_v19, %v1299_v24  ;;  %v1344_v57 = vsub.f32 1.0, %v1343_v15  ;;  %vm1306_vm14 = vweird.f32 %v2654_v19  ;;  %v1220_v15 = vand.u32 2147483648, %v3659_v0  ;;  %vm1156_vm1 = vmor %vm1154_vm13, %vm1155_vm12 }
 0x372   :  { %v1151_v46 = vsub.f32 1.0, %v1150_v2  ;;  %v1161_v2 = vor.u32 1.1754944e-38, %v1160_v58  ;;  %vm1307_vm5 = vmor %vm1305_vm3, %vm1306_vm14  ;;  %v1218_v24 = vand.u32 2147483647, %v3659_v0  ;;  %vm1352_vm12 = vcmp.eq.f32.partialorder %v1351_v30, 8.507059e+37 }
 0x373   :  { %v1302_v62 = vsub.f32 1.0, %v1301_v9  ;;  %v1345_v6 = vmul.f32 %v3669_v18, %v1344_v57  ;;  %v3685_v57 = vld [vmem:[%s4040_s12] ss:$0 sm:$0xff]  ;;  %v1221_v51 = vor.u32 1.1754944e-38, %v1220_v15 }
 0x374   :  { %v1152_v50 = vmul.f32 %v2652_v47, %v1151_v46  ;;  %vm1219_vm11 = vcmp.eq.f32.partialorder %v1218_v24, 8.507059e+37  ;;  %v2512_v24 = vld [vmem:[%s4041_s0 + $0x28] sm:$0xff] }
 0x375   :  { %v1303_v17 = vmul.f32 %v2654_v19, %v1302_v62  ;;  %v1217_v62 = vsel %vm1216_vm8, %v3665_v53, %v1213_v61 }
 0x376   :  { %v1153_v43 = vadd.f32 %v2652_v47, %v1152_v50 }
 0x377   :  { %v1304_v1 = vadd.f32 %v2654_v19, %v1303_v17  ;;  %v1346_v17 = vadd.f32 %v3669_v18, %v1345_v6 }
 0x378   :  { %v1157_v46 = vsel %vm1156_vm1, %v2652_v47, %v1153_v43  ;;  %v1377_v43 = vadd.f32 %v3685_v57, %v1376_v56  ;;  %v1222_v56 = vsel %vm1219_vm11, %v1221_v51, %v1217_v62 }
 0x379   :  { %v1162_v45 = vsel %vm1159_vm2, %v1161_v2, %v1157_v46  ;;  %v1308_v50 = vsel %vm1307_vm5, %v2654_v19, %v1304_v1  ;;  %v1353_v19 = vand.u32 2147483648, %v3662_v59  ;;  %v1350_v6 = vsel %vm1349_vm10, %v3669_v18, %v1346_v17  ;;  %v4103_v18 = vld [vmem:[#allocation4_spill] sm:$0xff] }
 0x37a   :  { %v1264_v9 = vmul.f32 %v1262_v63, %v1162_v45  ;;  %v1313_v47 = vsel %vm1310_vm6, %v1312_v60, %v1308_v50  ;;  %v1269_v59 = vmul.f32 %v1222_v56, %v3450_v14  ;;  %v4102_v14 = vld [vmem:[#allocation7_spill] sm:$0xff] }
 0x37b   :  { %v1379_v63 = vmul.f32 %v1377_v43, %v1313_v47  ;;  %v1354_v2 = vor.u32 1.1754944e-38, %v1353_v19 }
 0x37c   :  { %v1265_v58 = vadd.f32 %v1264_v9, %v1242_v44  ;;  %v1267_v44 = vsub.f32 1.0, %v1222_v56 }
 0x37d   :  { %v1380_v54 = vadd.f32 %v2501_v23, %v1379_v63  ;;  %v1355_v0 = vsel %vm1352_vm12, %v1354_v2, %v1350_v6 }
 0x37e   :  { %2655 = vtanh.f32 %v1265_v58  ;;  %v1382_v45 = vsub.f32 1.0, %v1355_v0  ;;  %v1384_v15 = vmul.f32 %v1355_v0, %v3448_v48  ;;  %v4101_v48 = vld [vmem:[#allocation6_spill] sm:$0xff]  ;;  %v2515_v0 = vld [vmem:[%s4042_s1 + $0x28] sm:$0xff] }
 0x37f   :  { %2657 = vtanh.f32 %v1380_v54  ;;  %v3772_v58 = vld [vmem:[%s4048_s13] ss:$0 sm:$0xff] }
 0x380   :  { %4104 = vst [vmem:[#allocation8_spill] sm:$0xff] %v3772_v58  ;;  %v3778_v54 = vld [vmem:[%s4052_s14] ss:$0 sm:$0xff] }
 0x381   :  { %4105 = vst [vmem:[#allocation9_spill] sm:$0xff] %v3778_v54 }
 0x384   :  { %v2656_v46 = vpop.eup %2655 }
 0x385   :  { %v1268_v1 = vmul.f32 %v2656_v46, %v1267_v44  ;;  %v2658_v60 = vpop.eup %2657 }
 0x386   :  { %v1383_v53 = vmul.f32 %v2658_v60, %v1382_v45 }
 0x387   :  { %v3703_v61 = vadd.f32 %v1269_v59, %v1268_v1 }
 0x388   :  { %v3705_v9 = vadd.f32 %v1384_v15, %v1383_v53 }
 0x389   :  { %2494 = vst.msk [vmem:[%s4054_s17 + $0x18] sm:$0xff] %vm60_vm0, %v3703_v61  ;;  %2503 = vmatmul.msk.f32.vlgmr.msrb.gmra.mxu3 %vm60_vm0, %v3703_v61  ;;  %2506 = vmatmul.msk.f32.vlgmr.msra.gmra.mxu1 %vm60_vm0, %v3703_v61 }
 0x38a   :  { %1659 = vmatpush.msrb.mxu3 %v3468_v21  ;;  %1712 = vmatpush.msra.mxu1 %v3480_v20 }
 0x38b   :  { %2504 = vmatmul.msk.f32.vlgmr.msra.gmra.mxu0 %vm60_vm0, %v3705_v9  ;;  %2507 = vmatmul.msk.f32.vlgmr.msra.gmra.mxu2 %vm60_vm0, %v3705_v9 }
 0x38c   :  { %1660 = vmatpush.msrb.mxu3 %v3492_v37  ;;  %1752 = vmatpush.msra.mxu2 %v3486_v55 }
 0x38d   :  { %1689 = vmatpush.msra.mxu0 %v3474_v7  ;;  %1713 = vmatpush.msra.mxu1 %v3504_v12 }
 0x38e   :  { %1661 = vmatpush.msrb.mxu3 %v3516_v3  ;;  %1753 = vmatpush.msra.mxu2 %v3510_v52 }
 0x38f   :  { %1690 = vmatpush.msra.mxu0 %v3498_v42  ;;  %1714 = vmatpush.msra.mxu1 %v3528_v5 }
 0x390   :  { %1662 = vmatpush.msrb.mxu3 %v3548_v25  ;;  %1754 = vmatpush.msra.mxu2 %v3534_v10 }
 0x391   :  { %2509 = vmatmul.msk.f32.vlgmr.msra.gmra.mxu3 %vm60_vm0, %v3705_v9  ;;  %2513 = vmatmul.msk.f32.vlgmr.msrb.gmra.mxu1 %vm60_vm0, %v3705_v9 }
 0x392   :  { %1772 = vmatpush.msra.mxu3 %v3560_v27  ;;  %1691 = vmatpush.msra.mxu0 %v3522_v41 }
 0x393   :  { %2510 = vmatmul.msk.f32.vlgmr.msrb.gmra.mxu0 %vm60_vm0, %v3703_v61  ;;  %2516 = vmatmul.msk.f32.vlgmr.msrb.gmra.mxu2 %vm60_vm0, %v3705_v9 }
 0x394   :  { %1773 = vmatpush.msra.mxu3 %v3584_v32  ;;  %1755 = vmatpush.msra.mxu2 %v3572_v29 }
 0x395   :  { %1692 = vmatpush.msra.mxu0 %v3554_v49  ;;  %1715 = vmatpush.msra.mxu1 %v3566_v28 }
 0x396   :  { %1774 = vmatpush.msra.mxu3 %v3603_v4  ;;  %1863 = vmatpush.msrb.mxu2 %v3366_v11 }
 0x397   :  { %1812 = vmatpush.msrb.mxu0 %v3578_v31  ;;  %1832 = vmatpush.msrb.mxu1 %v3590_v33 }
 0x398   :  { %1775 = vmatpush.msra.mxu3 %v3630_v39  ;;  %1864 = vmatpush.msrb.mxu2 %v3380_v16 }
 0x399   :  { %2519 = vmatmul.msk.f32.vlgmr.msrb.gmra.mxu3 %vm60_vm0, %v3705_v9  ;;  %1813 = vmatpush.msrb.mxu0 %v3597_v34 }
 0x39a   :  { %1905 = vmatpush.msrb.mxu3 %v3359_v8  ;;  %1833 = vmatpush.msrb.mxu1 %v3609_v35 }
 0x39b   :  { %1865 = vmatpush.msrb.mxu2 %v3393_v22  ;;  %1814 = vmatpush.msrb.mxu0 %v3616_v36 }
 0x39c   :  { %1906 = vmatpush.msrb.mxu3 %v3373_v13  ;;  %1834 = vmatpush.msrb.mxu1 %v3624_v38 }
 0x39d   :  { %1866 = vmatpush.msrb.mxu2 %v3406_v26  ;;  %1815 = vmatpush.msrb.mxu0 %v3638_v40 }
 0x39e   :  { %1907 = vmatpush.msrb.mxu3 %v4101_v48  ;;  %1835 = vmatpush.msrb.mxu1 %v4102_v14 }
 0x3a0   :  { %1908 = vmatpush.msrb.mxu3 %v4103_v18 }
 0x406   :  { %v1469_v50 = vpop.f32.mrf.mxu1 }
 0x408   :  { %v1429_v43 = vpop.f32.mrf.mxu0 }
 0x40c   :  { %v1406_v17 = vpop.f32.mrf.mxu3 }
 0x40d   :  { %v1430_v47 = vadd.f32 %v1429_v43, %v1406_v17 }
 0x40e   :  { %v1489_v23 = vpop.f32.mrf.mxu2  ;;  %v1580_v19 = vpop.f32.mrf.mxu1 }
 0x40f   :  { %v1432_v63 = vadd.f32 %v3772_v58, %v1430_v47  ;;  %v1490_v30 = vadd.f32 %v1489_v23, %v1469_v50  ;;  %v1583_v62 = vadd.f32 %v2512_v24, %v1580_v19 }
 0x411   :  { %v2505_v51 = vmul.f32 -1.442695, %v1432_v63  ;;  %v1492_v6 = vadd.f32 %v3778_v54, %v1490_v30  ;;  %v2514_v2 = vmul.f32 -1.442695, %v1583_v62 }
 0x413   :  { %2659 = vpow2.f32 %v2505_v51  ;;  %v2508_v56 = vmul.f32 -1.442695, %v1492_v6  ;;  %v1549_v51 = vpop.f32.mrf.mxu0 }
 0x414   :  { %2661 = vpow2.f32 %v2514_v2  ;;  %v1529_v17 = vpop.f32.mrf.mxu3 }
 0x415   :  { %2663 = vpow2.f32 %v2508_v56 }
 0x416   :  { %v1622_v44 = vpop.f32.mrf.mxu2 }
 0x417   :  { %v1625_v46 = vadd.f32 %v2515_v0, %v1622_v44 }
 0x419   :  { %v2660_v1 = vpop.eup %2659  ;;  %v2517_v45 = vmul.f32 -1.442695, %v1625_v46 }
 0x41a   :  { %v2662_v59 = vpop.eup %2661  ;;  %v1436_v60 = vadd.f32 1.0, %v2660_v1  ;;  %v3797_v1 = vld [vmem:[%s4053_s16] ss:$0 sm:$0xff] }
 0x41b   :  { %v2664_v53 = vpop.eup %2663  ;;  %v1587_v15 = vadd.f32 1.0, %v2662_v59  ;;  %2665 = vpow2.f32 %v2517_v45  ;;  %4106 = vst [vmem:[#allocation5_spill] sm:$0xff] %v3797_v1  ;;  %v1550_v45 = vadd.f32 %v3797_v1, %v1549_v51  ;;  %v3803_v59 = vld [vmem:[%s4051_s15] ss:$0 sm:$0xff] }
 0x41c   :  { %2667 = vrcp.f32 %v1436_v60  ;;  %v3784_v50 = vadd.f32 1.0, %v2664_v53  ;;  %v1446_v2 = vand.u32 2147483647, %v1436_v60  ;;  %v1448_v56 = vand.u32 2147483648, %v1436_v60  ;;  %4107 = vst [vmem:[#allocation7_spill] sm:$0xff] %v3803_v59  ;;  %v1664_v18 = vpop.f32.mrf.mxu3 }
 0x41d   :  { %2669 = vrcp.f32 %v1587_v15  ;;  %vm1442_vm14 = vweird.f32 %v1436_v60  ;;  %v1530_v53 = vadd.f32 %v3803_v59, %v1529_v17  ;;  %vm1593_vm1 = vweird.f32 %v1587_v15 }
 0x41e   :  { %2671 = vrcp.f32 %v3784_v50  ;;  %v1597_v54 = vand.u32 2147483647, %v1587_v15  ;;  %v1508_v51 = vand.u32 2147483648, %v3784_v50  ;;  %vm1447_vm3 = vcmp.eq.f32.partialorder %v1446_v2, 8.507059e+37 }
 0x41f   :  { %vm1502_vm5 = vweird.f32 %v3784_v50  ;;  %v1506_v59 = vand.u32 2147483647, %v3784_v50  ;;  %v1665_v2 = vadd.f32 %v3685_v57, %v1664_v18 }
 0x420   :  { %vm1598_vm7 = vcmp.eq.f32.partialorder %v1597_v54, 8.507059e+37 }
 0x421   :  { %v2666_v43 = vpop.eup %2665  ;;  %vm1507_vm11 = vcmp.eq.f32.partialorder %v1506_v59, 8.507059e+37 }
 0x422   :  { %v2668_v24 = vpop.eup %2667  ;;  %v3787_v47 = vadd.f32 1.0, %v2666_v43 }
 0x423   :  { %v2670_v23 = vpop.eup %2669  ;;  %v1438_v19 = vmul.f32 %v2668_v24, %v1436_v60  ;;  %vm1443_vm13 = vweird.f32 %v2668_v24 }
 0x424   :  { %v3789_v63 = vpop.eup %2671  ;;  %2673 = vrcp.f32 %v3787_v47  ;;  %v1589_v6 = vmul.f32 %v2670_v23, %v1587_v15  ;;  %vm1444_vm15 = vmor %vm1442_vm14, %vm1443_vm13  ;;  %vm1594_vm2 = vweird.f32 %v2670_v23  ;;  %v1641_v54 = vand.u32 2147483648, %v3787_v47 }
 0x425   :  { %v1498_v30 = vmul.f32 %v3789_v63, %v3784_v50  ;;  %v1439_v62 = vsub.f32 1.0, %v1438_v19  ;;  %vm1503_vm4 = vweird.f32 %v3789_v63  ;;  %vm1595_vm6 = vmor %vm1593_vm1, %vm1594_vm2  ;;  %vm1635_vm10 = vweird.f32 %v3787_v47 }
 0x426   :  { %v1590_v46 = vsub.f32 1.0, %v1589_v6  ;;  %v1449_v6 = vor.u32 1.1754944e-38, %v1448_v56  ;;  %vm3815_vm8 = vmor %vm1502_vm5, %vm1503_vm4 }
 0x427   :  { %v1499_v0 = vsub.f32 1.0, %v1498_v30  ;;  %v1440_v44 = vmul.f32 %v2668_v24, %v1439_v62  ;;  %v1599_v62 = vand.u32 2147483648, %v1587_v15  ;;  %v1509_v15 = vor.u32 1.1754944e-38, %v1508_v51 }
 0x428   :  { %v1591_v30 = vmul.f32 %v2670_v23, %v1590_v46 }
 0x429   :  { %v1500_v43 = vmul.f32 %v3789_v63, %v1499_v0  ;;  %v1441_v19 = vadd.f32 %v2668_v24, %v1440_v44  ;;  %v1600_v46 = vor.u32 1.1754944e-38, %v1599_v62 }
 0x42a   :  { %v2674_v60 = vpop.eup %2673  ;;  %v1592_v0 = vadd.f32 %v2670_v23, %v1591_v30 }
 0x42b   :  { %v1445_v1 = vsel %vm1444_vm15, %v2668_v24, %v1441_v19  ;;  %v1631_v58 = vmul.f32 %v2674_v60, %v3787_v47  ;;  %v1501_v17 = vadd.f32 %v3789_v63, %v1500_v43  ;;  %vm1636_vm9 = vweird.f32 %v2674_v60 }
 0x42c   :  { %v1450_v48 = vsel %vm1447_vm3, %v1449_v6, %v1445_v1  ;;  %v1596_v24 = vsel %vm1595_vm6, %v2670_v23, %v1592_v0  ;;  %v1639_v23 = vand.u32 2147483647, %v3787_v47  ;;  %vm1637_vm12 = vmor %vm1635_vm10, %vm1636_vm9  ;;  %v1642_v6 = vor.u32 1.1754944e-38, %v1641_v54 }
 0x42d   :  { %v1552_v44 = vmul.f32 %v1550_v45, %v1450_v48  ;;  %v1632_v56 = vsub.f32 1.0, %v1631_v58  ;;  %v1601_v30 = vsel %vm1598_vm7, %v1600_v46, %v1596_v24  ;;  %v2518_v48 = vld [vmem:[%s4050_s2 + $0x28] sm:$0xff]  ;;  %v1505_v58 = vsel %vm3815_vm8, %v3789_v63, %v1501_v17 }
 0x42e   :  { %v1667_v18 = vmul.f32 %v1665_v2, %v1601_v30  ;;  %vm1640_vm13 = vcmp.eq.f32.partialorder %v1639_v23, 8.507059e+37  ;;  %v4113_v30 = vld [vmem:[#allocation9_spill] sm:$0xff] }
 0x42f   :  { %v1553_v43 = vadd.f32 %v1552_v44, %v1530_v53  ;;  %v1633_v19 = vmul.f32 %v2674_v60, %v1632_v56  ;;  %v1510_v53 = vsel %vm1507_vm11, %v1509_v15, %v1505_v58 }
 0x430   :  { %v1668_v45 = vadd.f32 %v2518_v48, %v1667_v18  ;;  %v1555_v0 = vsub.f32 1.0, %v1510_v53  ;;  %v1557_v44 = vmul.f32 %v1510_v53, %v3703_v61  ;;  %v2532_v18 = vld [vmem:[%s4042_s1 + $0x30] sm:$0xff] }
 0x431   :  { %2675 = vtanh.f32 %v1553_v43  ;;  %v1634_v50 = vadd.f32 %v2674_v60, %v1633_v19 }
 0x432   :  { %2677 = vtanh.f32 %v1668_v45 }
 0x433   :  { %v1638_v62 = vsel %vm1637_vm12, %v2674_v60, %v1634_v50  ;;  %v4112_v60 = vld [vmem:[#allocation8_spill] sm:$0xff] }
 0x434   :  { %v1643_v63 = vsel %vm1640_vm13, %v1642_v6, %v1638_v62 }
 0x435   :  { %v1670_v56 = vsub.f32 1.0, %v1643_v63  ;;  %v1672_v47 = vmul.f32 %v1643_v63, %v3705_v9 }
 0x437   :  { %v2676_v51 = vpop.eup %2675 }
 0x438   :  { %v1556_v17 = vmul.f32 %v2676_v51, %v1555_v0  ;;  %v2678_v46 = vpop.eup %2677 }
 0x439   :  { %v1671_v2 = vmul.f32 %v2678_v46, %v1670_v56 }
 0x43a   :  { %v3829_v24 = vadd.f32 %v1557_v44, %v1556_v17 }
 0x43b   :  { %v3841_v61 = vadd.f32 %v1672_v47, %v1671_v2 }
 0x43c   :  { %2511 = vst.msk [vmem:[%s4054_s17 + $0x20] sm:$0xff] %vm60_vm0, %v3829_v24  ;;  %2520 = vmatmul.msk.f32.vlgmr.msra.gmra.mxu0 %vm60_vm0, %v3829_v24  ;;  %2523 = vmatmul.msk.f32.vlgmr.msra.gmra.mxu2 %vm60_vm0, %v3829_v24 }
 0x43d   :  { %1947 = vmatpush.msra.mxu0 %v3468_v21  ;;  %2000 = vmatpush.msra.mxu2 %v3480_v20 }
 0x43e   :  { %2521 = vmatmul.msk.f32.vlgmr.msra.gmra.mxu1 %vm60_vm0, %v3841_v61  ;;  %2524 = vmatmul.msk.f32.vlgmr.msra.gmra.mxu3 %vm60_vm0, %v3841_v61 }
 0x43f   :  { %1948 = vmatpush.msra.mxu0 %v3492_v37  ;;  %1977 = vmatpush.msra.mxu1 %v3474_v7 }
 0x440   :  { %2040 = vmatpush.msra.mxu3 %v3486_v55  ;;  %2001 = vmatpush.msra.mxu2 %v3504_v12 }
 0x441   :  { %1949 = vmatpush.msra.mxu0 %v3516_v3  ;;  %1978 = vmatpush.msra.mxu1 %v3498_v42 }
 0x442   :  { %2041 = vmatpush.msra.mxu3 %v3510_v52  ;;  %2002 = vmatpush.msra.mxu2 %v3528_v5 }
 0x443   :  { %1950 = vmatpush.msra.mxu0 %v3548_v25  ;;  %1979 = vmatpush.msra.mxu1 %v3522_v41 }
 0x444   :  { %2526 = vmatmul.msk.f32.vlgmr.msrb.gmra.mxu0 %vm60_vm0, %v3841_v61  ;;  %2530 = vmatmul.msk.f32.vlgmr.msrb.gmra.mxu2 %vm60_vm0, %v3841_v61 }
 0x445   :  { %2042 = vmatpush.msra.mxu3 %v3534_v10  ;;  %2060 = vmatpush.msrb.mxu0 %v3560_v27 }
 0x446   :  { %2527 = vmatmul.msk.f32.vlgmr.msrb.gmra.mxu1 %vm60_vm0, %v3829_v24  ;;  %2533 = vmatmul.msk.f32.vlgmr.msrb.gmra.mxu3 %vm60_vm0, %v3841_v61 }
 0x447   :  { %1980 = vmatpush.msra.mxu1 %v3554_v49  ;;  %2043 = vmatpush.msra.mxu3 %v3572_v29 }
 0x448   :  { %2061 = vmatpush.msrb.mxu0 %v3584_v32  ;;  %2003 = vmatpush.msra.mxu2 %v3566_v28 }
 0x449   :  { %2100 = vmatpush.msrb.mxu1 %v3578_v31  ;;  %2151 = vmatpush.msrb.mxu3 %v3366_v11  ;;  %v4110_v11 = vld [vmem:[#allocation6_spill] sm:$0xff] }
 0x44a   :  { %2120 = vmatpush.msrb.mxu2 %v3590_v33  ;;  %2062 = vmatpush.msrb.mxu0 %v3603_v4 }
 0x44b   :  { %2101 = vmatpush.msrb.mxu1 %v3597_v34  ;;  %2152 = vmatpush.msrb.mxu3 %v3380_v16  ;;  %v4111_v16 = vld [vmem:[#allocation4_spill] sm:$0xff] }
 0x44c   :  { %2536 = vmatmul.msk.f32.vlgmr.msra.gmra.mxu0 %vm60_vm0, %v3841_v61  ;;  %2121 = vmatpush.msrb.mxu2 %v3609_v35 }
 0x44d   :  { %2102 = vmatpush.msrb.mxu1 %v3616_v36  ;;  %2153 = vmatpush.msrb.mxu3 %v3393_v22 }
 0x44e   :  { %2063 = vmatpush.msrb.mxu0 %v3630_v39  ;;  %2122 = vmatpush.msrb.mxu2 %v3624_v38 }
 0x44f   :  { %2103 = vmatpush.msrb.mxu1 %v3638_v40  ;;  %2154 = vmatpush.msrb.mxu3 %v3406_v26 }
 0x450   :  { %2193 = vmatpush.msra.mxu0 %v3359_v8  ;;  %2123 = vmatpush.msrb.mxu2 %v4102_v14 }
 0x452   :  { %2194 = vmatpush.msra.mxu0 %v3373_v13  ;;  %v2529_v13 = vld [vmem:[%s4041_s0 + $0x30] sm:$0xff] }
 0x454   :  { %2195 = vmatpush.msra.mxu0 %v4110_v11 }
 0x456   :  { %2196 = vmatpush.msra.mxu0 %v4111_v16 }
 0x4b9   :  { %v1694_v22 = vpop.f32.mrf.mxu0 }
 0x4bb   :  { %v1717_v9 = vpop.f32.mrf.mxu1 }
 0x4bc   :  { %v1718_v59 = vadd.f32 %v1717_v9, %v1694_v22 }
 0x4be   :  { %v1720_v1 = vadd.f32 %v4112_v60, %v1718_v59 }
 0x4bf   :  { %v1757_v43 = vpop.f32.mrf.mxu2 }
 0x4c0   :  { %v2522_v19 = vmul.f32 -1.442695, %v1720_v1 }
 0x4c1   :  { %v1777_v26 = vpop.f32.mrf.mxu3 }
 0x4c2   :  { %2679 = vpow2.f32 %v2522_v19  ;;  %v1778_v8 = vadd.f32 %v1777_v26, %v1757_v43  ;;  %v1817_v43 = vpop.f32.mrf.mxu0 }
 0x4c3   :  { %v1837_v59 = vpop.f32.mrf.mxu1 }
 0x4c4   :  { %v1780_v48 = vadd.f32 %v4113_v30, %v1778_v8 }
 0x4c6   :  { %v2525_v58 = vmul.f32 -1.442695, %v1780_v48 }
 0x4c7   :  { %v1868_v15 = vpop.f32.mrf.mxu2 }
 0x4c8   :  { %v1871_v54 = vadd.f32 %v2529_v13, %v1868_v15  ;;  %v2680_v50 = vpop.eup %2679  ;;  %2681 = vpow2.f32 %v2525_v58  ;;  %v4114_v13 = vld [vmem:[#allocation5_spill] sm:$0xff] }
 0x4c9   :  { %v1724_v23 = vadd.f32 1.0, %v2680_v50  ;;  %v1910_v53 = vpop.f32.mrf.mxu3  ;;  %v1838_v58 = vadd.f32 %v4114_v13, %v1837_v59 }
 0x4ca   :  { %v2531_v45 = vmul.f32 -1.442695, %v1871_v54  ;;  %v1913_v62 = vadd.f32 %v2532_v18, %v1910_v53  ;;  %v4115_v18 = vld [vmem:[#allocation7_spill] sm:$0xff] }
 0x4cb   :  { %2683 = vrcp.f32 %v1724_v23  ;;  %v1736_v47 = vand.u32 2147483648, %v1724_v23  ;;  %v1734_v22 = vand.u32 2147483647, %v1724_v23  ;;  %vm1730_vm15 = vweird.f32 %v1724_v23 }
 0x4cc   :  { %2685 = vpow2.f32 %v2531_v45  ;;  %v2534_v6 = vmul.f32 -1.442695, %v1913_v62  ;;  %v1818_v50 = vadd.f32 %v4115_v18, %v1817_v43 }
 0x4cd   :  { %v1737_v26 = vor.u32 1.1754944e-38, %v1736_v47  ;;  %vm1735_vm2 = vcmp.eq.f32.partialorder %v1734_v22, 8.507059e+37 }
 0x4ce   :  { %v2682_v0 = vpop.eup %2681  ;;  %2687 = vpow2.f32 %v2534_v6 }
 0x4cf   :  { %v1784_v63 = vadd.f32 1.0, %v2682_v0 }
 0x4d1   :  { %v2684_v51 = vpop.eup %2683  ;;  %2689 = vrcp.f32 %v1784_v63  ;;  %v1796_v54 = vand.u32 2147483648, %v1784_v63  ;;  %vm1790_vm4 = vweird.f32 %v1784_v63 }
 0x4d2   :  { %v2686_v17 = vpop.eup %2685  ;;  %v1726_v44 = vmul.f32 %v2684_v51, %v1724_v23  ;;  %vm1731_vm14 = vweird.f32 %v2684_v51 }
 0x4d3   :  { %v1875_v56 = vadd.f32 1.0, %v2686_v17  ;;  %vm1732_vm1 = vmor %vm1730_vm15, %vm1731_vm14  ;;  %v1794_v17 = vand.u32 2147483647, %v1784_v63 }
 0x4d4   :  { %v2688_v46 = vpop.eup %2687  ;;  %v1727_v2 = vsub.f32 1.0, %v1726_v44 }
 0x4d5   :  { %2691 = vrcp.f32 %v1875_v56  ;;  %v3901_v11 = vadd.f32 1.0, %v2688_v46  ;;  %v1887_v22 = vand.u32 2147483648, %v1875_v56  ;;  %vm1795_vm6 = vcmp.eq.f32.partialorder %v1794_v17, 8.507059e+37 }
 0x4d6   :  { %v1728_v16 = vmul.f32 %v2684_v51, %v1727_v2  ;;  %vm1881_vm8 = vweird.f32 %v1875_v56 }
 0x4d7   :  { %v2690_v9 = vpop.eup %2689  ;;  %2693 = vrcp.f32 %v3901_v11  ;;  %vm1923_vm12 = vweird.f32 %v3901_v11 }
 0x4d8   :  { %v1786_v1 = vmul.f32 %v2690_v9, %v1784_v63  ;;  %v1729_v19 = vadd.f32 %v2684_v51, %v1728_v16  ;;  %vm1791_vm3 = vweird.f32 %v2690_v9  ;;  %v1888_v63 = vor.u32 1.1754944e-38, %v1887_v22 }
 0x4d9   :  { %vm1792_vm5 = vmor %vm1790_vm4, %vm1791_vm3 }
 0x4da   :  { %v1787_v8 = vsub.f32 1.0, %v1786_v1  ;;  %v1733_v48 = vsel %vm1732_vm1, %v2684_v51, %v1729_v19  ;;  %v1797_v51 = vor.u32 1.1754944e-38, %v1796_v54  ;;  %v1885_v1 = vand.u32 2147483647, %v1875_v56 }
 0x4db   :  { %v2692_v15 = vpop.eup %2691  ;;  %v1738_v45 = vsel %vm1735_vm2, %v1737_v26, %v1733_v48  ;;  %v1952_v26 = vpop.f32.mrf.mxu0 }
 0x4dc   :  { %v1788_v53 = vmul.f32 %v2690_v9, %v1787_v8  ;;  %v1840_v62 = vmul.f32 %v1838_v58, %v1738_v45  ;;  %v1877_v6 = vmul.f32 %v2692_v15, %v1875_v56  ;;  %vm1882_vm7 = vweird.f32 %v2692_v15 }
 0x4dd   :  { %v2694_v0 = vpop.eup %2693  ;;  %vm1883_vm9 = vmor %vm1881_vm8, %vm1882_vm7  ;;  %vm1886_vm10 = vcmp.eq.f32.partialorder %v1885_v1, 8.507059e+37  ;;  %v1953_v54 = vadd.f32 %v3685_v57, %v1952_v26 }
 0x4de   :  { %v1789_v23 = vadd.f32 %v2690_v9, %v1788_v53  ;;  %v1841_v44 = vadd.f32 %v1840_v62, %v1818_v50  ;;  %v1919_v46 = vmul.f32 %v2694_v0, %v3901_v11  ;;  %v1878_v2 = vsub.f32 1.0, %v1877_v6  ;;  %v2535_v53 = vld [vmem:[%s4050_s2 + $0x30] sm:$0xff] }
 0x4df   :  { %vm1924_vm11 = vweird.f32 %v2694_v0  ;;  %v1929_v6 = vand.u32 2147483648, %v3901_v11 }
 0x4e0   :  { %v1793_v47 = vsel %vm1792_vm5, %v2690_v9, %v1789_v23  ;;  %2695 = vtanh.f32 %v1841_v44  ;;  %v1920_v16 = vsub.f32 1.0, %v1919_v46  ;;  %v1879_v59 = vmul.f32 %v2692_v15, %v1878_v2  ;;  %vm1925_vm13 = vmor %vm1923_vm12, %vm1924_vm11 }
 0x4e1   :  { %v1798_v43 = vsel %vm1795_vm6, %v1797_v51, %v1793_v47  ;;  %v1930_v51 = vor.u32 1.1754944e-38, %v1929_v6 }
 0x4e2   :  { %v1921_v19 = vmul.f32 %v2694_v0, %v1920_v16  ;;  %v1880_v8 = vadd.f32 %v2692_v15, %v1879_v59  ;;  %v1843_v48 = vsub.f32 1.0, %v1798_v43  ;;  %v1845_v56 = vmul.f32 %v1798_v43, %v3829_v24 }
 0x4e4   :  { %v1884_v58 = vsel %vm1883_vm9, %v2692_v15, %v1880_v8  ;;  %v1922_v50 = vadd.f32 %v2694_v0, %v1921_v19  ;;  %v1927_v15 = vand.u32 2147483647, %v3901_v11 }
 0x4e5   :  { %v1889_v45 = vsel %vm1886_vm10, %v1888_v63, %v1884_v58 }
 0x4e6   :  { %v2696_v9 = vpop.eup %2695  ;;  %v1955_v17 = vmul.f32 %v1953_v54, %v1889_v45  ;;  %v1926_v46 = vsel %vm1925_vm13, %v2694_v0, %v1922_v50  ;;  %vm1928_vm14 = vcmp.eq.f32.partialorder %v1927_v15, 8.507059e+37 }
 0x4e7   :  { %v1844_v62 = vmul.f32 %v2696_v9, %v1843_v48  ;;  %v1931_v24 = vsel %vm1928_vm14, %v1930_v51, %v1926_v46 }
 0x4e8   :  { %v1956_v23 = vadd.f32 %v2535_v53, %v1955_v17  ;;  %v1958_v11 = vsub.f32 1.0, %v1931_v24  ;;  %v1960_v47 = vmul.f32 %v1931_v24, %v3841_v61 }
 0x4e9   :  { %v3915_v44 = vadd.f32 %v1845_v56, %v1844_v62 }
 0x4ea   :  { %2697 = vtanh.f32 %v1956_v23 }
 0x4eb   :  { %2528 = vst.msk [vmem:[%s4054_s17 + $0x28] sm:$0xff] %vm60_vm0, %v3915_v44  ;;  %2537 = vmatmul.msk.f32.vlgmr.msra.gmra.mxu1 %vm60_vm0, %v3915_v44  ;;  %2540 = vmatmul.msk.f32.vlgmr.msra.gmra.mxu3 %vm60_vm0, %v3915_v44 }
 0x4ec   :  { %2235 = vmatpush.msra.mxu1 %v3468_v21  ;;  %2288 = vmatpush.msra.mxu3 %v3480_v20 }
 0x4ee   :  { %2236 = vmatpush.msra.mxu1 %v3492_v37  ;;  %2289 = vmatpush.msra.mxu3 %v3504_v12  ;;  %v2546_v12 = vld [vmem:[%s4041_s0 + $0x38] sm:$0xff] }
 0x4f0   :  { %2237 = vmatpush.msra.mxu1 %v3516_v3  ;;  %2290 = vmatpush.msra.mxu3 %v3528_v5  ;;  %v2698_v0 = vpop.eup %2697 }
 0x4f1   :  { %v1959_v2 = vmul.f32 %v2698_v0, %v1958_v11 }
 0x4f2   :  { %2238 = vmatpush.msra.mxu1 %v3548_v25  ;;  %2291 = vmatpush.msra.mxu3 %v3566_v28 }
 0x4f3   :  { %v3935_v21 = vadd.f32 %v1960_v47, %v1959_v2 }
 0x4f5   :  { %2538 = vmatmul.msk.f32.vlgmr.msra.gmra.mxu2 %vm60_vm0, %v3935_v21  ;;  %2541 = vmatmul.msk.f32.vlgmr.msrb.gmra.mxu0 %vm60_vm0, %v3935_v21 }
 0x4f6   :  { %2543 = vmatmul.msk.f32.vlgmr.msrb.gmra.mxu1 %vm60_vm0, %v3935_v21  ;;  %2547 = vmatmul.msk.f32.vlgmr.msrb.gmra.mxu3 %vm60_vm0, %v3935_v21 }
 0x4f7   :  { %2348 = vmatpush.msrb.mxu1 %v3560_v27  ;;  %2265 = vmatpush.msra.mxu2 %v3474_v7 }
 0x4f8   :  { %2328 = vmatpush.msrb.mxu0 %v3486_v55  ;;  %2408 = vmatpush.msrb.mxu3 %v3590_v33 }
 0x4f9   :  { %2349 = vmatpush.msrb.mxu1 %v3584_v32  ;;  %2266 = vmatpush.msra.mxu2 %v3498_v42 }
 0x4fa   :  { %2329 = vmatpush.msrb.mxu0 %v3510_v52  ;;  %2409 = vmatpush.msrb.mxu3 %v3609_v35 }
 0x4fb   :  { %2350 = vmatpush.msrb.mxu1 %v3603_v4  ;;  %2267 = vmatpush.msra.mxu2 %v3522_v41  ;;  %v2549_v41 = vld [vmem:[%s4042_s1 + $0x38] sm:$0xff] }
 0x4fc   :  { %2330 = vmatpush.msrb.mxu0 %v3534_v10  ;;  %2410 = vmatpush.msrb.mxu3 %v3624_v38 }
 0x4fd   :  { %2544 = vmatmul.msk.f32.vlgmr.msrb.gmra.mxu2 %vm60_vm0, %v3915_v44  ;;  %2550 = vmatmul.msk.f32.vlgmr.msra.gmra.mxu0 %vm60_vm0, %v3935_v21 }
 0x4fe   :  { %2553 = vmatmul.msk.f32.vlgmr.msra.gmra.mxu1 %vm60_vm0, %v3935_v21  ;;  %2268 = vmatpush.msra.mxu2 %v3554_v49 }
 0x4ff   :  { %2351 = vmatpush.msrb.mxu1 %v3630_v39  ;;  %2331 = vmatpush.msrb.mxu0 %v3572_v29 }
 0x500   :  { %2388 = vmatpush.msrb.mxu2 %v3578_v31  ;;  %2411 = vmatpush.msrb.mxu3 %v4102_v14 }
 0x502   :  { %2389 = vmatpush.msrb.mxu2 %v3597_v34 }
 0x504   :  { %2390 = vmatpush.msrb.mxu2 %v3616_v36 }
 0x506   :  { %2391 = vmatpush.msrb.mxu2 %v3638_v40 }
 0x568   :  { %v1982_v52 = vpop.f32.mrf.mxu1 }
 0x56e   :  { %v2045_v7 = vpop.f32.mrf.mxu3 }
 0x572   :  { %v2065_v20 = vpop.f32.mrf.mxu0 }
 0x573   :  { %v2066_v55 = vadd.f32 %v2065_v20, %v2045_v7  ;;  %v2105_v39 = vpop.f32.mrf.mxu1  ;;  %v2552_v20 = vld [vmem:[%s4050_s2 + $0x38] sm:$0xff] }
 0x574   :  { %v2106_v8 = vadd.f32 %v4115_v18, %v2105_v39 }
 0x575   :  { %v2068_v37 = vadd.f32 %v4113_v30, %v2066_v55 }
 0x577   :  { %v2542_v42 = vmul.f32 -1.442695, %v2068_v37 }
 0x578   :  { %v2005_v3 = vpop.f32.mrf.mxu2 }
 0x579   :  { %2699 = vpow2.f32 %v2542_v42  ;;  %v2006_v5 = vadd.f32 %v2005_v3, %v1982_v52  ;;  %v2156_v10 = vpop.f32.mrf.mxu3 }
 0x57a   :  { %v2159_v25 = vadd.f32 %v2546_v12, %v2156_v10  ;;  %v2198_v49 = vpop.f32.mrf.mxu0 }
 0x57b   :  { %v2008_v27 = vadd.f32 %v4112_v60, %v2006_v5  ;;  %v2201_v28 = vadd.f32 %v2549_v41, %v2198_v49  ;;  %v2240_v58 = vpop.f32.mrf.mxu1 }
 0x57c   :  { %v2548_v29 = vmul.f32 -1.442695, %v2159_v25  ;;  %v2241_v56 = vadd.f32 %v3685_v57, %v2240_v58 }
 0x57d   :  { %v2539_v31 = vmul.f32 -1.442695, %v2008_v27  ;;  %v2551_v32 = vmul.f32 -1.442695, %v2201_v28 }
 0x57e   :  { %2701 = vpow2.f32 %v2548_v29 }
 0x57f   :  { %v2700_v33 = vpop.eup %2699  ;;  %2703 = vpow2.f32 %v2539_v31 }
 0x580   :  { %v3979_v34 = vadd.f32 1.0, %v2700_v33  ;;  %2705 = vpow2.f32 %v2551_v32  ;;  %v2125_v54 = vpop.f32.mrf.mxu2 }
 0x581   :  { %v2126_v23 = vadd.f32 %v4114_v13, %v2125_v54 }
 0x582   :  { %2707 = vrcp.f32 %v3979_v34  ;;  %v2084_v3 = vand.u32 2147483648, %v3979_v34  ;;  %vm2078_vm11 = vweird.f32 %v3979_v34  ;;  %v2082_v25 = vand.u32 2147483647, %v3979_v34 }
 0x584   :  { %v2702_v4 = vpop.eup %2701  ;;  %v2085_v31 = vor.u32 1.1754944e-38, %v2084_v3 }
 0x585   :  { %v2704_v35 = vpop.eup %2703  ;;  %v2163_v36 = vadd.f32 1.0, %v2702_v4 }
 0x586   :  { %v2706_v38 = vpop.eup %2705  ;;  %v2012_v40 = vadd.f32 1.0, %v2704_v35 }
 0x587   :  { %2709 = vrcp.f32 %v2163_v36  ;;  %v3982_v14 = vadd.f32 1.0, %v2706_v38  ;;  %v2173_v9 = vand.u32 2147483647, %v2163_v36  ;;  %v2175_v50 = vand.u32 2147483648, %v2163_v36 }
 0x588   :  { %2711 = vrcp.f32 %v2012_v40  ;;  %v3984_v61 = vpop.eup %2707  ;;  %v2022_v53 = vand.u32 2147483647, %v2012_v40  ;;  %v2024_v17 = vand.u32 2147483648, %v2012_v40  ;;  %vm2169_vm2 = vweird.f32 %v2163_v36 }
 0x589   :  { %2713 = vrcp.f32 %v3982_v14  ;;  %v2074_v16 = vmul.f32 %v3984_v61, %v3979_v34  ;;  %vm2079_vm3 = vweird.f32 %v3984_v61  ;;  %v2176_v11 = vor.u32 1.1754944e-38, %v2175_v50 }
 0x58a   :  { %vm2018_vm5 = vweird.f32 %v2012_v40  ;;  %vm2174_vm6 = vcmp.eq.f32.partialorder %v2173_v9, 8.507059e+37  ;;  %vm2023_vm8 = vcmp.eq.f32.partialorder %v2022_v53, 8.507059e+37  ;;  %v2025_v57 = vor.u32 1.1754944e-38, %v2024_v17  ;;  %vm2080_vm13 = vmor %vm2078_vm11, %vm2079_vm3 }
 0x58b   :  { %v2075_v26 = vsub.f32 1.0, %v2074_v16  ;;  %v2217_v37 = vand.u32 2147483648, %v3982_v14  ;;  %vm2211_vm10 = vweird.f32 %v3982_v14  ;;  %v2215_v41 = vand.u32 2147483647, %v3982_v14 }
 0x58d   :  { %v2710_v22 = vpop.eup %2709  ;;  %v2076_v46 = vmul.f32 %v3984_v61, %v2075_v26  ;;  %v2218_v28 = vor.u32 1.1754944e-38, %v2217_v37  ;;  %vm2216_vm14 = vcmp.eq.f32.partialorder %v2215_v41, 8.507059e+37 }
 0x58e   :  { %v2712_v59 = vpop.eup %2711  ;;  %v2165_v1 = vmul.f32 %v2710_v22, %v2163_v36  ;;  %vm2170_vm15 = vweird.f32 %v2710_v22 }
 0x58f   :  { %v2714_v43 = vpop.eup %2713  ;;  %v2014_v19 = vmul.f32 %v2712_v59, %v2012_v40  ;;  %vm2019_vm1 = vweird.f32 %v2712_v59  ;;  %vm2171_vm4 = vmor %vm2169_vm2, %vm2170_vm15  ;;  %v2077_v52 = vadd.f32 %v3984_v61, %v2076_v46  ;;  %vm2083_vm15 = vcmp.eq.f32.partialorder %v2082_v25, 8.507059e+37 }
 0x590   :  { %v2207_v63 = vmul.f32 %v2714_v43, %v3982_v14  ;;  %v2166_v48 = vsub.f32 1.0, %v2165_v1  ;;  %vm2020_vm7 = vmor %vm2018_vm5, %vm2019_vm1  ;;  %vm2212_vm9 = vweird.f32 %v2714_v43 }
 0x591   :  { %v2015_v45 = vsub.f32 1.0, %v2014_v19  ;;  %vm2213_vm12 = vmor %vm2211_vm10, %vm2212_vm9  ;;  %v2081_v29 = vsel %vm2080_vm13, %v3984_v61, %v2077_v52 }
 0x592   :  { %v2208_v62 = vsub.f32 1.0, %v2207_v63  ;;  %v2167_v6 = vmul.f32 %v2710_v22, %v2166_v48  ;;  %v2086_v33 = vsel %vm2083_vm15, %v2085_v31, %v2081_v29 }
 0x593   :  { %v2016_v15 = vmul.f32 %v2712_v59, %v2015_v45  ;;  %v2131_v36 = vsub.f32 1.0, %v2086_v33  ;;  %v2133_v14 = vmul.f32 %v2086_v33, %v3915_v44 }
 0x594   :  { %v2209_v51 = vmul.f32 %v2714_v43, %v2208_v62  ;;  %v2168_v24 = vadd.f32 %v2710_v22, %v2167_v6 }
 0x595   :  { %v2017_v0 = vadd.f32 %v2712_v59, %v2016_v15 }
 0x596   :  { %v2172_v2 = vsel %vm2171_vm4, %v2710_v22, %v2168_v24  ;;  %v2210_v47 = vadd.f32 %v2714_v43, %v2209_v51 }
 0x597   :  { %v2177_v7 = vsel %vm2174_vm6, %v2176_v11, %v2172_v2  ;;  %v2021_v55 = vsel %vm2020_vm7, %v2712_v59, %v2017_v0 }
 0x598   :  { %v2243_v42 = vmul.f32 %v2241_v56, %v2177_v7  ;;  %v2026_v12 = vsel %vm2023_vm8, %v2025_v57, %v2021_v55  ;;  %v2214_v49 = vsel %vm2213_vm12, %v2714_v43, %v2210_v47 }
 0x599   :  { %v2128_v5 = vmul.f32 %v2126_v23, %v2026_v12  ;;  %v2219_v32 = vsel %vm2216_vm14, %v2218_v28, %v2214_v49 }
 0x59a   :  { %v2244_v10 = vadd.f32 %v2552_v20, %v2243_v42  ;;  %v2246_v4 = vsub.f32 1.0, %v2219_v32  ;;  %v2248_v39 = vmul.f32 %v2219_v32, %v3935_v21 }
 0x59b   :  { %v2129_v27 = vadd.f32 %v2128_v5, %v2106_v8 }
 0x59c   :  { %2715 = vtanh.f32 %v2244_v10 }
 0x59d   :  { %2717 = vtanh.f32 %v2129_v27 }
 0x5a2   :  { %v2716_v35 = vpop.eup %2715 }
 0x5a3   :  { %v2718_v38 = vpop.eup %2717  ;;  %v2247_v34 = vmul.f32 %v2716_v35, %v2246_v4 }
 0x5a4   :  { %v2132_v40 = vmul.f32 %v2718_v38, %v2131_v36 }
 0x5a5   :  { %v2249_v16 = vadd.f32 %v2248_v39, %v2247_v34 }
 0x5a6   :  { %v4010_v22 = vadd.f32 %v2133_v14, %v2132_v40 }
 0x5a7   :  { %2555 = vmatmul.msk.f32.vlgmr.msra.gmra.mxu3 %vm60_vm0, %v2249_v16  ;;  %2425 = vst.msk [vmem:[#allocation2] sm:$0xff] %vm60_vm0, %v2249_v16  ;;  %2558 = vmatmul.msk.f32.vlgmr.msrb.gmra.mxu1 %vm60_vm0, %v2249_v16 }
 0x5a8   :  { %2545 = vst.msk [vmem:[%s4054_s17 + $0x30] sm:$0xff] %vm60_vm0, %v4010_v22  ;;  %2554 = vmatmul.msk.f32.vlgmr.msra.gmra.mxu2 %vm60_vm0, %v4010_v22  ;;  %2557 = vmatmul.msk.f32.vlgmr.msrb.gmra.mxu0 %vm60_vm0, %v4010_v22 }
 0x5af   :  { %2561 = vmatmul.msk.f32.vlgmr.msrb.gmra.mxu3 %vm60_vm0, %v4010_v22 }
 0x5b0   :  { %2560 = vmatmul.msk.f32.vlgmr.msrb.gmra.mxu2 %vm60_vm0, %v2249_v16 }
 0x624   :  { %v2353_v44 = vpop.f32.mrf.mxu1 }
 0x625   :  { %v2333_v21 = vpop.f32.mrf.mxu0 }
 0x626   :  { %v2354_v61 = vadd.f32 %v2353_v44, %v2333_v21 }
 0x628   :  { %v2356_v59 = vadd.f32 %v4113_v30, %v2354_v61 }
 0x62a   :  { %v2559_v1 = vmul.f32 -1.442695, %v2356_v59  ;;  %v2293_v43 = vpop.f32.mrf.mxu3 }
 0x62b   :  { %v2270_v19 = vpop.f32.mrf.mxu2 }
 0x62c   :  { %2719 = vpow2.f32 %v2559_v1  ;;  %v2294_v26 = vadd.f32 %v2293_v43, %v2270_v19 }
 0x62e   :  { %v2296_v8 = vadd.f32 %v4112_v60, %v2294_v26 }
 0x630   :  { %v2556_v63 = vmul.f32 -1.442695, %v2296_v8 }
 0x632   :  { %v2720_v48 = vpop.eup %2719  ;;  %2721 = vpow2.f32 %v2556_v63  ;;  %v2413_v60 = vpop.f32.mrf.mxu3 }
 0x633   :  { %v2360_v58 = vadd.f32 1.0, %v2720_v48  ;;  %v2393_v24 = vpop.f32.mrf.mxu2  ;;  %v2414_v0 = vadd.f32 %v4114_v13, %v2413_v60 }
 0x634   :  { %v2394_v20 = vadd.f32 %v4115_v18, %v2393_v24 }
 0x635   :  { %2723 = vrcp.f32 %v2360_v58  ;;  %v2372_v47 = vand.u32 2147483648, %v2360_v58  ;;  %vm2366_vm6 = vweird.f32 %v2360_v58  ;;  %v2370_v55 = vand.u32 2147483647, %v2360_v58 }
 0x637   :  { %v2373_v12 = vor.u32 1.1754944e-38, %v2372_v47  ;;  %vm2371_vm8 = vcmp.eq.f32.partialorder %v2370_v55, 8.507059e+37 }
 0x638   :  { %v2722_v54 = vpop.eup %2721 }
 0x639   :  { %v2300_v9 = vadd.f32 1.0, %v2722_v54 }
 0x63b   :  { %2725 = vrcp.f32 %v2300_v9  ;;  %v2724_v50 = vpop.eup %2723  ;;  %v2312_v17 = vand.u32 2147483648, %v2300_v9  ;;  %v2310_v15 = vand.u32 2147483647, %v2300_v9  ;;  %vm2306_vm2 = vweird.f32 %v2300_v9 }
 0x63c   :  { %v2362_v45 = vmul.f32 %v2724_v50, %v2360_v58  ;;  %vm2367_vm5 = vweird.f32 %v2724_v50 }
 0x63d   :  { %v2313_v51 = vor.u32 1.1754944e-38, %v2312_v17  ;;  %vm2311_vm4 = vcmp.eq.f32.partialorder %v2310_v15, 8.507059e+37  ;;  %vm2368_vm7 = vmor %vm2366_vm6, %vm2367_vm5 }
 0x63e   :  { %v2363_v30 = vsub.f32 1.0, %v2362_v45 }
 0x640   :  { %v2364_v23 = vmul.f32 %v2724_v50, %v2363_v30 }
 0x641   :  { %v2726_v53 = vpop.eup %2725 }
 0x642   :  { %v2302_v62 = vmul.f32 %v2726_v53, %v2300_v9  ;;  %vm2307_vm1 = vweird.f32 %v2726_v53  ;;  %v2365_v57 = vadd.f32 %v2724_v50, %v2364_v23 }
 0x643   :  { %vm2308_vm3 = vmor %vm2306_vm2, %vm2307_vm1 }
 0x644   :  { %v2303_v6 = vsub.f32 1.0, %v2302_v62  ;;  %v2369_v42 = vsel %vm2368_vm7, %v2724_v50, %v2365_v57 }
 0x645   :  { %v2374_v52 = vsel %vm2371_vm8, %v2373_v12, %v2369_v42 }
 0x646   :  { %v2304_v56 = vmul.f32 %v2726_v53, %v2303_v6  ;;  %v2419_v3 = vsub.f32 1.0, %v2374_v52  ;;  %v2421_v13 = vmul.f32 %v2374_v52, %v4010_v22 }
 0x648   :  { %v2305_v46 = vadd.f32 %v2726_v53, %v2304_v56 }
 0x64a   :  { %v2309_v11 = vsel %vm2308_vm3, %v2726_v53, %v2305_v46 }
 0x64b   :  { %v2314_v2 = vsel %vm2311_vm4, %v2313_v51, %v2309_v11 }
 0x64c   :  { %v2416_v7 = vmul.f32 %v2414_v0, %v2314_v2 }
 0x64e   :  { %v2417_v37 = vadd.f32 %v2416_v7, %v2394_v20 }
 0x650   :  { %2727 = vtanh.f32 %v2417_v37 }
 0x656   :  { %v2728_v41 = vpop.eup %2727 }
 0x657   :  { %v2420_v5 = vmul.f32 %v2728_v41, %v2419_v3 }
 0x659   :  { %v2422_v10 = vadd.f32 %v2421_v13, %v2420_v5 }
 0x65b   :  { %2562 = vst.msk [vmem:[%s4054_s17 + $0x38] sm:$0xff] %vm60_vm0, %v2422_v10 }
 0x65c   :  { %2426 = vst.msk [vmem:[#allocation3] sm:$0xff] %vm60_vm0, %v2422_v10 }

</bundles_post_ra>
